<compile_context>
chip_gen: v5e
topology: v5e:2x2
jax: 0.10.0
libtpu: 0.0.40
codegen_flags: <defaults>
</compile_context>

<pallas_src>
import jax
import jax.numpy as jnp
from jax import lax
from jax.experimental import pallas as pl
from jax.experimental.pallas import tpu as pltpu  # noqa: F401  (TPU backend)

N_EMBD = 32
BLOCK_SIZE = 8
N_HEAD = 4
N_LAYER = 3
HEAD_SIZE = N_EMBD // N_HEAD
LN_EPS = 1e-5
VOCAB = 65              # vocab_size = len(set(text)); char vocab of the training text
V_PAD = 128             # vocab padded to a full 128-lane register for lane-dense I/O
SCALE = N_EMBD ** -0.5  # PyTorch Head scales by C**-0.5 with C = n_embd (intentional)

# ---- row layout of the packed small-vector slab (rows x 128 lanes, f32) ----
ROW_LAYER = 8                          # rows per layer: ln1g,ln1b,ln2g,ln2b,bproj,b2,b1,pad
ROW_FIN = N_LAYER * ROW_LAYER          # 24: lnf_g, lnf_b, b_lm (rows 24..26), pad to 32
ROW_TOK = ROW_FIN + 8                  # 32: token-embedding table (V_PAD rows, lanes 0:C)
ROW_WLM = ROW_TOK + V_PAD              # 160: lm-head weight (C rows, lanes 0:128)
ROW_POS = ROW_WLM + N_EMBD             # 192: pre-tiled pos-emb (R rows), then bias (R rows)


def _layernorm(x, gamma, beta):
    mu = jnp.mean(x, axis=-1, keepdims=True)
    var = jnp.mean((x - mu) * (x - mu), axis=-1, keepdims=True)
    return (x - mu) * lax.rsqrt(var + LN_EPS) * gamma + beta


def microllm_kernel(idx_ref, wbig_ref, w2_ref, slab_ref, o_ref):
    f32 = jnp.float32
    R = idx_ref.shape[0]          # B * T, batch folded into the row axis
    C = N_EMBD
    HS = HEAD_SIZE

    # ---- token embedding: gather-free one-hot @ table on the MXU ----
    idx = idx_ref[...]                                                     # (R,1) i32
    tok_oh = (lax.broadcasted_iota(jnp.int32, (R, V_PAD), 1) == idx).astype(f32)
    x = jnp.dot(tok_oh, slab_ref[ROW_TOK:ROW_TOK + V_PAD, 0:C],
                preferred_element_type=f32)                                # (R,C)
    # position embedding: pre-tiled (R,C) wrapper-side -> just add
    x = x + slab_ref[ROW_POS:ROW_POS + R, 0:C]

    # block-diagonal causal additive bias (0 / -1e30), precomputed wrapper-side
    bias = slab_ref[ROW_POS + R:ROW_POS + 2 * R, 0:R]                      # (R,R)

    for l in range(N_LAYER):                      # unrolled at trace time (3 layers)
        base = l * ROW_LAYER
        ln1g = slab_ref[base + 0:base + 1, 0:C]
        ln1b = slab_ref[base + 1:base + 2, 0:C]
        ln2g = slab_ref[base + 2:base + 3, 0:C]
        ln2b = slab_ref[base + 3:base + 4, 0:C]
        bproj = slab_ref[base + 4:base + 5, 0:C]
        b2 = slab_ref[base + 5:base + 6, 0:C]
        b1 = slab_ref[base + 6:base + 7, :]                                # (1, 4C)
        wqkv = wbig_ref[l, :, 0:3 * C]                                     # (C, 3C)
        w1 = wbig_ref[l, :, 128:128 + 4 * C]                               # (C, 4C)
        wproj = wbig_ref[l, :, 256:256 + C]                                # (C, C)
        w2 = w2_ref[l]                                                     # (4C, C)

        # LN1 + fused QKV projection: one (R,C) x (C,3C) MXU pass
        ln1x = _layernorm(x, ln1g, ln1b)
        qkv = jnp.dot(ln1x, wqkv, preferred_element_type=f32)              # (R,3C)=[K|Q|V]

        # causal multi-head attention
        heads = []
        for h in range(N_HEAD):
            lo, hi = h * HS, (h + 1) * HS
            k = qkv[:, lo:hi]
            q = qkv[:, C + lo:C + hi]
            v = qkv[:, 2 * C + lo:2 * C + hi]
            # q @ k^T (transposed-RHS contraction, same form as the flash-attn einsum)
            s = lax.dot_general(q, k, (((1,), (1,)), ((), ())),
                                preferred_element_type=f32) * SCALE        # (R,R)
            # no max-subtract: scores are tiny at init scale; masked -> exp(-1e30)=0
            e = jnp.exp(s + bias)
            att = e * pl.reciprocal(jnp.sum(e, axis=-1, keepdims=True), approx=True)
            heads.append(jnp.dot(att, v, preferred_element_type=f32))      # (R,HS)
        # single head-concat + one projection matmul per layer
        sa = jnp.dot(jnp.concatenate(heads, axis=-1), wproj,
                     preferred_element_type=f32) + bproj
        x = x + sa                                                         # residual 1

        # LN2 + MLP (ReLU)
        ln2x = _layernorm(x, ln2g, ln2b)
        h1 = jnp.maximum(jnp.dot(ln2x, w1, preferred_element_type=f32) + b1, 0.0)
        x = x + jnp.dot(h1, w2, preferred_element_type=f32) + b2           # residual 2

    # ---- final LayerNorm + LM head; lane-dense (R, 128) padded-logits store ----
    xf = _layernorm(x, slab_ref[ROW_FIN + 0:ROW_FIN + 1, 0:C],
                    slab_ref[ROW_FIN + 1:ROW_FIN + 2, 0:C])
    o_ref[...] = (jnp.dot(xf, slab_ref[ROW_WLM:ROW_WLM + C, :],
                          preferred_element_type=f32)
                  + slab_ref[ROW_FIN + 2:ROW_FIN + 3, :])


@jax.jit
def microllm_forward(idx, kp):
    B, T = idx.shape
    R = B * T
    assert kp["slab"].shape[0] == ROW_POS + 2 * R, "slab packed for a different batch"
    idx_flat = idx.reshape(R, 1).astype(jnp.int32)     # wrapper glue: batch fold
    logits_pad = pl.pallas_call(
        microllm_kernel,
        out_shape=jax.ShapeDtypeStruct((R, V_PAD), jnp.float32),
    )(idx_flat, kp["wbig"], kp["w2"], kp["slab"])
    return logits_pad[:, :VOCAB].reshape(B, T, VOCAB)


# ----------------------------- parameters ------------------------------------
def init_params(key):
    s = 0.02
    keys = iter(jax.random.split(key, 3 + 8 * N_LAYER))
    nrm = lambda shape, sc=s: sc * jax.random.normal(next(keys), shape, jnp.float32)
    layers = []
    for _ in range(N_LAYER):
        layers.append({
            "wk": nrm((N_EMBD, N_EMBD)), "wq": nrm((N_EMBD, N_EMBD)),
            "wv": nrm((N_EMBD, N_EMBD)), "wproj": nrm((N_EMBD, N_EMBD)),
            "bproj": nrm((N_EMBD,)),
            "w1": nrm((N_EMBD, 4 * N_EMBD)), "b1": nrm((4 * N_EMBD,)),
            "w2": nrm((4 * N_EMBD, N_EMBD)),
            "b2": jnp.zeros((N_EMBD,), jnp.float32),
            "ln1g": jnp.ones((N_EMBD,), jnp.float32),
            "ln1b": jnp.zeros((N_EMBD,), jnp.float32),
            "ln2g": jnp.ones((N_EMBD,), jnp.float32),
            "ln2b": jnp.zeros((N_EMBD,), jnp.float32),
        })
    return {
        "layers": layers,
        "tok_emb": nrm((VOCAB, N_EMBD), 1.0),
        "pos_emb": nrm((BLOCK_SIZE, N_EMBD), 1.0),
        "lnf_g": jnp.ones((N_EMBD,), jnp.float32),
        "lnf_b": jnp.zeros((N_EMBD,), jnp.float32),
        "w_lm": nrm((N_EMBD, VOCAB)),
        "b_lm": jnp.zeros((VOCAB,), jnp.float32),
    }


def pack_params(p, batch_size):
    """Pack natural params into the 3 static slabs the kernel consumes."""
    f32 = jnp.float32
    C = N_EMBD
    T = BLOCK_SIZE
    R = batch_size * T
    L = p["layers"]

    def big(l):   # (C, 384): [wk|wq|wv, pad32, w1, wproj, pad96] — 128-lane aligned blocks
        wqkv = jnp.concatenate([l["wk"], l["wq"], l["wv"]], axis=1)        # (C, 3C)
        return jnp.concatenate(
            [wqkv, jnp.zeros((C, 128 - 3 * C), f32),
             l["w1"],
             l["wproj"], jnp.zeros((C, 128 - C), f32)], axis=1)

    wbig = jnp.stack([big(l) for l in L]).astype(f32)                      # (L, C, 384)
    w2 = jnp.stack([l["w2"] for l in L]).astype(f32)                       # (L, 4C, C)

    slab = jnp.zeros((ROW_POS + 2 * R, V_PAD), f32)
    for i, l in enumerate(L):
        b = i * ROW_LAYER
        slab = slab.at[b + 0, :C].set(l["ln1g"])
        slab = slab.at[b + 1, :C].set(l["ln1b"])
        slab = slab.at[b + 2, :C].set(l["ln2g"])
        slab = slab.at[b + 3, :C].set(l["ln2b"])
        slab = slab.at[b + 4, :C].set(l["bproj"])
        slab = slab.at[b + 5, :C].set(l["b2"])
        slab = slab.at[b + 6, :4 * C].set(l["b1"])
    slab = slab.at[ROW_FIN + 0, :C].set(p["lnf_g"])
    slab = slab.at[ROW_FIN + 1, :C].set(p["lnf_b"])
    slab = slab.at[ROW_FIN + 2, :VOCAB].set(p["b_lm"])
    slab = slab.at[ROW_TOK:ROW_TOK + VOCAB, :C].set(p["tok_emb"])
    slab = slab.at[ROW_WLM:ROW_WLM + C, :VOCAB].set(p["w_lm"])
    # position embedding pre-tiled over the folded batch
    slab = slab.at[ROW_POS:ROW_POS + R, :C].set(jnp.tile(p["pos_emb"], (batch_size, 1)))
    # block-diagonal causal additive bias over the folded (R,R) scores
    r = jnp.arange(R)
    causal = (r[:, None] >= r[None, :]) & ((r[:, None] // T) == (r[None, :] // T))
    slab = slab.at[ROW_POS + R:ROW_POS + 2 * R, :R].set(
        jnp.where(causal, 0.0, -1e30).astype(f32))
    return {"wbig": wbig, "w2": w2, "slab": slab}


# ----------------------------- pure-JAX reference -----------------------------
def _ref_ln(v, g, b):
    mu = jnp.mean(v, axis=-1, keepdims=True)
    var = jnp.mean((v - mu) ** 2, axis=-1, keepdims=True)
    return (v - mu) / jnp.sqrt(var + LN_EPS) * g + b


def _ref_block(x, lp):
    B, T, C = x.shape
    h = _ref_ln(x, lp["ln1g"], lp["ln1b"])
    tril = jnp.tril(jnp.ones((T, T)))
    heads = []
    for i in range(N_HEAD):
        lo, hi = i * HEAD_SIZE, (i + 1) * HEAD_SIZE
        k = h @ lp["wk"][:, lo:hi]
        q = h @ lp["wq"][:, lo:hi]
        v = h @ lp["wv"][:, lo:hi]
        wei = q @ jnp.swapaxes(k, -2, -1) * C ** (-0.5)
        wei = jnp.where(tril == 0, -jnp.inf, wei)
        wei = jax.nn.softmax(wei, axis=-1)
        heads.append(wei @ v)
    sa = jnp.concatenate(heads, axis=-1) @ lp["wproj"] + lp["bproj"]
    x = x + sa
    h2 = _ref_ln(x, lp["ln2g"], lp["ln2b"])
    ff = jnp.maximum(h2 @ lp["w1"] + lp["b1"], 0.0) @ lp["w2"] + lp["b2"]
    return x + ff


def reference_forward(idx, p):
    x = p["tok_emb"][idx] + p["pos_emb"][None, :, :]
    for lp in p["layers"]:
        x = _ref_block(x, lp)
    x = _ref_ln(x, p["lnf_g"], p["lnf_b"])
    return x @ p["w_lm"] + p["b_lm"]


if __name__ == "__main__":
    key = jax.random.PRNGKey(0)
    kidx, kpar = jax.random.split(key)
    B, T = 2, BLOCK_SIZE                              # idx: (2, 8) token ids
    idx = jax.random.randint(kidx, (B, T), 0, VOCAB, dtype=jnp.int32)

    params = init_params(kpar)
    packed = pack_params(params, batch_size=B)

    logits = jax.block_until_ready(microllm_forward(idx, packed))

    ref = reference_forward(idx, params)
    assert logits.shape == (B, T, VOCAB)
    # tolerance accounts for the EUP approximate reciprocal in the softmax
    err = float(jnp.max(jnp.abs(logits - ref)))
    assert jnp.allclose(logits, ref, atol=2e-3, rtol=2e-3), err
    print("KERNEL_OK")
</pallas_src>

<mosaic_0001>
module attributes {stable_mosaic.version = 11 : i64} {
  func.func @microllm_kernel(%arg0: memref<16x1xi32, #tpu.memory_space<vmem>>, %arg1: memref<3x32x384xf32, #tpu.memory_space<vmem>>, %arg2: memref<3x128x32xf32, #tpu.memory_space<vmem>>, %arg3: memref<224x128xf32, #tpu.memory_space<vmem>>, %arg4: memref<16x128xf32, #tpu.memory_space<vmem>>) attributes {dimension_semantics = [], scalar_prefetch = 0 : i64, scratch_operands = 0 : i64, tpu.core_type = #tpu.core_type<tc>} {
    %c0 = arith.constant 0 : index
    %c0_0 = arith.constant 0 : index
    %0 = vector.load %arg0[%c0, %c0_0] : memref<16x1xi32, #tpu.memory_space<vmem>>, vector<16x1xi32>
    %1 = tpu.iota {dimensions = array<i32: 1>} : vector<16x128xi32>
    %2 = vector.broadcast %0 : vector<16x1xi32> to vector<16x128xi32>
    %3 = arith.cmpi eq, %1, %2 : vector<16x128xi32>
    %4 = arith.extui %3 : vector<16x128xi1> to vector<16x128xi32>
    %5 = arith.sitofp %4 : vector<16x128xi32> to vector<16x128xf32>
    %c32 = arith.constant 32 : index
    %c0_1 = arith.constant 0 : index
    %6 = vector.load %arg3[%c32, %c0_1] : memref<224x128xf32, #tpu.memory_space<vmem>>, vector<128x32xf32>
    %cst = arith.constant dense<0.000000e+00> : vector<16x32xf32>
    %7 = tpu.matmul %5, %6, %cst {dimension_numbers = #tpu.dot_dimension_numbers<[1], [0], [0], [1], [0, 0, 1, 1], [], []>} : vector<16x128xf32>, vector<128x32xf32>, vector<16x32xf32> -> vector<16x32xf32>
    %c192 = arith.constant 192 : index
    %c0_2 = arith.constant 0 : index
    %8 = vector.load %arg3[%c192, %c0_2] : memref<224x128xf32, #tpu.memory_space<vmem>>, vector<16x32xf32>
    %9 = arith.addf %7, %8 : vector<16x32xf32>
    %c208 = arith.constant 208 : index
    %c0_3 = arith.constant 0 : index
    %10 = vector.load %arg3[%c208, %c0_3] : memref<224x128xf32, #tpu.memory_space<vmem>>, vector<16x16xf32>
    %c0_4 = arith.constant 0 : index
    %c0_5 = arith.constant 0 : index
    %11 = vector.load %arg3[%c0_4, %c0_5] : memref<224x128xf32, #tpu.memory_space<vmem>>, vector<1x32xf32>
    %c1 = arith.constant 1 : index
    %c0_6 = arith.constant 0 : index
    %12 = vector.load %arg3[%c1, %c0_6] : memref<224x128xf32, #tpu.memory_space<vmem>>, vector<1x32xf32>
    %c2 = arith.constant 2 : index
    %c0_7 = arith.constant 0 : index
    %13 = vector.load %arg3[%c2, %c0_7] : memref<224x128xf32, #tpu.memory_space<vmem>>, vector<1x32xf32>
    %c3 = arith.constant 3 : index
    %c0_8 = arith.constant 0 : index
    %14 = vector.load %arg3[%c3, %c0_8] : memref<224x128xf32, #tpu.memory_space<vmem>>, vector<1x32xf32>
    %c4 = arith.constant 4 : index
    %c0_9 = arith.constant 0 : index
    %15 = vector.load %arg3[%c4, %c0_9] : memref<224x128xf32, #tpu.memory_space<vmem>>, vector<1x32xf32>
    %c5 = arith.constant 5 : index
    %c0_10 = arith.constant 0 : index
    %16 = vector.load %arg3[%c5, %c0_10] : memref<224x128xf32, #tpu.memory_space<vmem>>, vector<1x32xf32>
    %c6 = arith.constant 6 : index
    %c0_11 = arith.constant 0 : index
    %17 = vector.load %arg3[%c6, %c0_11] : memref<224x128xf32, #tpu.memory_space<vmem>>, vector<1x128xf32>
    %c0_12 = arith.constant 0 : index
    %c0_13 = arith.constant 0 : index
    %c0_14 = arith.constant 0 : index
    %18 = vector.load %arg1[%c0_12, %c0_13, %c0_14] : memref<3x32x384xf32, #tpu.memory_space<vmem>>, vector<1x32x96xf32>
    %19 = vector.shape_cast %18 : vector<1x32x96xf32> to vector<32x96xf32>
    %c0_15 = arith.constant 0 : index
    %c0_16 = arith.constant 0 : index
    %c128 = arith.constant 128 : index
    %20 = vector.load %arg1[%c0_15, %c0_16, %c128] : memref<3x32x384xf32, #tpu.memory_space<vmem>>, vector<1x32x128xf32>
    %21 = vector.shape_cast %20 : vector<1x32x128xf32> to vector<32x128xf32>
    %c0_17 = arith.constant 0 : index
    %c0_18 = arith.constant 0 : index
    %c256 = arith.constant 256 : index
    %22 = vector.load %arg1[%c0_17, %c0_18, %c256] : memref<3x32x384xf32, #tpu.memory_space<vmem>>, vector<1x32x32xf32>
    %23 = vector.shape_cast %22 : vector<1x32x32xf32> to vector<32x32xf32>
    %c0_19 = arith.constant 0 : index
    %c0_20 = arith.constant 0 : index
    %c0_21 = arith.constant 0 : index
    %24 = vector.load %arg2[%c0_19, %c0_20, %c0_21] : memref<3x128x32xf32, #tpu.memory_space<vmem>>, vector<1x128x32xf32>
    %25 = vector.shape_cast %24 : vector<1x128x32xf32> to vector<128x32xf32>
    %cst_22 = arith.constant dense<0.000000e+00> : vector<16xf32>
    %26 = vector.multi_reduction <add>, %9, %cst_22 [1] : vector<16x32xf32> to vector<16xf32>
    %27 = vector.shape_cast %26 : vector<16xf32> to vector<16x1xf32>
    %cst_23 = arith.constant 3.200000e+01 : f32
    %28 = vector.broadcast %cst_23 : f32 to vector<16x1xf32>
    %29 = arith.divf %27, %28 : vector<16x1xf32>
    %30 = vector.broadcast %29 : vector<16x1xf32> to vector<16x32xf32>
    %31 = arith.subf %9, %30 : vector<16x32xf32>
    %32 = vector.broadcast %29 : vector<16x1xf32> to vector<16x32xf32>
    %33 = arith.subf %9, %32 : vector<16x32xf32>
    %34 = arith.mulf %31, %33 : vector<16x32xf32>
    %cst_24 = arith.constant dense<0.000000e+00> : vector<16xf32>
    %35 = vector.multi_reduction <add>, %34, %cst_24 [1] : vector<16x32xf32> to vector<16xf32>
    %36 = vector.shape_cast %35 : vector<16xf32> to vector<16x1xf32>
    %cst_25 = arith.constant 3.200000e+01 : f32
    %37 = vector.broadcast %cst_25 : f32 to vector<16x1xf32>
    %38 = arith.divf %36, %37 : vector<16x1xf32>
    %39 = vector.broadcast %29 : vector<16x1xf32> to vector<16x32xf32>
    %40 = arith.subf %9, %39 : vector<16x32xf32>
    %cst_26 = arith.constant 9.99999974E-6 : f32
    %41 = vector.broadcast %cst_26 : f32 to vector<16x1xf32>
    %42 = arith.addf %38, %41 : vector<16x1xf32>
    %43 = math.rsqrt %42 : vector<16x1xf32>
    %44 = vector.broadcast %43 : vector<16x1xf32> to vector<16x32xf32>
    %45 = arith.mulf %40, %44 : vector<16x32xf32>
    %46 = vector.broadcast %11 : vector<1x32xf32> to vector<16x32xf32>
    %47 = arith.mulf %45, %46 : vector<16x32xf32>
    %48 = vector.broadcast %12 : vector<1x32xf32> to vector<16x32xf32>
    %49 = arith.addf %47, %48 : vector<16x32xf32>
    %cst_27 = arith.constant dense<0.000000e+00> : vector<16x96xf32>
    %50 = tpu.matmul %49, %19, %cst_27 {dimension_numbers = #tpu.dot_dimension_numbers<[1], [0], [0], [1], [0, 0, 1, 1], [], []>} : vector<16x32xf32>, vector<32x96xf32>, vector<16x96xf32> -> vector<16x96xf32>
    %51 = vector.extract_strided_slice %50 {offsets = [0, 0], sizes = [16, 8], strides = [1, 1]} : vector<16x96xf32> to vector<16x8xf32>
    %52 = vector.extract_strided_slice %50 {offsets = [0, 32], sizes = [16, 8], strides = [1, 1]} : vector<16x96xf32> to vector<16x8xf32>
    %53 = vector.extract_strided_slice %50 {offsets = [0, 64], sizes = [16, 8], strides = [1, 1]} : vector<16x96xf32> to vector<16x8xf32>
    %cst_28 = arith.constant dense<0.000000e+00> : vector<16x16xf32>
    %54 = tpu.matmul %52, %51, %cst_28 {dimension_numbers = #tpu.dot_dimension_numbers<[1], [1], [0], [0], [0, 0, 1, 0], [], []>} : vector<16x8xf32>, vector<16x8xf32>, vector<16x16xf32> -> vector<16x16xf32>
    %cst_29 = arith.constant 0.176776692 : f32
    %55 = vector.broadcast %cst_29 : f32 to vector<16x16xf32>
    %56 = arith.mulf %54, %55 : vector<16x16xf32>
    %57 = arith.addf %56, %10 : vector<16x16xf32>
    %58 = math.exp %57 : vector<16x16xf32>
    %cst_30 = arith.constant dense<0.000000e+00> : vector<16xf32>
    %59 = vector.multi_reduction <add>, %58, %cst_30 [1] : vector<16x16xf32> to vector<16xf32>
    %60 = vector.shape_cast %59 : vector<16xf32> to vector<16x1xf32>
    %61 = tpu.reciprocal %60 {approx = true} : vector<16x1xf32> -> vector<16x1xf32>
    %62 = vector.broadcast %61 : vector<16x1xf32> to vector<16x16xf32>
    %63 = arith.mulf %58, %62 : vector<16x16xf32>
    %cst_31 = arith.constant dense<0.000000e+00> : vector<16x8xf32>
    %64 = tpu.matmul %63, %53, %cst_31 {dimension_numbers = #tpu.dot_dimension_numbers<[1], [0], [0], [1], [0, 0, 1, 1], [], []>} : vector<16x16xf32>, vector<16x8xf32>, vector<16x8xf32> -> vector<16x8xf32>
    %65 = vector.extract_strided_slice %50 {offsets = [0, 8], sizes = [16, 8], strides = [1, 1]} : vector<16x96xf32> to vector<16x8xf32>
    %66 = vector.extract_strided_slice %50 {offsets = [0, 40], sizes = [16, 8], strides = [1, 1]} : vector<16x96xf32> to vector<16x8xf32>
    %67 = vector.extract_strided_slice %50 {offsets = [0, 72], sizes = [16, 8], strides = [1, 1]} : vector<16x96xf32> to vector<16x8xf32>
    %cst_32 = arith.constant dense<0.000000e+00> : vector<16x16xf32>
    %68 = tpu.matmul %66, %65, %cst_32 {dimension_numbers = #tpu.dot_dimension_numbers<[1], [1], [0], [0], [0, 0, 1, 0], [], []>} : vector<16x8xf32>, vector<16x8xf32>, vector<16x16xf32> -> vector<16x16xf32>
    %cst_33 = arith.constant 0.176776692 : f32
    %69 = vector.broadcast %cst_33 : f32 to vector<16x16xf32>
    %70 = arith.mulf %68, %69 : vector<16x16xf32>
    %71 = arith.addf %70, %10 : vector<16x16xf32>
    %72 = math.exp %71 : vector<16x16xf32>
    %cst_34 = arith.constant dense<0.000000e+00> : vector<16xf32>
    %73 = vector.multi_reduction <add>, %72, %cst_34 [1] : vector<16x16xf32> to vector<16xf32>
    %74 = vector.shape_cast %73 : vector<16xf32> to vector<16x1xf32>
    %75 = tpu.reciprocal %74 {approx = true} : vector<16x1xf32> -> vector<16x1xf32>
    %76 = vector.broadcast %75 : vector<16x1xf32> to vector<16x16xf32>
    %77 = arith.mulf %72, %76 : vector<16x16xf32>
    %cst_35 = arith.constant dense<0.000000e+00> : vector<16x8xf32>
    %78 = tpu.matmul %77, %67, %cst_35 {dimension_numbers = #tpu.dot_dimension_numbers<[1], [0], [0], [1], [0, 0, 1, 1], [], []>} : vector<16x16xf32>, vector<16x8xf32>, vector<16x8xf32> -> vector<16x8xf32>
    %79 = vector.extract_strided_slice %50 {offsets = [0, 16], sizes = [16, 8], strides = [1, 1]} : vector<16x96xf32> to vector<16x8xf32>
    %80 = vector.extract_strided_slice %50 {offsets = [0, 48], sizes = [16, 8], strides = [1, 1]} : vector<16x96xf32> to vector<16x8xf32>
    %81 = vector.extract_strided_slice %50 {offsets = [0, 80], sizes = [16, 8], strides = [1, 1]} : vector<16x96xf32> to vector<16x8xf32>
    %cst_36 = arith.constant dense<0.000000e+00> : vector<16x16xf32>
    %82 = tpu.matmul %80, %79, %cst_36 {dimension_numbers = #tpu.dot_dimension_numbers<[1], [1], [0], [0], [0, 0, 1, 0], [], []>} : vector<16x8xf32>, vector<16x8xf32>, vector<16x16xf32> -> vector<16x16xf32>
    %cst_37 = arith.constant 0.176776692 : f32
    %83 = vector.broadcast %cst_37 : f32 to vector<16x16xf32>
    %84 = arith.mulf %82, %83 : vector<16x16xf32>
    %85 = arith.addf %84, %10 : vector<16x16xf32>
    %86 = math.exp %85 : vector<16x16xf32>
    %cst_38 = arith.constant dense<0.000000e+00> : vector<16xf32>
    %87 = vector.multi_reduction <add>, %86, %cst_38 [1] : vector<16x16xf32> to vector<16xf32>
    %88 = vector.shape_cast %87 : vector<16xf32> to vector<16x1xf32>
    %89 = tpu.reciprocal %88 {approx = true} : vector<16x1xf32> -> vector<16x1xf32>
    %90 = vector.broadcast %89 : vector<16x1xf32> to vector<16x16xf32>
    %91 = arith.mulf %86, %90 : vector<16x16xf32>
    %cst_39 = arith.constant dense<0.000000e+00> : vector<16x8xf32>
    %92 = tpu.matmul %91, %81, %cst_39 {dimension_numbers = #tpu.dot_dimension_numbers<[1], [0], [0], [1], [0, 0, 1, 1], [], []>} : vector<16x16xf32>, vector<16x8xf32>, vector<16x8xf32> -> vector<16x8xf32>
    %93 = vector.extract_strided_slice %50 {offsets = [0, 24], sizes = [16, 8], strides = [1, 1]} : vector<16x96xf32> to vector<16x8xf32>
    %94 = vector.extract_strided_slice %50 {offsets = [0, 56], sizes = [16, 8], strides = [1, 1]} : vector<16x96xf32> to vector<16x8xf32>
    %95 = vector.extract_strided_slice %50 {offsets = [0, 88], sizes = [16, 8], strides = [1, 1]} : vector<16x96xf32> to vector<16x8xf32>
    %cst_40 = arith.constant dense<0.000000e+00> : vector<16x16xf32>
    %96 = tpu.matmul %94, %93, %cst_40 {dimension_numbers = #tpu.dot_dimension_numbers<[1], [1], [0], [0], [0, 0, 1, 0], [], []>} : vector<16x8xf32>, vector<16x8xf32>, vector<16x16xf32> -> vector<16x16xf32>
    %cst_41 = arith.constant 0.176776692 : f32
    %97 = vector.broadcast %cst_41 : f32 to vector<16x16xf32>
    %98 = arith.mulf %96, %97 : vector<16x16xf32>
    %99 = arith.addf %98, %10 : vector<16x16xf32>
    %100 = math.exp %99 : vector<16x16xf32>
    %cst_42 = arith.constant dense<0.000000e+00> : vector<16xf32>
    %101 = vector.multi_reduction <add>, %100, %cst_42 [1] : vector<16x16xf32> to vector<16xf32>
    %102 = vector.shape_cast %101 : vector<16xf32> to vector<16x1xf32>
    %103 = tpu.reciprocal %102 {approx = true} : vector<16x1xf32> -> vector<16x1xf32>
    %104 = vector.broadcast %103 : vector<16x1xf32> to vector<16x16xf32>
    %105 = arith.mulf %100, %104 : vector<16x16xf32>
    %cst_43 = arith.constant dense<0.000000e+00> : vector<16x8xf32>
    %106 = tpu.matmul %105, %95, %cst_43 {dimension_numbers = #tpu.dot_dimension_numbers<[1], [0], [0], [1], [0, 0, 1, 1], [], []>} : vector<16x16xf32>, vector<16x8xf32>, vector<16x8xf32> -> vector<16x8xf32>
    %107 = tpu.concatenate %64, %78, %92, %106 in 1 : vector<16x8xf32>, vector<16x8xf32>, vector<16x8xf32>, vector<16x8xf32> -> vector<16x32xf32>
    %cst_44 = arith.constant dense<0.000000e+00> : vector<16x32xf32>
    %108 = tpu.matmul %107, %23, %cst_44 {dimension_numbers = #tpu.dot_dimension_numbers<[1], [0], [0], [1], [0, 0, 1, 1], [], []>} : vector<16x32xf32>, vector<32x32xf32>, vector<16x32xf32> -> vector<16x32xf32>
    %109 = vector.broadcast %15 : vector<1x32xf32> to vector<16x32xf32>
    %110 = arith.addf %108, %109 : vector<16x32xf32>
    %111 = arith.addf %9, %110 : vector<16x32xf32>
    %cst_45 = arith.constant dense<0.000000e+00> : vector<16xf32>
    %112 = vector.multi_reduction <add>, %111, %cst_45 [1] : vector<16x32xf32> to vector<16xf32>
    %113 = vector.shape_cast %112 : vector<16xf32> to vector<16x1xf32>
    %cst_46 = arith.constant 3.200000e+01 : f32
    %114 = vector.broadcast %cst_46 : f32 to vector<16x1xf32>
    %115 = arith.divf %113, %114 : vector<16x1xf32>
    %116 = vector.broadcast %115 : vector<16x1xf32> to vector<16x32xf32>
    %117 = arith.subf %111, %116 : vector<16x32xf32>
    %118 = vector.broadcast %115 : vector<16x1xf32> to vector<16x32xf32>
    %119 = arith.subf %111, %118 : vector<16x32xf32>
    %120 = arith.mulf %117, %119 : vector<16x32xf32>
    %cst_47 = arith.constant dense<0.000000e+00> : vector<16xf32>
    %121 = vector.multi_reduction <add>, %120, %cst_47 [1] : vector<16x32xf32> to vector<16xf32>
    %122 = vector.shape_cast %121 : vector<16xf32> to vector<16x1xf32>
    %cst_48 = arith.constant 3.200000e+01 : f32
    %123 = vector.broadcast %cst_48 : f32 to vector<16x1xf32>
    %124 = arith.divf %122, %123 : vector<16x1xf32>
    %125 = vector.broadcast %115 : vector<16x1xf32> to vector<16x32xf32>
    %126 = arith.subf %111, %125 : vector<16x32xf32>
    %cst_49 = arith.constant 9.99999974E-6 : f32
    %127 = vector.broadcast %cst_49 : f32 to vector<16x1xf32>
    %128 = arith.addf %124, %127 : vector<16x1xf32>
    %129 = math.rsqrt %128 : vector<16x1xf32>
    %130 = vector.broadcast %129 : vector<16x1xf32> to vector<16x32xf32>
    %131 = arith.mulf %126, %130 : vector<16x32xf32>
    %132 = vector.broadcast %13 : vector<1x32xf32> to vector<16x32xf32>
    %133 = arith.mulf %131, %132 : vector<16x32xf32>
    %134 = vector.broadcast %14 : vector<1x32xf32> to vector<16x32xf32>
    %135 = arith.addf %133, %134 : vector<16x32xf32>
    %cst_50 = arith.constant dense<0.000000e+00> : vector<16x128xf32>
    %136 = tpu.matmul %135, %21, %cst_50 {dimension_numbers = #tpu.dot_dimension_numbers<[1], [0], [0], [1], [0, 0, 1, 1], [], []>} : vector<16x32xf32>, vector<32x128xf32>, vector<16x128xf32> -> vector<16x128xf32>
    %137 = vector.broadcast %17 : vector<1x128xf32> to vector<16x128xf32>
    %138 = arith.addf %136, %137 : vector<16x128xf32>
    %cst_51 = arith.constant 0.000000e+00 : f32
    %139 = vector.broadcast %cst_51 : f32 to vector<16x128xf32>
    %140 = arith.maximumf %138, %139 : vector<16x128xf32>
    %cst_52 = arith.constant dense<0.000000e+00> : vector<16x32xf32>
    %141 = tpu.matmul %140, %25, %cst_52 {dimension_numbers = #tpu.dot_dimension_numbers<[1], [0], [0], [1], [0, 0, 1, 1], [], []>} : vector<16x128xf32>, vector<128x32xf32>, vector<16x32xf32> -> vector<16x32xf32>
    %142 = arith.addf %111, %141 : vector<16x32xf32>
    %143 = vector.broadcast %16 : vector<1x32xf32> to vector<16x32xf32>
    %144 = arith.addf %142, %143 : vector<16x32xf32>
    %c8 = arith.constant 8 : index
    %c0_53 = arith.constant 0 : index
    %145 = vector.load %arg3[%c8, %c0_53] : memref<224x128xf32, #tpu.memory_space<vmem>>, vector<1x32xf32>
    %c9 = arith.constant 9 : index
    %c0_54 = arith.constant 0 : index
    %146 = vector.load %arg3[%c9, %c0_54] : memref<224x128xf32, #tpu.memory_space<vmem>>, vector<1x32xf32>
    %c10 = arith.constant 10 : index
    %c0_55 = arith.constant 0 : index
    %147 = vector.load %arg3[%c10, %c0_55] : memref<224x128xf32, #tpu.memory_space<vmem>>, vector<1x32xf32>
    %c11 = arith.constant 11 : index
    %c0_56 = arith.constant 0 : index
    %148 = vector.load %arg3[%c11, %c0_56] : memref<224x128xf32, #tpu.memory_space<vmem>>, vector<1x32xf32>
    %c12 = arith.constant 12 : index
    %c0_57 = arith.constant 0 : index
    %149 = vector.load %arg3[%c12, %c0_57] : memref<224x128xf32, #tpu.memory_space<vmem>>, vector<1x32xf32>
    %c13 = arith.constant 13 : index
    %c0_58 = arith.constant 0 : index
    %150 = vector.load %arg3[%c13, %c0_58] : memref<224x128xf32, #tpu.memory_space<vmem>>, vector<1x32xf32>
    %c14 = arith.constant 14 : index
    %c0_59 = arith.constant 0 : index
    %151 = vector.load %arg3[%c14, %c0_59] : memref<224x128xf32, #tpu.memory_space<vmem>>, vector<1x128xf32>
    %c1_60 = arith.constant 1 : index
    %c0_61 = arith.constant 0 : index
    %c0_62 = arith.constant 0 : index
    %152 = vector.load %arg1[%c1_60, %c0_61, %c0_62] : memref<3x32x384xf32, #tpu.memory_space<vmem>>, vector<1x32x96xf32>
    %153 = vector.shape_cast %152 : vector<1x32x96xf32> to vector<32x96xf32>
    %c1_63 = arith.constant 1 : index
    %c0_64 = arith.constant 0 : index
    %c128_65 = arith.constant 128 : index
    %154 = vector.load %arg1[%c1_63, %c0_64, %c128_65] : memref<3x32x384xf32, #tpu.memory_space<vmem>>, vector<1x32x128xf32>
    %155 = vector.shape_cast %154 : vector<1x32x128xf32> to vector<32x128xf32>
    %c1_66 = arith.constant 1 : index
    %c0_67 = arith.constant 0 : index
    %c256_68 = arith.constant 256 : index
    %156 = vector.load %arg1[%c1_66, %c0_67, %c256_68] : memref<3x32x384xf32, #tpu.memory_space<vmem>>, vector<1x32x32xf32>
    %157 = vector.shape_cast %156 : vector<1x32x32xf32> to vector<32x32xf32>
    %c1_69 = arith.constant 1 : index
    %c0_70 = arith.constant 0 : index
    %c0_71 = arith.constant 0 : index
    %158 = vector.load %arg2[%c1_69, %c0_70, %c0_71] : memref<3x128x32xf32, #tpu.memory_space<vmem>>, vector<1x128x32xf32>
    %159 = vector.shape_cast %158 : vector<1x128x32xf32> to vector<128x32xf32>
    %cst_72 = arith.constant dense<0.000000e+00> : vector<16xf32>
    %160 = vector.multi_reduction <add>, %144, %cst_72 [1] : vector<16x32xf32> to vector<16xf32>
    %161 = vector.shape_cast %160 : vector<16xf32> to vector<16x1xf32>
    %cst_73 = arith.constant 3.200000e+01 : f32
    %162 = vector.broadcast %cst_73 : f32 to vector<16x1xf32>
    %163 = arith.divf %161, %162 : vector<16x1xf32>
    %164 = vector.broadcast %163 : vector<16x1xf32> to vector<16x32xf32>
    %165 = arith.subf %144, %164 : vector<16x32xf32>
    %166 = vector.broadcast %163 : vector<16x1xf32> to vector<16x32xf32>
    %167 = arith.subf %144, %166 : vector<16x32xf32>
    %168 = arith.mulf %165, %167 : vector<16x32xf32>
    %cst_74 = arith.constant dense<0.000000e+00> : vector<16xf32>
    %169 = vector.multi_reduction <add>, %168, %cst_74 [1] : vector<16x32xf32> to vector<16xf32>
    %170 = vector.shape_cast %169 : vector<16xf32> to vector<16x1xf32>
    %cst_75 = arith.constant 3.200000e+01 : f32
    %171 = vector.broadcast %cst_75 : f32 to vector<16x1xf32>
    %172 = arith.divf %170, %171 : vector<16x1xf32>
    %173 = vector.broadcast %163 : vector<16x1xf32> to vector<16x32xf32>
    %174 = arith.subf %144, %173 : vector<16x32xf32>
    %cst_76 = arith.constant 9.99999974E-6 : f32
    %175 = vector.broadcast %cst_76 : f32 to vector<16x1xf32>
    %176 = arith.addf %172, %175 : vector<16x1xf32>
    %177 = math.rsqrt %176 : vector<16x1xf32>
    %178 = vector.broadcast %177 : vector<16x1xf32> to vector<16x32xf32>
    %179 = arith.mulf %174, %178 : vector<16x32xf32>
    %180 = vector.broadcast %145 : vector<1x32xf32> to vector<16x32xf32>
    %181 = arith.mulf %179, %180 : vector<16x32xf32>
    %182 = vector.broadcast %146 : vector<1x32xf32> to vector<16x32xf32>
    %183 = arith.addf %181, %182 : vector<16x32xf32>
    %cst_77 = arith.constant dense<0.000000e+00> : vector<16x96xf32>
    %184 = tpu.matmul %183, %153, %cst_77 {dimension_numbers = #tpu.dot_dimension_numbers<[1], [0], [0], [1], [0, 0, 1, 1], [], []>} : vector<16x32xf32>, vector<32x96xf32>, vector<16x96xf32> -> vector<16x96xf32>
    %185 = vector.extract_strided_slice %184 {offsets = [0, 0], sizes = [16, 8], strides = [1, 1]} : vector<16x96xf32> to vector<16x8xf32>
    %186 = vector.extract_strided_slice %184 {offsets = [0, 32], sizes = [16, 8], strides = [1, 1]} : vector<16x96xf32> to vector<16x8xf32>
    %187 = vector.extract_strided_slice %184 {offsets = [0, 64], sizes = [16, 8], strides = [1, 1]} : vector<16x96xf32> to vector<16x8xf32>
    %cst_78 = arith.constant dense<0.000000e+00> : vector<16x16xf32>
    %188 = tpu.matmul %186, %185, %cst_78 {dimension_numbers = #tpu.dot_dimension_numbers<[1], [1], [0], [0], [0, 0, 1, 0], [], []>} : vector<16x8xf32>, vector<16x8xf32>, vector<16x16xf32> -> vector<16x16xf32>
    %cst_79 = arith.constant 0.176776692 : f32
    %189 = vector.broadcast %cst_79 : f32 to vector<16x16xf32>
    %190 = arith.mulf %188, %189 : vector<16x16xf32>
    %191 = arith.addf %190, %10 : vector<16x16xf32>
    %192 = math.exp %191 : vector<16x16xf32>
    %cst_80 = arith.constant dense<0.000000e+00> : vector<16xf32>
    %193 = vector.multi_reduction <add>, %192, %cst_80 [1] : vector<16x16xf32> to vector<16xf32>
    %194 = vector.shape_cast %193 : vector<16xf32> to vector<16x1xf32>
    %195 = tpu.reciprocal %194 {approx = true} : vector<16x1xf32> -> vector<16x1xf32>
    %196 = vector.broadcast %195 : vector<16x1xf32> to vector<16x16xf32>
    %197 = arith.mulf %192, %196 : vector<16x16xf32>
    %cst_81 = arith.constant dense<0.000000e+00> : vector<16x8xf32>
    %198 = tpu.matmul %197, %187, %cst_81 {dimension_numbers = #tpu.dot_dimension_numbers<[1], [0], [0], [1], [0, 0, 1, 1], [], []>} : vector<16x16xf32>, vector<16x8xf32>, vector<16x8xf32> -> vector<16x8xf32>
    %199 = vector.extract_strided_slice %184 {offsets = [0, 8], sizes = [16, 8], strides = [1, 1]} : vector<16x96xf32> to vector<16x8xf32>
    %200 = vector.extract_strided_slice %184 {offsets = [0, 40], sizes = [16, 8], strides = [1, 1]} : vector<16x96xf32> to vector<16x8xf32>
    %201 = vector.extract_strided_slice %184 {offsets = [0, 72], sizes = [16, 8], strides = [1, 1]} : vector<16x96xf32> to vector<16x8xf32>
    %cst_82 = arith.constant dense<0.000000e+00> : vector<16x16xf32>
    %202 = tpu.matmul %200, %199, %cst_82 {dimension_numbers = #tpu.dot_dimension_numbers<[1], [1], [0], [0], [0, 0, 1, 0], [], []>} : vector<16x8xf32>, vector<16x8xf32>, vector<16x16xf32> -> vector<16x16xf32>
    %cst_83 = arith.constant 0.176776692 : f32
    %203 = vector.broadcast %cst_83 : f32 to vector<16x16xf32>
    %204 = arith.mulf %202, %203 : vector<16x16xf32>
    %205 = arith.addf %204, %10 : vector<16x16xf32>
    %206 = math.exp %205 : vector<16x16xf32>
    %cst_84 = arith.constant dense<0.000000e+00> : vector<16xf32>
    %207 = vector.multi_reduction <add>, %206, %cst_84 [1] : vector<16x16xf32> to vector<16xf32>
    %208 = vector.shape_cast %207 : vector<16xf32> to vector<16x1xf32>
    %209 = tpu.reciprocal %208 {approx = true} : vector<16x1xf32> -> vector<16x1xf32>
    %210 = vector.broadcast %209 : vector<16x1xf32> to vector<16x16xf32>
    %211 = arith.mulf %206, %210 : vector<16x16xf32>
    %cst_85 = arith.constant dense<0.000000e+00> : vector<16x8xf32>
    %212 = tpu.matmul %211, %201, %cst_85 {dimension_numbers = #tpu.dot_dimension_numbers<[1], [0], [0], [1], [0, 0, 1, 1], [], []>} : vector<16x16xf32>, vector<16x8xf32>, vector<16x8xf32> -> vector<16x8xf32>
    %213 = vector.extract_strided_slice %184 {offsets = [0, 16], sizes = [16, 8], strides = [1, 1]} : vector<16x96xf32> to vector<16x8xf32>
    %214 = vector.extract_strided_slice %184 {offsets = [0, 48], sizes = [16, 8], strides = [1, 1]} : vector<16x96xf32> to vector<16x8xf32>
    %215 = vector.extract_strided_slice %184 {offsets = [0, 80], sizes = [16, 8], strides = [1, 1]} : vector<16x96xf32> to vector<16x8xf32>
    %cst_86 = arith.constant dense<0.000000e+00> : vector<16x16xf32>
    %216 = tpu.matmul %214, %213, %cst_86 {dimension_numbers = #tpu.dot_dimension_numbers<[1], [1], [0], [0], [0, 0, 1, 0], [], []>} : vector<16x8xf32>, vector<16x8xf32>, vector<16x16xf32> -> vector<16x16xf32>
    %cst_87 = arith.constant 0.176776692 : f32
    %217 = vector.broadcast %cst_87 : f32 to vector<16x16xf32>
    %218 = arith.mulf %216, %217 : vector<16x16xf32>
    %219 = arith.addf %218, %10 : vector<16x16xf32>
    %220 = math.exp %219 : vector<16x16xf32>
    %cst_88 = arith.constant dense<0.000000e+00> : vector<16xf32>
    %221 = vector.multi_reduction <add>, %220, %cst_88 [1] : vector<16x16xf32> to vector<16xf32>
    %222 = vector.shape_cast %221 : vector<16xf32> to vector<16x1xf32>
    %223 = tpu.reciprocal %222 {approx = true} : vector<16x1xf32> -> vector<16x1xf32>
    %224 = vector.broadcast %223 : vector<16x1xf32> to vector<16x16xf32>
    %225 = arith.mulf %220, %224 : vector<16x16xf32>
    %cst_89 = arith.constant dense<0.000000e+00> : vector<16x8xf32>
    %226 = tpu.matmul %225, %215, %cst_89 {dimension_numbers = #tpu.dot_dimension_numbers<[1], [0], [0], [1], [0, 0, 1, 1], [], []>} : vector<16x16xf32>, vector<16x8xf32>, vector<16x8xf32> -> vector<16x8xf32>
    %227 = vector.extract_strided_slice %184 {offsets = [0, 24], sizes = [16, 8], strides = [1, 1]} : vector<16x96xf32> to vector<16x8xf32>
    %228 = vector.extract_strided_slice %184 {offsets = [0, 56], sizes = [16, 8], strides = [1, 1]} : vector<16x96xf32> to vector<16x8xf32>
    %229 = vector.extract_strided_slice %184 {offsets = [0, 88], sizes = [16, 8], strides = [1, 1]} : vector<16x96xf32> to vector<16x8xf32>
    %cst_90 = arith.constant dense<0.000000e+00> : vector<16x16xf32>
    %230 = tpu.matmul %228, %227, %cst_90 {dimension_numbers = #tpu.dot_dimension_numbers<[1], [1], [0], [0], [0, 0, 1, 0], [], []>} : vector<16x8xf32>, vector<16x8xf32>, vector<16x16xf32> -> vector<16x16xf32>
    %cst_91 = arith.constant 0.176776692 : f32
    %231 = vector.broadcast %cst_91 : f32 to vector<16x16xf32>
    %232 = arith.mulf %230, %231 : vector<16x16xf32>
    %233 = arith.addf %232, %10 : vector<16x16xf32>
    %234 = math.exp %233 : vector<16x16xf32>
    %cst_92 = arith.constant dense<0.000000e+00> : vector<16xf32>
    %235 = vector.multi_reduction <add>, %234, %cst_92 [1] : vector<16x16xf32> to vector<16xf32>
    %236 = vector.shape_cast %235 : vector<16xf32> to vector<16x1xf32>
    %237 = tpu.reciprocal %236 {approx = true} : vector<16x1xf32> -> vector<16x1xf32>
    %238 = vector.broadcast %237 : vector<16x1xf32> to vector<16x16xf32>
    %239 = arith.mulf %234, %238 : vector<16x16xf32>
    %cst_93 = arith.constant dense<0.000000e+00> : vector<16x8xf32>
    %240 = tpu.matmul %239, %229, %cst_93 {dimension_numbers = #tpu.dot_dimension_numbers<[1], [0], [0], [1], [0, 0, 1, 1], [], []>} : vector<16x16xf32>, vector<16x8xf32>, vector<16x8xf32> -> vector<16x8xf32>
    %241 = tpu.concatenate %198, %212, %226, %240 in 1 : vector<16x8xf32>, vector<16x8xf32>, vector<16x8xf32>, vector<16x8xf32> -> vector<16x32xf32>
    %cst_94 = arith.constant dense<0.000000e+00> : vector<16x32xf32>
    %242 = tpu.matmul %241, %157, %cst_94 {dimension_numbers = #tpu.dot_dimension_numbers<[1], [0], [0], [1], [0, 0, 1, 1], [], []>} : vector<16x32xf32>, vector<32x32xf32>, vector<16x32xf32> -> vector<16x32xf32>
    %243 = vector.broadcast %149 : vector<1x32xf32> to vector<16x32xf32>
    %244 = arith.addf %242, %243 : vector<16x32xf32>
    %245 = arith.addf %144, %244 : vector<16x32xf32>
    %cst_95 = arith.constant dense<0.000000e+00> : vector<16xf32>
    %246 = vector.multi_reduction <add>, %245, %cst_95 [1] : vector<16x32xf32> to vector<16xf32>
    %247 = vector.shape_cast %246 : vector<16xf32> to vector<16x1xf32>
    %cst_96 = arith.constant 3.200000e+01 : f32
    %248 = vector.broadcast %cst_96 : f32 to vector<16x1xf32>
    %249 = arith.divf %247, %248 : vector<16x1xf32>
    %250 = vector.broadcast %249 : vector<16x1xf32> to vector<16x32xf32>
    %251 = arith.subf %245, %250 : vector<16x32xf32>
    %252 = vector.broadcast %249 : vector<16x1xf32> to vector<16x32xf32>
    %253 = arith.subf %245, %252 : vector<16x32xf32>
    %254 = arith.mulf %251, %253 : vector<16x32xf32>
    %cst_97 = arith.constant dense<0.000000e+00> : vector<16xf32>
    %255 = vector.multi_reduction <add>, %254, %cst_97 [1] : vector<16x32xf32> to vector<16xf32>
    %256 = vector.shape_cast %255 : vector<16xf32> to vector<16x1xf32>
    %cst_98 = arith.constant 3.200000e+01 : f32
    %257 = vector.broadcast %cst_98 : f32 to vector<16x1xf32>
    %258 = arith.divf %256, %257 : vector<16x1xf32>
    %259 = vector.broadcast %249 : vector<16x1xf32> to vector<16x32xf32>
    %260 = arith.subf %245, %259 : vector<16x32xf32>
    %cst_99 = arith.constant 9.99999974E-6 : f32
    %261 = vector.broadcast %cst_99 : f32 to vector<16x1xf32>
    %262 = arith.addf %258, %261 : vector<16x1xf32>
    %263 = math.rsqrt %262 : vector<16x1xf32>
    %264 = vector.broadcast %263 : vector<16x1xf32> to vector<16x32xf32>
    %265 = arith.mulf %260, %264 : vector<16x32xf32>
    %266 = vector.broadcast %147 : vector<1x32xf32> to vector<16x32xf32>
    %267 = arith.mulf %265, %266 : vector<16x32xf32>
    %268 = vector.broadcast %148 : vector<1x32xf32> to vector<16x32xf32>
    %269 = arith.addf %267, %268 : vector<16x32xf32>
    %cst_100 = arith.constant dense<0.000000e+00> : vector<16x128xf32>
    %270 = tpu.matmul %269, %155, %cst_100 {dimension_numbers = #tpu.dot_dimension_numbers<[1], [0], [0], [1], [0, 0, 1, 1], [], []>} : vector<16x32xf32>, vector<32x128xf32>, vector<16x128xf32> -> vector<16x128xf32>
    %271 = vector.broadcast %151 : vector<1x128xf32> to vector<16x128xf32>
    %272 = arith.addf %270, %271 : vector<16x128xf32>
    %cst_101 = arith.constant 0.000000e+00 : f32
    %273 = vector.broadcast %cst_101 : f32 to vector<16x128xf32>
    %274 = arith.maximumf %272, %273 : vector<16x128xf32>
    %cst_102 = arith.constant dense<0.000000e+00> : vector<16x32xf32>
    %275 = tpu.matmul %274, %159, %cst_102 {dimension_numbers = #tpu.dot_dimension_numbers<[1], [0], [0], [1], [0, 0, 1, 1], [], []>} : vector<16x128xf32>, vector<128x32xf32>, vector<16x32xf32> -> vector<16x32xf32>
    %276 = arith.addf %245, %275 : vector<16x32xf32>
    %277 = vector.broadcast %150 : vector<1x32xf32> to vector<16x32xf32>
    %278 = arith.addf %276, %277 : vector<16x32xf32>
    %c16 = arith.constant 16 : index
    %c0_103 = arith.constant 0 : index
    %279 = vector.load %arg3[%c16, %c0_103] : memref<224x128xf32, #tpu.memory_space<vmem>>, vector<1x32xf32>
    %c17 = arith.constant 17 : index
    %c0_104 = arith.constant 0 : index
    %280 = vector.load %arg3[%c17, %c0_104] : memref<224x128xf32, #tpu.memory_space<vmem>>, vector<1x32xf32>
    %c18 = arith.constant 18 : index
    %c0_105 = arith.constant 0 : index
    %281 = vector.load %arg3[%c18, %c0_105] : memref<224x128xf32, #tpu.memory_space<vmem>>, vector<1x32xf32>
    %c19 = arith.constant 19 : index
    %c0_106 = arith.constant 0 : index
    %282 = vector.load %arg3[%c19, %c0_106] : memref<224x128xf32, #tpu.memory_space<vmem>>, vector<1x32xf32>
    %c20 = arith.constant 20 : index
    %c0_107 = arith.constant 0 : index
    %283 = vector.load %arg3[%c20, %c0_107] : memref<224x128xf32, #tpu.memory_space<vmem>>, vector<1x32xf32>
    %c21 = arith.constant 21 : index
    %c0_108 = arith.constant 0 : index
    %284 = vector.load %arg3[%c21, %c0_108] : memref<224x128xf32, #tpu.memory_space<vmem>>, vector<1x32xf32>
    %c22 = arith.constant 22 : index
    %c0_109 = arith.constant 0 : index
    %285 = vector.load %arg3[%c22, %c0_109] : memref<224x128xf32, #tpu.memory_space<vmem>>, vector<1x128xf32>
    %c2_110 = arith.constant 2 : index
    %c0_111 = arith.constant 0 : index
    %c0_112 = arith.constant 0 : index
    %286 = vector.load %arg1[%c2_110, %c0_111, %c0_112] : memref<3x32x384xf32, #tpu.memory_space<vmem>>, vector<1x32x96xf32>
    %287 = vector.shape_cast %286 : vector<1x32x96xf32> to vector<32x96xf32>
    %c2_113 = arith.constant 2 : index
    %c0_114 = arith.constant 0 : index
    %c128_115 = arith.constant 128 : index
    %288 = vector.load %arg1[%c2_113, %c0_114, %c128_115] : memref<3x32x384xf32, #tpu.memory_space<vmem>>, vector<1x32x128xf32>
    %289 = vector.shape_cast %288 : vector<1x32x128xf32> to vector<32x128xf32>
    %c2_116 = arith.constant 2 : index
    %c0_117 = arith.constant 0 : index
    %c256_118 = arith.constant 256 : index
    %290 = vector.load %arg1[%c2_116, %c0_117, %c256_118] : memref<3x32x384xf32, #tpu.memory_space<vmem>>, vector<1x32x32xf32>
    %291 = vector.shape_cast %290 : vector<1x32x32xf32> to vector<32x32xf32>
    %c2_119 = arith.constant 2 : index
    %c0_120 = arith.constant 0 : index
    %c0_121 = arith.constant 0 : index
    %292 = vector.load %arg2[%c2_119, %c0_120, %c0_121] : memref<3x128x32xf32, #tpu.memory_space<vmem>>, vector<1x128x32xf32>
    %293 = vector.shape_cast %292 : vector<1x128x32xf32> to vector<128x32xf32>
    %cst_122 = arith.constant dense<0.000000e+00> : vector<16xf32>
    %294 = vector.multi_reduction <add>, %278, %cst_122 [1] : vector<16x32xf32> to vector<16xf32>
    %295 = vector.shape_cast %294 : vector<16xf32> to vector<16x1xf32>
    %cst_123 = arith.constant 3.200000e+01 : f32
    %296 = vector.broadcast %cst_123 : f32 to vector<16x1xf32>
    %297 = arith.divf %295, %296 : vector<16x1xf32>
    %298 = vector.broadcast %297 : vector<16x1xf32> to vector<16x32xf32>
    %299 = arith.subf %278, %298 : vector<16x32xf32>
    %300 = vector.broadcast %297 : vector<16x1xf32> to vector<16x32xf32>
    %301 = arith.subf %278, %300 : vector<16x32xf32>
    %302 = arith.mulf %299, %301 : vector<16x32xf32>
    %cst_124 = arith.constant dense<0.000000e+00> : vector<16xf32>
    %303 = vector.multi_reduction <add>, %302, %cst_124 [1] : vector<16x32xf32> to vector<16xf32>
    %304 = vector.shape_cast %303 : vector<16xf32> to vector<16x1xf32>
    %cst_125 = arith.constant 3.200000e+01 : f32
    %305 = vector.broadcast %cst_125 : f32 to vector<16x1xf32>
    %306 = arith.divf %304, %305 : vector<16x1xf32>
    %307 = vector.broadcast %297 : vector<16x1xf32> to vector<16x32xf32>
    %308 = arith.subf %278, %307 : vector<16x32xf32>
    %cst_126 = arith.constant 9.99999974E-6 : f32
    %309 = vector.broadcast %cst_126 : f32 to vector<16x1xf32>
    %310 = arith.addf %306, %309 : vector<16x1xf32>
    %311 = math.rsqrt %310 : vector<16x1xf32>
    %312 = vector.broadcast %311 : vector<16x1xf32> to vector<16x32xf32>
    %313 = arith.mulf %308, %312 : vector<16x32xf32>
    %314 = vector.broadcast %279 : vector<1x32xf32> to vector<16x32xf32>
    %315 = arith.mulf %313, %314 : vector<16x32xf32>
    %316 = vector.broadcast %280 : vector<1x32xf32> to vector<16x32xf32>
    %317 = arith.addf %315, %316 : vector<16x32xf32>
    %cst_127 = arith.constant dense<0.000000e+00> : vector<16x96xf32>
    %318 = tpu.matmul %317, %287, %cst_127 {dimension_numbers = #tpu.dot_dimension_numbers<[1], [0], [0], [1], [0, 0, 1, 1], [], []>} : vector<16x32xf32>, vector<32x96xf32>, vector<16x96xf32> -> vector<16x96xf32>
    %319 = vector.extract_strided_slice %318 {offsets = [0, 0], sizes = [16, 8], strides = [1, 1]} : vector<16x96xf32> to vector<16x8xf32>
    %320 = vector.extract_strided_slice %318 {offsets = [0, 32], sizes = [16, 8], strides = [1, 1]} : vector<16x96xf32> to vector<16x8xf32>
    %321 = vector.extract_strided_slice %318 {offsets = [0, 64], sizes = [16, 8], strides = [1, 1]} : vector<16x96xf32> to vector<16x8xf32>
    %cst_128 = arith.constant dense<0.000000e+00> : vector<16x16xf32>
    %322 = tpu.matmul %320, %319, %cst_128 {dimension_numbers = #tpu.dot_dimension_numbers<[1], [1], [0], [0], [0, 0, 1, 0], [], []>} : vector<16x8xf32>, vector<16x8xf32>, vector<16x16xf32> -> vector<16x16xf32>
    %cst_129 = arith.constant 0.176776692 : f32
    %323 = vector.broadcast %cst_129 : f32 to vector<16x16xf32>
    %324 = arith.mulf %322, %323 : vector<16x16xf32>
    %325 = arith.addf %324, %10 : vector<16x16xf32>
    %326 = math.exp %325 : vector<16x16xf32>
    %cst_130 = arith.constant dense<0.000000e+00> : vector<16xf32>
    %327 = vector.multi_reduction <add>, %326, %cst_130 [1] : vector<16x16xf32> to vector<16xf32>
    %328 = vector.shape_cast %327 : vector<16xf32> to vector<16x1xf32>
    %329 = tpu.reciprocal %328 {approx = true} : vector<16x1xf32> -> vector<16x1xf32>
    %330 = vector.broadcast %329 : vector<16x1xf32> to vector<16x16xf32>
    %331 = arith.mulf %326, %330 : vector<16x16xf32>
    %cst_131 = arith.constant dense<0.000000e+00> : vector<16x8xf32>
    %332 = tpu.matmul %331, %321, %cst_131 {dimension_numbers = #tpu.dot_dimension_numbers<[1], [0], [0], [1], [0, 0, 1, 1], [], []>} : vector<16x16xf32>, vector<16x8xf32>, vector<16x8xf32> -> vector<16x8xf32>
    %333 = vector.extract_strided_slice %318 {offsets = [0, 8], sizes = [16, 8], strides = [1, 1]} : vector<16x96xf32> to vector<16x8xf32>
    %334 = vector.extract_strided_slice %318 {offsets = [0, 40], sizes = [16, 8], strides = [1, 1]} : vector<16x96xf32> to vector<16x8xf32>
    %335 = vector.extract_strided_slice %318 {offsets = [0, 72], sizes = [16, 8], strides = [1, 1]} : vector<16x96xf32> to vector<16x8xf32>
    %cst_132 = arith.constant dense<0.000000e+00> : vector<16x16xf32>
    %336 = tpu.matmul %334, %333, %cst_132 {dimension_numbers = #tpu.dot_dimension_numbers<[1], [1], [0], [0], [0, 0, 1, 0], [], []>} : vector<16x8xf32>, vector<16x8xf32>, vector<16x16xf32> -> vector<16x16xf32>
    %cst_133 = arith.constant 0.176776692 : f32
    %337 = vector.broadcast %cst_133 : f32 to vector<16x16xf32>
    %338 = arith.mulf %336, %337 : vector<16x16xf32>
    %339 = arith.addf %338, %10 : vector<16x16xf32>
    %340 = math.exp %339 : vector<16x16xf32>
    %cst_134 = arith.constant dense<0.000000e+00> : vector<16xf32>
    %341 = vector.multi_reduction <add>, %340, %cst_134 [1] : vector<16x16xf32> to vector<16xf32>
    %342 = vector.shape_cast %341 : vector<16xf32> to vector<16x1xf32>
    %343 = tpu.reciprocal %342 {approx = true} : vector<16x1xf32> -> vector<16x1xf32>
    %344 = vector.broadcast %343 : vector<16x1xf32> to vector<16x16xf32>
    %345 = arith.mulf %340, %344 : vector<16x16xf32>
    %cst_135 = arith.constant dense<0.000000e+00> : vector<16x8xf32>
    %346 = tpu.matmul %345, %335, %cst_135 {dimension_numbers = #tpu.dot_dimension_numbers<[1], [0], [0], [1], [0, 0, 1, 1], [], []>} : vector<16x16xf32>, vector<16x8xf32>, vector<16x8xf32> -> vector<16x8xf32>
    %347 = vector.extract_strided_slice %318 {offsets = [0, 16], sizes = [16, 8], strides = [1, 1]} : vector<16x96xf32> to vector<16x8xf32>
    %348 = vector.extract_strided_slice %318 {offsets = [0, 48], sizes = [16, 8], strides = [1, 1]} : vector<16x96xf32> to vector<16x8xf32>
    %349 = vector.extract_strided_slice %318 {offsets = [0, 80], sizes = [16, 8], strides = [1, 1]} : vector<16x96xf32> to vector<16x8xf32>
    %cst_136 = arith.constant dense<0.000000e+00> : vector<16x16xf32>
    %350 = tpu.matmul %348, %347, %cst_136 {dimension_numbers = #tpu.dot_dimension_numbers<[1], [1], [0], [0], [0, 0, 1, 0], [], []>} : vector<16x8xf32>, vector<16x8xf32>, vector<16x16xf32> -> vector<16x16xf32>
    %cst_137 = arith.constant 0.176776692 : f32
    %351 = vector.broadcast %cst_137 : f32 to vector<16x16xf32>
    %352 = arith.mulf %350, %351 : vector<16x16xf32>
    %353 = arith.addf %352, %10 : vector<16x16xf32>
    %354 = math.exp %353 : vector<16x16xf32>
    %cst_138 = arith.constant dense<0.000000e+00> : vector<16xf32>
    %355 = vector.multi_reduction <add>, %354, %cst_138 [1] : vector<16x16xf32> to vector<16xf32>
    %356 = vector.shape_cast %355 : vector<16xf32> to vector<16x1xf32>
    %357 = tpu.reciprocal %356 {approx = true} : vector<16x1xf32> -> vector<16x1xf32>
    %358 = vector.broadcast %357 : vector<16x1xf32> to vector<16x16xf32>
    %359 = arith.mulf %354, %358 : vector<16x16xf32>
    %cst_139 = arith.constant dense<0.000000e+00> : vector<16x8xf32>
    %360 = tpu.matmul %359, %349, %cst_139 {dimension_numbers = #tpu.dot_dimension_numbers<[1], [0], [0], [1], [0, 0, 1, 1], [], []>} : vector<16x16xf32>, vector<16x8xf32>, vector<16x8xf32> -> vector<16x8xf32>
    %361 = vector.extract_strided_slice %318 {offsets = [0, 24], sizes = [16, 8], strides = [1, 1]} : vector<16x96xf32> to vector<16x8xf32>
    %362 = vector.extract_strided_slice %318 {offsets = [0, 56], sizes = [16, 8], strides = [1, 1]} : vector<16x96xf32> to vector<16x8xf32>
    %363 = vector.extract_strided_slice %318 {offsets = [0, 88], sizes = [16, 8], strides = [1, 1]} : vector<16x96xf32> to vector<16x8xf32>
    %cst_140 = arith.constant dense<0.000000e+00> : vector<16x16xf32>
    %364 = tpu.matmul %362, %361, %cst_140 {dimension_numbers = #tpu.dot_dimension_numbers<[1], [1], [0], [0], [0, 0, 1, 0], [], []>} : vector<16x8xf32>, vector<16x8xf32>, vector<16x16xf32> -> vector<16x16xf32>
    %cst_141 = arith.constant 0.176776692 : f32
    %365 = vector.broadcast %cst_141 : f32 to vector<16x16xf32>
    %366 = arith.mulf %364, %365 : vector<16x16xf32>
    %367 = arith.addf %366, %10 : vector<16x16xf32>
    %368 = math.exp %367 : vector<16x16xf32>
    %cst_142 = arith.constant dense<0.000000e+00> : vector<16xf32>
    %369 = vector.multi_reduction <add>, %368, %cst_142 [1] : vector<16x16xf32> to vector<16xf32>
    %370 = vector.shape_cast %369 : vector<16xf32> to vector<16x1xf32>
    %371 = tpu.reciprocal %370 {approx = true} : vector<16x1xf32> -> vector<16x1xf32>
    %372 = vector.broadcast %371 : vector<16x1xf32> to vector<16x16xf32>
    %373 = arith.mulf %368, %372 : vector<16x16xf32>
    %cst_143 = arith.constant dense<0.000000e+00> : vector<16x8xf32>
    %374 = tpu.matmul %373, %363, %cst_143 {dimension_numbers = #tpu.dot_dimension_numbers<[1], [0], [0], [1], [0, 0, 1, 1], [], []>} : vector<16x16xf32>, vector<16x8xf32>, vector<16x8xf32> -> vector<16x8xf32>
    %375 = tpu.concatenate %332, %346, %360, %374 in 1 : vector<16x8xf32>, vector<16x8xf32>, vector<16x8xf32>, vector<16x8xf32> -> vector<16x32xf32>
    %cst_144 = arith.constant dense<0.000000e+00> : vector<16x32xf32>
    %376 = tpu.matmul %375, %291, %cst_144 {dimension_numbers = #tpu.dot_dimension_numbers<[1], [0], [0], [1], [0, 0, 1, 1], [], []>} : vector<16x32xf32>, vector<32x32xf32>, vector<16x32xf32> -> vector<16x32xf32>
    %377 = vector.broadcast %283 : vector<1x32xf32> to vector<16x32xf32>
    %378 = arith.addf %376, %377 : vector<16x32xf32>
    %379 = arith.addf %278, %378 : vector<16x32xf32>
    %cst_145 = arith.constant dense<0.000000e+00> : vector<16xf32>
    %380 = vector.multi_reduction <add>, %379, %cst_145 [1] : vector<16x32xf32> to vector<16xf32>
    %381 = vector.shape_cast %380 : vector<16xf32> to vector<16x1xf32>
    %cst_146 = arith.constant 3.200000e+01 : f32
    %382 = vector.broadcast %cst_146 : f32 to vector<16x1xf32>
    %383 = arith.divf %381, %382 : vector<16x1xf32>
    %384 = vector.broadcast %383 : vector<16x1xf32> to vector<16x32xf32>
    %385 = arith.subf %379, %384 : vector<16x32xf32>
    %386 = vector.broadcast %383 : vector<16x1xf32> to vector<16x32xf32>
    %387 = arith.subf %379, %386 : vector<16x32xf32>
    %388 = arith.mulf %385, %387 : vector<16x32xf32>
    %cst_147 = arith.constant dense<0.000000e+00> : vector<16xf32>
    %389 = vector.multi_reduction <add>, %388, %cst_147 [1] : vector<16x32xf32> to vector<16xf32>
    %390 = vector.shape_cast %389 : vector<16xf32> to vector<16x1xf32>
    %cst_148 = arith.constant 3.200000e+01 : f32
    %391 = vector.broadcast %cst_148 : f32 to vector<16x1xf32>
    %392 = arith.divf %390, %391 : vector<16x1xf32>
    %393 = vector.broadcast %383 : vector<16x1xf32> to vector<16x32xf32>
    %394 = arith.subf %379, %393 : vector<16x32xf32>
    %cst_149 = arith.constant 9.99999974E-6 : f32
    %395 = vector.broadcast %cst_149 : f32 to vector<16x1xf32>
    %396 = arith.addf %392, %395 : vector<16x1xf32>
    %397 = math.rsqrt %396 : vector<16x1xf32>
    %398 = vector.broadcast %397 : vector<16x1xf32> to vector<16x32xf32>
    %399 = arith.mulf %394, %398 : vector<16x32xf32>
    %400 = vector.broadcast %281 : vector<1x32xf32> to vector<16x32xf32>
    %401 = arith.mulf %399, %400 : vector<16x32xf32>
    %402 = vector.broadcast %282 : vector<1x32xf32> to vector<16x32xf32>
    %403 = arith.addf %401, %402 : vector<16x32xf32>
    %cst_150 = arith.constant dense<0.000000e+00> : vector<16x128xf32>
    %404 = tpu.matmul %403, %289, %cst_150 {dimension_numbers = #tpu.dot_dimension_numbers<[1], [0], [0], [1], [0, 0, 1, 1], [], []>} : vector<16x32xf32>, vector<32x128xf32>, vector<16x128xf32> -> vector<16x128xf32>
    %405 = vector.broadcast %285 : vector<1x128xf32> to vector<16x128xf32>
    %406 = arith.addf %404, %405 : vector<16x128xf32>
    %cst_151 = arith.constant 0.000000e+00 : f32
    %407 = vector.broadcast %cst_151 : f32 to vector<16x128xf32>
    %408 = arith.maximumf %406, %407 : vector<16x128xf32>
    %cst_152 = arith.constant dense<0.000000e+00> : vector<16x32xf32>
    %409 = tpu.matmul %408, %293, %cst_152 {dimension_numbers = #tpu.dot_dimension_numbers<[1], [0], [0], [1], [0, 0, 1, 1], [], []>} : vector<16x128xf32>, vector<128x32xf32>, vector<16x32xf32> -> vector<16x32xf32>
    %410 = arith.addf %379, %409 : vector<16x32xf32>
    %411 = vector.broadcast %284 : vector<1x32xf32> to vector<16x32xf32>
    %412 = arith.addf %410, %411 : vector<16x32xf32>
    %c24 = arith.constant 24 : index
    %c0_153 = arith.constant 0 : index
    %413 = vector.load %arg3[%c24, %c0_153] : memref<224x128xf32, #tpu.memory_space<vmem>>, vector<1x32xf32>
    %c25 = arith.constant 25 : index
    %c0_154 = arith.constant 0 : index
    %414 = vector.load %arg3[%c25, %c0_154] : memref<224x128xf32, #tpu.memory_space<vmem>>, vector<1x32xf32>
    %cst_155 = arith.constant dense<0.000000e+00> : vector<16xf32>
    %415 = vector.multi_reduction <add>, %412, %cst_155 [1] : vector<16x32xf32> to vector<16xf32>
    %416 = vector.shape_cast %415 : vector<16xf32> to vector<16x1xf32>
    %cst_156 = arith.constant 3.200000e+01 : f32
    %417 = vector.broadcast %cst_156 : f32 to vector<16x1xf32>
    %418 = arith.divf %416, %417 : vector<16x1xf32>
    %419 = vector.broadcast %418 : vector<16x1xf32> to vector<16x32xf32>
    %420 = arith.subf %412, %419 : vector<16x32xf32>
    %421 = vector.broadcast %418 : vector<16x1xf32> to vector<16x32xf32>
    %422 = arith.subf %412, %421 : vector<16x32xf32>
    %423 = arith.mulf %420, %422 : vector<16x32xf32>
    %cst_157 = arith.constant dense<0.000000e+00> : vector<16xf32>
    %424 = vector.multi_reduction <add>, %423, %cst_157 [1] : vector<16x32xf32> to vector<16xf32>
    %425 = vector.shape_cast %424 : vector<16xf32> to vector<16x1xf32>
    %cst_158 = arith.constant 3.200000e+01 : f32
    %426 = vector.broadcast %cst_158 : f32 to vector<16x1xf32>
    %427 = arith.divf %425, %426 : vector<16x1xf32>
    %428 = vector.broadcast %418 : vector<16x1xf32> to vector<16x32xf32>
    %429 = arith.subf %412, %428 : vector<16x32xf32>
    %cst_159 = arith.constant 9.99999974E-6 : f32
    %430 = vector.broadcast %cst_159 : f32 to vector<16x1xf32>
    %431 = arith.addf %427, %430 : vector<16x1xf32>
    %432 = math.rsqrt %431 : vector<16x1xf32>
    %433 = vector.broadcast %432 : vector<16x1xf32> to vector<16x32xf32>
    %434 = arith.mulf %429, %433 : vector<16x32xf32>
    %435 = vector.broadcast %413 : vector<1x32xf32> to vector<16x32xf32>
    %436 = arith.mulf %434, %435 : vector<16x32xf32>
    %437 = vector.broadcast %414 : vector<1x32xf32> to vector<16x32xf32>
    %438 = arith.addf %436, %437 : vector<16x32xf32>
    %c160 = arith.constant 160 : index
    %c0_160 = arith.constant 0 : index
    %439 = vector.load %arg3[%c160, %c0_160] : memref<224x128xf32, #tpu.memory_space<vmem>>, vector<32x128xf32>
    %cst_161 = arith.constant dense<0.000000e+00> : vector<16x128xf32>
    %440 = tpu.matmul %438, %439, %cst_161 {dimension_numbers = #tpu.dot_dimension_numbers<[1], [0], [0], [1], [0, 0, 1, 1], [], []>} : vector<16x32xf32>, vector<32x128xf32>, vector<16x128xf32> -> vector<16x128xf32>
    %c26 = arith.constant 26 : index
    %c0_162 = arith.constant 0 : index
    %441 = vector.load %arg3[%c26, %c0_162] : memref<224x128xf32, #tpu.memory_space<vmem>>, vector<1x128xf32>
    %442 = vector.broadcast %441 : vector<1x128xf32> to vector<16x128xf32>
    %443 = arith.addf %440, %442 : vector<16x128xf32>
    %c0_163 = arith.constant 0 : index
    %c0_164 = arith.constant 0 : index
    %444 = vector.load %arg4[%c0_163, %c0_164] : memref<16x128xf32, #tpu.memory_space<vmem>>, vector<16x128xf32>
    tpu.vector_store %arg4[%c0_163, %c0_164], %443 {strides = array<i32>} : memref<16x128xf32, #tpu.memory_space<vmem>>, vector<16x128xf32>,
    return
  }
}

</mosaic_0001>

<bundles_post_ra>
// kernel: microllm_forward.1
= control target key start
LH: loop header
LB: loop body
LE: loop exit
PB: predicated region body
PF: predicated region fallthrough
CT: control target
= control target key end

     0   :  { %9 = vsyncpa [#allocation3], 0  ;;  %s2571_s18 = smov [#allocation2]   ;;  %s2572_s20 = smov 128   ;;  %s3363_s0 = inlined_call_operand.vmem [shape: s32[16,1], index: 0, kind: input, shape index: {}]   ;;  %s3364_s1 = inlined_call_operand.vmem [shape: f32[3,32,384], index: 1, kind: input, shape index: {}]   ;;  %s3365_s2 = inlined_call_operand.vmem [shape: f32[3,128,32], index: 2, kind: input, shape index: {}]   ;;  %s3366_s3 = inlined_call_operand.hbm [shape: f32[224,128], index: 3, kind: input, shape index: {}]   ;;  %s3367_s4 = inlined_call_operand.vmem [shape: f32[16,128], index: 4, kind: output, shape index: {}]  }
   0x1   :  { %s20_s17 = sshll.u32 %s3366_s3, 4  ;;  %s22_s19 = sshll.u32 %s2571_s18, 4  ;;  %s21_s17 = int_to_ptr.hbm [resolvable:$true] %s20_s17  ;;  %s23_s19 = int_to_ptr.vmem [resolvable:$true] %s22_s19 }
   0x2   :  { %s2573_s21 = smov 8  }
   0x3   :  { %28 = dma.hbm_to_vmem [thread:$0]  %s21_s17, 3584, %s23_s19, [#allocation3], %s2572_s20, %s2572_s20, %s2573_s21  }
   0x4   :  { %2569 = dma.done.wait [#allocation3], 3584  }
   0x5   :  { %2570 = vsyncadd [#allocation3], 4294963712  ;;  %v2574_v0 = vmov 0   ;;  %v33_v1 = vld [vmem:[%s3363_s0] sm:$0xff]  ;;  %v64_v2 = vld [vmem:[#allocation2 + $0x98] sm:$0xff]  ;;  %v35_v19 = vlaneseq  ;;  %v2575_v22 = vmov 1.0  }
   0x6   :  { %2332 = vset.pattern.permute.xlu0 %v2574_v0  ;;  %67 = vmatpush.msra.mxu0 %v64_v2  ;;  %v63_v3 = vld [vmem:[#allocation2 + $0x90] sm:$0xff]  ;;  %v62_v4 = vld [vmem:[#allocation2 + $0x88] sm:$0xff]  ;;  %v61_v5 = vld [vmem:[#allocation2 + $0x80] sm:$0xff]  ;;  %vm127_vm2 = vcmask 261120   ;;  %v2576_v32 = vmov 32.0   ;;  %s2577_s6 = smov 96  }
   0x7   :  { %38 = vperm.xlu0 %2332, %v33_v1   ;;  %v34_v6 = vld [vmem:[%s3363_s0 + $0x8] sm:$0xff]  ;;  %v60_v7 = vld [vmem:[#allocation2 + $0x78] sm:$0xff]  ;;  %v59_v8 = vld [vmem:[#allocation2 + $0x70] sm:$0xff]  ;;  %v36_v20 = vand.u32 127, %v35_v19  ;;  %2417 = vrcp.f32 %v2576_v32  ;;  %vm220_vm10 = vcmask 64512   ;;  %s2578_s7 = smov 64  }
   0x8   :  { %68 = vmatpush.msra.mxu0 %v63_v3  ;;  %v58_v9 = vld [vmem:[#allocation2 + $0x68] sm:$0xff]  ;;  %v57_v10 = vld [vmem:[#allocation2 + $0x60] sm:$0xff]  ;;  %v56_v11 = vld [vmem:[#allocation2 + $0x58] sm:$0xff]  ;;  %s2579_s8 = smov 88   ;;  %s2580_s9 = smov 120   ;;  %vm260_vm11 = vcmask 130048  }
   0x9   :  { %v55_v12 = vld [vmem:[#allocation2 + $0x50] sm:$0xff]  ;;  %v54_v13 = vld [vmem:[#allocation2 + $0x48] sm:$0xff]  ;;  %v53_v14 = vld [vmem:[#allocation2 + $0x40] sm:$0xff]  ;;  %s2581_s10 = smov 56   ;;  %s2582_s11 = smov 112   ;;  %vm610_vm12 = vcmask 195584  }
   0xa   :  { %69 = vmatpush.msra.mxu0 %v62_v4  ;;  %v52_v15 = vld [vmem:[#allocation2 + $0x38] sm:$0xff]  ;;  %v51_v16 = vld [vmem:[#allocation2 + $0x30] sm:$0xff]  ;;  %v50_v17 = vld [vmem:[#allocation2 + $0x28] sm:$0xff]  ;;  %s2583_s12 = smov 80   ;;  %s2584_s13 = smov 104  }
   0xb   :  { %v49_v18 = vld [vmem:[#allocation2 + $0x20] sm:$0xff]  ;;  %v66_v28 = vld [vmem:[#allocation2 + $0xc8] sm:$0xff]  ;;  %v101_v50 = vld [vmem:[%s3364_s1 + $0x30] sm:$0xff]  ;;  %s2585_s14 = smov 40   ;;  %s2586_s15 = smov 72  }
   0xc   :  { %70 = vmatpush.msra.mxu0 %v61_v5  ;;  %v65_v24 = vld [vmem:[#allocation2 + $0xc0] sm:$0xff]  ;;  %v102_v49 = vld [vmem:[%s3364_s1 + $0x48] sm:$0xff]  ;;  %v100_v51 = vld [vmem:[%s3364_s1 + $0x18] sm:$0xff]  ;;  %s2587_s16 = smov 48   ;;  %s2588_s17 = smov 16  }
   0xd   :  { %v2418_v33 = vpop.eup %2417  ;;  %203 = vmatpush.msra.mxu1 %v102_v49  ;;  %2309 = vmatpush.msra.mxu2 %v102_v49  ;;  %v99_v52 = vld [vmem:[%s3364_s1] sm:$0xff]  ;;  %s2589_s24 = smov 24  }
   0xe   :  { %71 = vmatpush.msra.mxu0 %v60_v7  ;;  %v135_v34 = vmul.f32 32.0, %v2418_v33  ;;  %vm139_vm3 = vweird.f32 %v2418_v33  ;;  %v2393_v3 = vld [vmem:[#allocation2] ss:$0 sm:$0xff]  ;;  %v2394_v7 = vld [vmem:[#allocation2 + $0x1] ss:$0 sm:$0xff] }
   0xf   :  { %41 = vperm.xlu0 %2332, %v34_v6   ;;  %204 = vmatpush.msra.mxu1 %v101_v50 }
  0x10   :  { %72 = vmatpush.msra.mxu0 %v59_v8  ;;  %v136_v35 = vsub.f32 1.0, %v135_v34  ;;  %2310 = vmatpush.msra.mxu2 %v101_v50 }
  0x11   :  { %205 = vmatpush.msra.mxu1 %v100_v51 }
  0x12   :  { %73 = vmatpush.msra.mxu0 %v58_v9  ;;  %v137_v36 = vmul.f32 %v2418_v33, %v136_v35  ;;  %2311 = vmatpush.msra.mxu2 %v100_v51 }
  0x13   :  { %206 = vmatpush.msra.mxu1 %v99_v52 }
  0x14   :  { %74 = vmatpush.msra.mxu0 %v57_v10  ;;  %v138_v37 = vadd.f32 %v2418_v33, %v137_v36  ;;  %2312 = vmatpush.msra.mxu2 %v99_v52 }
  0x16   :  { %75 = vmatpush.msra.mxu0 %v56_v11  ;;  %v2633_v38 = vsel %vm139_vm3, %v2418_v33, %v138_v37 }
  0x18   :  { %76 = vmatpush.msra.mxu0 %v55_v12 }
  0x1a   :  { %77 = vmatpush.msra.mxu0 %v54_v13 }
  0x1c   :  { %78 = vmatpush.msra.mxu0 %v53_v14 }
  0x1e   :  { %79 = vmatpush.msra.mxu0 %v52_v15 }
  0x20   :  { %80 = vmatpush.msra.mxu0 %v51_v16 }
  0x22   :  { %81 = vmatpush.msra.mxu0 %v50_v17 }
  0x24   :  { %82 = vmatpush.msra.mxu0 %v49_v18 }
  0x79   :  { %v39_v21 = vpop.permute.xlu0 %38 }
  0x7a   :  { %vm43_vm0 = vcmp.eq.s32.totalorder %v36_v20, %v39_v21 }
  0x7b   :  { %2159 = vmatmul.msk.f32.vlgmr.msra.gmra.mxu0 %vm43_vm0, %v2575_v22 }
  0x81   :  { %v42_v23 = vpop.permute.xlu0 %41 }
  0x82   :  { %vm44_vm1 = vcmp.eq.s32.totalorder %v36_v20, %v42_v23 }
  0x83   :  { %2160 = vmatmul.msk.f32.gmra.mxu0 %vm44_vm1, %v2575_v22 }
  0xf8   :  { %v84_v25 = vpop.f32.mrf.mxu0 }
  0xf9   :  { %v2625_v26 = vadd.f32 %v84_v25, %v65_v24 }
  0xfb   :  { %v128_v27 = vsel %vm127_vm2, %v2625_v26, 0.0 }
  0xfc   :  { %129 = vadd.xlane.f32.xlu1 %v128_v27 }
 0x100   :  { %v87_v29 = vpop.f32.mrf.mxu0 }
 0x101   :  { %v2629_v30 = vadd.f32 %v87_v29, %v66_v28 }
 0x103   :  { %v131_v31 = vsel %vm127_vm2, %v2629_v30, 0.0 }
 0x104   :  { %132 = vadd.xlane.f32.xlu1 %v131_v31 }
 0x16f   :  { %v130_v39 = vpop.xlane.xlu1 %129 }
 0x170   :  { %v141_v40 = vmul.f32 %v2633_v38, %v130_v39  ;;  %v2706_v39 = vld [vmem:[#allocation2 + $0xd0] sm:$0xff] }
 0x172   :  { %v143_v41 = vsub.f32 %v2625_v26, %v141_v40 }
 0x174   :  { %v145_v42 = vmul.f32 %v143_v41, %v143_v41 }
 0x176   :  { %v147_v43 = vsel %vm127_vm2, %v145_v42, 0.0 }
 0x177   :  { %148 = vadd.xlane.f32.xlu2 %v147_v43  ;;  %v133_v44 = vpop.xlane.xlu1 %132 }
 0x178   :  { %v142_v45 = vmul.f32 %v2633_v38, %v133_v44 }
 0x17a   :  { %v144_v46 = vsub.f32 %v2629_v30, %v142_v45  ;;  %v2709_v45 = vld [vmem:[#allocation2 + $0xd8] sm:$0xff] }
 0x17c   :  { %v146_v47 = vmul.f32 %v144_v46, %v144_v46 }
 0x17e   :  { %v150_v48 = vsel %vm127_vm2, %v146_v47, 0.0 }
 0x17f   :  { %151 = vadd.xlane.f32.xlu2 %v150_v48 }
 0x1ea   :  { %v149_v53 = vpop.xlane.xlu2 %148 }
 0x1eb   :  { %v153_v54 = vmul.f32 %v149_v53, %v2633_v38 }
 0x1ed   :  { %v155_v55 = vadd.f32 1e-05, %v153_v54 }
 0x1ef   :  { %2419 = vrsqrt.f32 %v155_v55  ;;  %vm163_vm5 = vweird.f32 %v155_v55 }
 0x1f2   :  { %v152_v56 = vpop.xlane.xlu2 %151 }
 0x1f3   :  { %v154_v57 = vmul.f32 %v152_v56, %v2633_v38 }
 0x1f5   :  { %v2420_v58 = vpop.eup %2419  ;;  %v156_v59 = vadd.f32 1e-05, %v154_v57 }
 0x1f6   :  { %v158_v60 = vmul.f32 %v2420_v58, %v155_v55  ;;  %vm164_vm4 = vweird.f32 %v2420_v58 }
 0x1f7   :  { %2421 = vrsqrt.f32 %v156_v59  ;;  %vm165_vm6 = vmor %vm163_vm5, %vm164_vm4  ;;  %vm173_vm8 = vweird.f32 %v156_v59 }
 0x1f8   :  { %v159_v61 = vmul.f32 %v2420_v58, %v158_v60 }
 0x1fa   :  { %v160_v62 = vmul.f32 0.5, %v159_v61 }
 0x1fc   :  { %v161_v63 = vsub.f32 1.5, %v160_v62 }
 0x1fd   :  { %v2422_v0 = vpop.eup %2421 }
 0x1fe   :  { %v162_v1 = vmul.f32 %v2420_v58, %v161_v63  ;;  %v168_v2 = vmul.f32 %v2422_v0, %v156_v59  ;;  %vm174_vm7 = vweird.f32 %v2422_v0 }
 0x1ff   :  { %vm175_vm9 = vmor %vm173_vm8, %vm174_vm7 }
 0x200   :  { %v166_v4 = vsel %vm165_vm6, %v2420_v58, %v162_v1  ;;  %v169_v5 = vmul.f32 %v2422_v0, %v168_v2 }
 0x201   :  { %v177_v6 = vmul.f32 %v166_v4, %v143_v41 }
 0x202   :  { %v170_v8 = vmul.f32 0.5, %v169_v5 }
 0x203   :  { %v180_v9 = vmul.f32 %v2393_v3, %v177_v6 }
 0x204   :  { %v171_v10 = vsub.f32 1.5, %v170_v8 }
 0x205   :  { %v183_v11 = vadd.f32 %v2394_v7, %v180_v9 }
 0x206   :  { %v172_v12 = vmul.f32 %v2422_v0, %v171_v10 }
 0x207   :  { %2161 = vmatmul.msk.f32.vlgmr.msra.gmra.mxu1 %vm127_vm2, %v183_v11 }
 0x208   :  { %v176_v13 = vsel %vm175_vm9, %v2422_v0, %v172_v12 }
 0x209   :  { %v178_v14 = vmul.f32 %v176_v13, %v144_v46 }
 0x20b   :  { %v181_v15 = vmul.f32 %v2393_v3, %v178_v14 }
 0x20d   :  { %v184_v16 = vadd.f32 %v2394_v7, %v181_v15 }
 0x20f   :  { %2162 = vmatmul.msk.f32.vlgmr.msra.gmra.mxu2 %vm127_vm2, %v184_v16 }
 0x284   :  { %v2657_v17 = vpop.f32.mrf.mxu1 }
 0x285   :  { %216 = vrot.lane.b32.xlu0 %v2657_v17, %s2577_s6 }
 0x292   :  { %v2661_v18 = vpop.f32.mrf.mxu2 }
 0x293   :  { %218 = vrot.lane.b32.xlu1 %v2661_v18, %s2577_s6  ;;  %2163 = vmatpush.xpose.msk.msrb.mxu2 %vm220_vm10, %v2661_v18  ;;  %v2669_v19 = vpack.i.bf16 %v2657_v17, %v2661_v18 }
 0x295   :  { %2334 = vrot.lane.b32.xlu0 %v2669_v19, %s2578_s7 }
 0x297   :  { %2164 = vmatpush.xpose.msk.msrb.mxu2 %vm220_vm10, %v2657_v17 }
 0x29b   :  { %308 = vrot.lane.b32.xlu1 %v2661_v18, %s2579_s8 }
 0x29d   :  { %312 = vrot.lane.b32.xlu0 %v2661_v18, %s2580_s9 }
 0x2a3   :  { %2339 = vrot.lane.b32.xlu1 %v2669_v19, %s2581_s10 }
 0x2a5   :  { %306 = vrot.lane.b32.xlu0 %v2657_v17, %s2579_s8 }
 0x2ab   :  { %404 = vrot.lane.b32.xlu1 %v2661_v18, %s2582_s11 }
 0x2b3   :  { %402 = vrot.lane.b32.xlu1 %v2657_v17, %s2582_s11 }
 0x2bb   :  { %398 = vrot.lane.b32.xlu1 %v2657_v17, %s2583_s12 }
 0x2c3   :  { %496 = vrot.lane.b32.xlu1 %v2661_v18, %s2584_s13 }
 0x2cb   :  { %494 = vrot.lane.b32.xlu1 %v2657_v17, %s2584_s13 }
 0x2d3   :  { %400 = vrot.lane.b32.xlu1 %v2661_v18, %s2583_s12 }
 0x2f7   :  { %v217_v20 = vpop.permute.xlu0 %216 }
 0x2f8   :  { %2165 = vmatmul.msk.f32.vlgmr.msrb.gmra.mxu2 %vm220_vm10, %v217_v20 }
 0x305   :  { %v219_v21 = vpop.permute.xlu1 %218 }
 0x306   :  { %2166 = vmatmul.msk.f32.gmra.mxu2 %vm220_vm10, %v219_v21 }
 0x307   :  { %v2335_v22 = vpop.permute.xlu0 %2334 }
 0x308   :  { %v2336_v23 = vunpack.i.l.bf16 %v2335_v22  ;;  %v2337_v24 = vunpack.i.h.bf16 %v2335_v22 }
 0x30a   :  { %297 = vmatpush.msra.mxu3 %v2336_v23 }
 0x30c   :  { %298 = vmatpush.msra.mxu3 %v2337_v24 }
 0x30d   :  { %v2697_v25 = vpop.permute.xlu1 %308 }
 0x30f   :  { %v313_v27 = vpop.permute.xlu0 %312 }
 0x310   :  { %2169 = vmatpush.xpose.msk.msrb.mxu3 %vm220_vm10, %v313_v27 }
 0x315   :  { %v2340_v28 = vpop.permute.xlu1 %2339 }
 0x316   :  { %v2341_v29 = vunpack.i.l.bf16 %v2340_v28  ;;  %v2342_v31 = vunpack.i.h.bf16 %v2340_v28 }
 0x317   :  { %v307_v2 = vpop.permute.xlu0 %306 }
 0x318   :  { %389 = vmatpush.msrb.mxu1 %v2341_v29 }
 0x31a   :  { %390 = vmatpush.msrb.mxu1 %v2342_v31 }
 0x31d   :  { %v405_v32 = vpop.permute.xlu1 %404 }
 0x31e   :  { %2175 = vmatpush.xpose.msk.msra.mxu2 %vm220_vm10, %v405_v32 }
 0x325   :  { %v403_v33 = vpop.permute.xlu1 %402 }
 0x326   :  { %2176 = vmatpush.xpose.msk.msra.mxu2 %vm220_vm10, %v403_v33 }
 0x32d   :  { %v399_v34 = vpop.permute.xlu1 %398 }
 0x32e   :  { %2177 = vmatmul.msk.f32.vlgmr.msra.gmra.mxu2 %vm220_vm10, %v399_v34 }
 0x335   :  { %v497_v35 = vpop.permute.xlu1 %496 }
 0x336   :  { %2181 = vmatpush.xpose.msk.msra.mxu1 %vm220_vm10, %v497_v35 }
 0x33d   :  { %v495_v36 = vpop.permute.xlu1 %494 }
 0x33e   :  { %2182 = vmatpush.xpose.msk.msra.mxu1 %vm220_vm10, %v495_v36 }
 0x345   :  { %v401_v37 = vpop.permute.xlu1 %400 }
 0x346   :  { %2178 = vmatmul.msk.f32.gmra.mxu2 %vm220_vm10, %v401_v37 }
 0x37b   :  { %v246_v40 = vpop.f32.mrf.mxu2 }
 0x37c   :  { %v252_v41 = vmul.f32 0.17677669, %v246_v40 }
 0x37e   :  { %v254_v42 = vadd.f32 %v252_v41, %v2706_v39 }
 0x380   :  { %v256_v43 = vmul.f32 1.442695, %v254_v42 }
 0x382   :  { %2423 = vpow2.f32 %v256_v43 }
 0x388   :  { %v2424_v44 = vpop.eup %2423 }
 0x389   :  { %v249_v46 = vpop.f32.mrf.mxu2  ;;  %v261_v47 = vsel %vm260_vm11, %v2424_v44, 0.0 }
 0x38a   :  { %v253_v48 = vmul.f32 0.17677669, %v249_v46  ;;  %262 = vadd.xlane.f32.xlu2 %v261_v47 }
 0x38c   :  { %v255_v49 = vadd.f32 %v253_v48, %v2709_v45 }
 0x38e   :  { %v258_v50 = vmul.f32 1.442695, %v255_v49 }
 0x390   :  { %2425 = vpow2.f32 %v258_v50 }
 0x396   :  { %v2426_v51 = vpop.eup %2425 }
 0x397   :  { %v264_v52 = vsel %vm260_vm11, %v2426_v51, 0.0 }
 0x398   :  { %265 = vadd.xlane.f32.xlu2 %v264_v52 }
 0x3b0   :  { %310 = vrot.lane.b32.xlu2 %v2657_v17, %s2580_s9 }
 0x3b1   :  { %v431_v53 = vpop.f32.mrf.mxu2 }
 0x3b2   :  { %v437_v54 = vmul.f32 0.17677669, %v431_v53 }
 0x3b4   :  { %v439_v55 = vadd.f32 %v437_v54, %v2706_v39 }
 0x3b6   :  { %v441_v56 = vmul.f32 1.442695, %v439_v55 }
 0x3b8   :  { %2427 = vpow2.f32 %v441_v56 }
 0x3be   :  { %v2717_v57 = vpop.eup %2427 }
 0x3bf   :  { %v445_v58 = vsel %vm260_vm11, %v2717_v57, 0.0 }
 0x3c0   :  { %446 = vadd.xlane.f32.xlu1 %v445_v58 }
 0x3c9   :  { %v434_v24 = vpop.f32.mrf.mxu2 }
 0x3d9   :  { %2349 = vrot.lane.b32.xlu1 %v2669_v19, %s2585_s14 }
 0x3fd   :  { %v263_v59 = vpop.xlane.xlu2 %262 }
 0x3fe   :  { %2429 = vrcp.f32 %v263_v59 }
 0x404   :  { %v2430_v60 = vpop.eup %2429 }
 0x405   :  { %v269_v61 = vmul.f32 %v2430_v60, %v2424_v44 }
 0x407   :  { %2167 = vmatmul.msk.f32.vlgmr.msra.gmra.mxu3 %vm260_vm11, %v269_v61 }
 0x40b   :  { %v266_v62 = vpop.xlane.xlu2 %265 }
 0x40c   :  { %2431 = vrcp.f32 %v266_v62 }
 0x412   :  { %v2432_v63 = vpop.eup %2431 }
 0x413   :  { %v311_v0 = vpop.permute.xlu2 %310  ;;  %v270_v1 = vmul.f32 %v2432_v63, %v2426_v51 }
 0x414   :  { %2170 = vmatpush.xpose.msk.msrb.mxu3 %vm220_vm10, %v311_v0 }
 0x415   :  { %2168 = vmatmul.msk.f32.gmra.mxu3 %vm260_vm11, %v270_v1 }
 0x41d   :  { %2171 = vmatmul.msk.f32.vlgmr.msrb.gmra.mxu3 %vm220_vm10, %v307_v2 }
 0x425   :  { %2172 = vmatmul.msk.f32.gmra.mxu3 %vm220_vm10, %v2697_v25  ;;  %v438_v25 = vmul.f32 0.17677669, %v434_v24 }
 0x427   :  { %v440_v27 = vadd.f32 %v438_v25, %v2709_v45 }
 0x429   :  { %v443_v28 = vmul.f32 1.442695, %v440_v27 }
 0x433   :  { %v447_v3 = vpop.xlane.xlu1 %446 }
 0x44b   :  { %v2350_v4 = vpop.permute.xlu1 %2349 }
 0x44c   :  { %v2351_v5 = vunpack.i.l.bf16 %v2350_v4  ;;  %v2352_v6 = vunpack.i.h.bf16 %v2350_v4 }
 0x44e   :  { %573 = vmatpush.msrb.mxu2 %v2351_v5  ;;  %v110_v5 = vld [vmem:[%s3364_s1 + $0x58] sm:$0xff] }
 0x450   :  { %574 = vmatpush.msrb.mxu2 %v2352_v6  ;;  %v109_v6 = vld [vmem:[%s3364_s1 + $0x40] sm:$0xff] }
 0x48a   :  { %v2729_v7 = vpop.f32.mrf.mxu3 }
 0x498   :  { %v2731_v8 = vpop.f32.mrf.mxu3 }
 0x4a0   :  { %v339_v9 = vpop.f32.mrf.mxu3 }
 0x4a1   :  { %v345_v10 = vmul.f32 0.17677669, %v339_v9  ;;  %v108_v9 = vld [vmem:[%s3364_s1 + $0x28] sm:$0xff] }
 0x4a3   :  { %v347_v11 = vadd.f32 %v345_v10, %v2706_v39 }
 0x4a5   :  { %v349_v12 = vmul.f32 1.442695, %v347_v11 }
 0x4a7   :  { %2433 = vpow2.f32 %v349_v12 }
 0x4a8   :  { %v342_v13 = vpop.f32.mrf.mxu3 }
 0x4a9   :  { %v346_v14 = vmul.f32 0.17677669, %v342_v13  ;;  %v107_v13 = vld [vmem:[%s3364_s1 + $0x10] sm:$0xff] }
 0x4ab   :  { %v348_v15 = vadd.f32 %v346_v14, %v2709_v45 }
 0x4ad   :  { %v2434_v16 = vpop.eup %2433  ;;  %v351_v20 = vmul.f32 1.442695, %v348_v15 }
 0x4ae   :  { %v353_v21 = vsel %vm260_vm11, %v2434_v16, 0.0 }
 0x4af   :  { %2435 = vpow2.f32 %v351_v20  ;;  %354 = vadd.xlane.f32.xlu0 %v353_v21 }
 0x4b0   :  { %2437 = vpow2.f32 %v443_v28 }
 0x4b5   :  { %v2436_v22 = vpop.eup %2435 }
 0x4b6   :  { %v356_v23 = vsel %vm260_vm11, %v2436_v22, 0.0  ;;  %v2438_v29 = vpop.eup %2437 }
 0x4b7   :  { %357 = vadd.xlane.f32.xlu2 %v356_v23  ;;  %v448_v31 = vsel %vm260_vm11, %v2438_v29, 0.0 }
 0x4c3   :  { %490 = vrot.lane.b32.xlu0 %v2657_v17, %s2586_s15 }
 0x4cf   :  { %492 = vrot.lane.b32.xlu2 %v2661_v18, %s2586_s15 }
 0x4d7   :  { %2344 = vrot.lane.b32.xlu2 %v2669_v19, %s2587_s16 }
 0x500   :  { %449 = vadd.xlane.f32.xlu2 %v448_v31 }
 0x522   :  { %v355_v32 = vpop.xlane.xlu0 %354 }
 0x523   :  { %2439 = vrcp.f32 %v355_v32 }
 0x529   :  { %v2440_v17 = vpop.eup %2439 }
 0x52a   :  { %v358_v33 = vpop.xlane.xlu2 %357  ;;  %v361_v34 = vmul.f32 %v2440_v17, %v2434_v16 }
 0x52b   :  { %2441 = vrcp.f32 %v358_v33 }
 0x52c   :  { %2173 = vmatmul.msk.f32.vlgmr.msrb.gmra.mxu1 %vm260_vm11, %v361_v34  ;;  %2443 = vrcp.f32 %v447_v3 }
 0x52d   :  { %632 = vmatpush.msrb.mxu1 %v110_v5 }
 0x52f   :  { %633 = vmatpush.msrb.mxu1 %v109_v6 }
 0x531   :  { %v2442_v18 = vpop.eup %2441  ;;  %634 = vmatpush.msrb.mxu1 %v108_v9  ;;  %v118_v9 = vld [vmem:[%s3365_s2 + $0x38] sm:$0xff] }
 0x532   :  { %v493_v19 = vpop.permute.xlu2 %492  ;;  %v362_v35 = vmul.f32 %v2442_v18, %v2436_v22  ;;  %v2444_v37 = vpop.eup %2443 }
 0x533   :  { %v453_v43 = vmul.f32 %v2444_v37, %v2717_v57  ;;  %635 = vmatpush.msrb.mxu1 %v107_v13  ;;  %v117_v13 = vld [vmem:[%s3365_s2 + $0x30] sm:$0xff] }
 0x534   :  { %2174 = vmatmul.msk.f32.gmra.mxu1 %vm260_vm11, %v362_v35 }
 0x535   :  { %v491_v40 = vpop.permute.xlu0 %490 }
 0x53a   :  { %v2345_v36 = vpop.permute.xlu2 %2344 }
 0x53b   :  { %v2346_v41 = vunpack.i.l.bf16 %v2345_v36  ;;  %v2347_v42 = vunpack.i.h.bf16 %v2345_v36 }
 0x53c   :  { %2183 = vmatmul.msk.f32.vlgmr.msra.gmra.mxu1 %vm220_vm10, %v491_v40 }
 0x53d   :  { %481 = vmatpush.msra.mxu3 %v2346_v41 }
 0x53f   :  { %482 = vmatpush.msra.mxu3 %v2347_v42 }
 0x540   :  { %2179 = vmatmul.msk.f32.vlgmr.msra.gmra.mxu3 %vm260_vm11, %v453_v43 }
 0x544   :  { %2184 = vmatmul.msk.f32.gmra.mxu1 %vm220_vm10, %v493_v19 }
 0x573   :  { %v450_v44 = vpop.xlane.xlu2 %449 }
 0x574   :  { %2445 = vrcp.f32 %v450_v44 }
 0x57a   :  { %v2446_v46 = vpop.eup %2445 }
 0x57b   :  { %v454_v47 = vmul.f32 %v2446_v46, %v2438_v29  ;;  %v106_v46 = vld [vmem:[%s3364_s1 + $0x50] sm:$0xff] }
 0x57c   :  { %714 = vmatpush.msrb.mxu3 %v106_v46 }
 0x57d   :  { %2180 = vmatmul.msk.f32.gmra.mxu3 %vm260_vm11, %v454_v47  ;;  %v105_v47 = vld [vmem:[%s3364_s1 + $0x38] sm:$0xff] }
 0x57e   :  { %715 = vmatpush.msrb.mxu3 %v105_v47 }
 0x5a9   :  { %v392_v48 = vpop.f32.mrf.mxu1 }
 0x5b1   :  { %v395_v49 = vpop.f32.mrf.mxu1 }
 0x5b9   :  { %v523_v50 = vpop.f32.mrf.mxu1 }
 0x5ba   :  { %v529_v51 = vmul.f32 0.17677669, %v523_v50 }
 0x5bc   :  { %v531_v52 = vadd.f32 %v529_v51, %v2706_v39 }
 0x5be   :  { %v533_v53 = vmul.f32 1.442695, %v531_v52 }
 0x5c0   :  { %2447 = vpow2.f32 %v533_v53  ;;  %v126_v53 = vld [vmem:[%s3365_s2 + $0x78] sm:$0xff] }
 0x5c1   :  { %v526_v54 = vpop.f32.mrf.mxu1  ;;  %727 = vmatpush.msra.mxu1 %v126_v53 }
 0x5c2   :  { %v530_v55 = vmul.f32 0.17677669, %v526_v54  ;;  %v125_v54 = vld [vmem:[%s3365_s2 + $0x70] sm:$0xff] }
 0x5c3   :  { %v484_v56 = vpop.f32.mrf.mxu3  ;;  %728 = vmatpush.msra.mxu1 %v125_v54 }
 0x5c4   :  { %v532_v57 = vadd.f32 %v530_v55, %v2709_v45  ;;  %592 = vrot.lane.b32.xlu2 %v484_v56, %s2588_s17  ;;  %v124_v55 = vld [vmem:[%s3365_s2 + $0x68] sm:$0xff] }
 0x5c5   :  { %729 = vmatpush.msra.mxu1 %v124_v55 }
 0x5c6   :  { %v2448_v58 = vpop.eup %2447  ;;  %v535_v59 = vmul.f32 1.442695, %v532_v57 }
 0x5c7   :  { %v537_v60 = vsel %vm260_vm11, %v2448_v58, 0.0 }
 0x5c8   :  { %2449 = vpow2.f32 %v535_v59  ;;  %538 = vadd.xlane.f32.xlu0 %v537_v60 }
 0x5ce   :  { %v2450_v61 = vpop.eup %2449 }
 0x5cf   :  { %v540_v62 = vsel %vm260_vm11, %v2450_v61, 0.0 }
 0x5d0   :  { %541 = vadd.xlane.f32.xlu0 %v540_v62  ;;  %v122_v62 = vld [vmem:[%s3365_s2 + $0x58] sm:$0xff] }
 0x5e4   :  { %584 = vrot.lane.b32.xlu0 %v392_v48, %s2573_s21  ;;  %v104_v48 = vld [vmem:[%s3364_s1 + $0x20] sm:$0xff] }
 0x5e5   :  { %716 = vmatpush.msrb.mxu3 %v104_v48 }
 0x5ec   :  { %586 = vrot.lane.b32.xlu0 %v395_v49, %s2573_s21  ;;  %v103_v49 = vld [vmem:[%s3364_s1 + $0x8] sm:$0xff] }
 0x5ed   :  { %717 = vmatpush.msrb.mxu3 %v103_v49 }
 0x600   :  { %v487_v11 = vpop.f32.mrf.mxu3 }
 0x61e   :  { %v593_v16 = vpop.permute.xlu2 %592 }
 0x63b   :  { %v539_v63 = vpop.xlane.xlu0 %538 }
 0x63c   :  { %2451 = vrcp.f32 %v539_v63 }
 0x642   :  { %v2452_v0 = vpop.eup %2451 }
 0x643   :  { %v545_v1 = vmul.f32 %v2452_v0, %v2448_v58  ;;  %v542_v2 = vpop.xlane.xlu0 %541  ;;  %v123_v58 = vld [vmem:[%s3365_s2 + $0x60] sm:$0xff]  ;;  %v121_v0 = vld [vmem:[%s3365_s2 + $0x50] sm:$0xff] }
 0x644   :  { %2453 = vrcp.f32 %v542_v2  ;;  %730 = vmatpush.msra.mxu1 %v123_v58  ;;  %v120_v2 = vld [vmem:[%s3365_s2 + $0x48] sm:$0xff] }
 0x645   :  { %2185 = vmatmul.msk.f32.vlgmr.msrb.gmra.mxu2 %vm260_vm11, %v545_v1 }
 0x646   :  { %731 = vmatpush.msra.mxu1 %v122_v62  ;;  %v2191_v62 = vld [vmem:[%s3364_s1 + $0x60] sm:$0xff] }
 0x648   :  { %732 = vmatpush.msra.mxu1 %v121_v0 }
 0x64a   :  { %v2454_v3 = vpop.eup %2453  ;;  %733 = vmatpush.msra.mxu1 %v120_v2 }
 0x64b   :  { %v546_v4 = vmul.f32 %v2454_v3, %v2450_v61 }
 0x64d   :  { %2186 = vmatmul.msk.f32.gmra.mxu2 %vm260_vm11, %v546_v4  ;;  %v119_v4 = vld [vmem:[%s3365_s2 + $0x40] sm:$0xff] }
 0x64e   :  { %734 = vmatpush.msra.mxu1 %v119_v4 }
 0x650   :  { %735 = vmatpush.msra.mxu1 %v118_v9 }
 0x652   :  { %736 = vmatpush.msra.mxu1 %v117_v13 }
 0x656   :  { %v585_v14 = vpop.permute.xlu0 %584 }
 0x657   :  { %v606_v15 = vsel %vm220_vm10, %v2729_v7, %v585_v14  ;;  %v2395_v7 = vld [vmem:[#allocation2 + $0x4] ss:$0 sm:$0xff] }
 0x658   :  { %v608_v22 = vsel %vm260_vm11, %v606_v15, %v593_v16  ;;  %v2397_v16 = vld [vmem:[#allocation2 + $0x3] ss:$0 sm:$0xff] }
 0x65e   :  { %v587_v20 = vpop.permute.xlu0 %586 }
 0x65f   :  { %v607_v24 = vsel %vm220_vm10, %v2731_v8, %v587_v20  ;;  %v116_v20 = vld [vmem:[%s3365_s2 + $0x28] sm:$0xff] }
 0x660   :  { %737 = vmatpush.msra.mxu1 %v116_v20 }
 0x6c8   :  { %v576_v10 = vpop.f32.mrf.mxu2 }
 0x6c9   :  { %600 = vrot.lane.b32.xlu1 %v576_v10, %s2589_s24  ;;  %v2396_v10 = vld [vmem:[#allocation2 + $0x2] ss:$0 sm:$0xff] }
 0x6d0   :  { %v579_v12 = vpop.f32.mrf.mxu2 }
 0x6d1   :  { %602 = vrot.lane.b32.xlu0 %v579_v12, %s2589_s24  ;;  %594 = vrot.lane.b32.xlu1 %v487_v11, %s2588_s17 }
 0x73b   :  { %v601_v21 = vpop.permute.xlu1 %600 }
 0x73c   :  { %v611_v23 = vsel %vm610_vm12, %v608_v22, %v601_v21 }
 0x73d   :  { %2187 = vmatmul.msk.f32.vlgmr.msrb.gmra.mxu1 %vm127_vm2, %v611_v23  ;;  %v115_v23 = vld [vmem:[%s3365_s2 + $0x20] sm:$0xff] }
 0x73e   :  { %738 = vmatpush.msra.mxu1 %v115_v23 }
 0x743   :  { %v603_v25 = vpop.permute.xlu0 %602  ;;  %v595_v27 = vpop.permute.xlu1 %594 }
 0x744   :  { %v609_v28 = vsel %vm260_vm11, %v607_v24, %v595_v27  ;;  %v114_v27 = vld [vmem:[%s3365_s2 + $0x18] sm:$0xff] }
 0x745   :  { %v612_v29 = vsel %vm610_vm12, %v609_v28, %v603_v25  ;;  %739 = vmatpush.msra.mxu1 %v114_v27 }
 0x746   :  { %2188 = vmatmul.msk.f32.gmra.mxu1 %vm127_vm2, %v612_v29 }
 0x7ba   :  { %v637_v31 = vpop.f32.mrf.mxu1 }
 0x7bb   :  { %v638_v32 = vadd.f32 %v2395_v7, %v637_v31 }
 0x7bd   :  { %v2787_v17 = vadd.f32 %v638_v32, %v2625_v26 }
 0x7bf   :  { %v645_v33 = vsel %vm127_vm2, %v2787_v17, 0.0 }
 0x7c0   :  { %646 = vadd.xlane.f32.xlu1 %v645_v33  ;;  %v113_v33 = vld [vmem:[%s3365_s2 + $0x10] sm:$0xff] }
 0x7c1   :  { %740 = vmatpush.msra.mxu1 %v113_v33 }
 0x7c3   :  { %v640_v34 = vpop.f32.mrf.mxu1 }
 0x7c4   :  { %v641_v8 = vadd.f32 %v2395_v7, %v640_v34  ;;  %v112_v34 = vld [vmem:[%s3365_s2 + $0x8] sm:$0xff] }
 0x7c5   :  { %741 = vmatpush.msra.mxu1 %v112_v34 }
 0x7c6   :  { %v2792_v18 = vadd.f32 %v641_v8, %v2629_v30  ;;  %v111_v8 = vld [vmem:[%s3365_s2] sm:$0xff] }
 0x7c7   :  { %742 = vmatpush.msra.mxu1 %v111_v8 }
 0x7c8   :  { %v648_v19 = vsel %vm127_vm2, %v2792_v18, 0.0 }
 0x7c9   :  { %649 = vadd.xlane.f32.xlu2 %v648_v19  ;;  %v2398_v19 = vld [vmem:[#allocation2 + $0x6] ss:$0 sm:$0xff] }
 0x833   :  { %v647_v35 = vpop.xlane.xlu1 %646 }
 0x834   :  { %v651_v36 = vmul.f32 %v647_v35, %v2633_v38 }
 0x836   :  { %v653_v37 = vsub.f32 %v2787_v17, %v651_v36 }
 0x838   :  { %v655_v26 = vmul.f32 %v653_v37, %v653_v37 }
 0x83a   :  { %v657_v40 = vsel %vm127_vm2, %v655_v26, 0.0 }
 0x83b   :  { %658 = vadd.xlane.f32.xlu0 %v657_v40 }
 0x83c   :  { %v650_v41 = vpop.xlane.xlu2 %649 }
 0x83d   :  { %v652_v42 = vmul.f32 %v650_v41, %v2633_v38 }
 0x83f   :  { %v2801_v43 = vsub.f32 %v2792_v18, %v652_v42  ;;  %v2399_v42 = vld [vmem:[#allocation2 + $0x5] ss:$0 sm:$0xff] }
 0x841   :  { %v656_v30 = vmul.f32 %v2801_v43, %v2801_v43 }
 0x843   :  { %v660_v44 = vsel %vm127_vm2, %v656_v30, 0.0 }
 0x844   :  { %661 = vadd.xlane.f32.xlu1 %v660_v44 }
 0x8ae   :  { %v659_v50 = vpop.xlane.xlu0 %658 }
 0x8af   :  { %v663_v51 = vmul.f32 %v659_v50, %v2633_v38 }
 0x8b1   :  { %v665_v52 = vadd.f32 1e-05, %v663_v51 }
 0x8b3   :  { %2455 = vrsqrt.f32 %v665_v52  ;;  %vm673_vm14 = vweird.f32 %v665_v52 }
 0x8b7   :  { %v662_v56 = vpop.xlane.xlu1 %661 }
 0x8b8   :  { %v664_v57 = vmul.f32 %v662_v56, %v2633_v38 }
 0x8b9   :  { %v2456_v59 = vpop.eup %2455 }
 0x8ba   :  { %v668_v60 = vmul.f32 %v2456_v59, %v665_v52  ;;  %v666_v61 = vadd.f32 1e-05, %v664_v57  ;;  %vm674_vm13 = vweird.f32 %v2456_v59 }
 0x8bb   :  { %vm675_vm15 = vmor %vm673_vm14, %vm674_vm13 }
 0x8bc   :  { %v669_v63 = vmul.f32 %v2456_v59, %v668_v60  ;;  %2457 = vrsqrt.f32 %v666_v61  ;;  %vm683_vm1 = vweird.f32 %v666_v61  ;;  %v2193_v60 = vld [vmem:[%s3364_s1 + $0x90] sm:$0xff] }
 0x8be   :  { %v670_v1 = vmul.f32 0.5, %v669_v63 }
 0x8c0   :  { %v671_v3 = vsub.f32 1.5, %v670_v1 }
 0x8c2   :  { %v2458_v5 = vpop.eup %2457  ;;  %v672_v6 = vmul.f32 %v2456_v59, %v671_v3 }
 0x8c3   :  { %v678_v11 = vmul.f32 %v2458_v5, %v666_v61  ;;  %vm684_vm0 = vweird.f32 %v2458_v5  ;;  %v2192_v61 = vld [vmem:[%s3364_s1 + $0x78] sm:$0xff] }
 0x8c4   :  { %v676_v12 = vsel %vm675_vm15, %v2456_v59, %v672_v6  ;;  %vm685_vm3 = vmor %vm683_vm1, %vm684_vm0  ;;  %v2194_v59 = vld [vmem:[%s3364_s1 + $0xa8] sm:$0xff] }
 0x8c5   :  { %v687_v14 = vmul.f32 %v676_v12, %v653_v37  ;;  %v679_v15 = vmul.f32 %v2458_v5, %v678_v11  ;;  %860 = vmatpush.msra.mxu2 %v2194_v59 }
 0x8c7   :  { %v690_v21 = vmul.f32 %v2396_v10, %v687_v14  ;;  %v680_v22 = vmul.f32 0.5, %v679_v15  ;;  %861 = vmatpush.msra.mxu2 %v2193_v60  ;;  %v2400_v14 = vld [vmem:[#allocation2 + $0x8] ss:$0 sm:$0xff] }
 0x8c9   :  { %v681_v24 = vsub.f32 1.5, %v680_v22  ;;  %v693_v25 = vadd.f32 %v2397_v16, %v690_v21  ;;  %862 = vmatpush.msra.mxu2 %v2192_v61  ;;  %v2401_v22 = vld [vmem:[#allocation2 + $0x9] ss:$0 sm:$0xff] }
 0x8cb   :  { %v682_v28 = vmul.f32 %v2458_v5, %v681_v24  ;;  %2189 = vmatmul.msk.f32.vlgmr.msrb.gmra.mxu3 %vm127_vm2, %v693_v25  ;;  %863 = vmatpush.msra.mxu2 %v2191_v62 }
 0x8cd   :  { %v686_v29 = vsel %vm685_vm3, %v2458_v5, %v682_v28 }
 0x8ce   :  { %v688_v7 = vmul.f32 %v686_v29, %v2801_v43 }
 0x8d0   :  { %v691_v31 = vmul.f32 %v2396_v10, %v688_v7 }
 0x8d2   :  { %v694_v32 = vadd.f32 %v2397_v16, %v691_v31 }
 0x8d4   :  { %2190 = vmatmul.msk.f32.gmra.mxu3 %vm127_vm2, %v694_v32 }
 0x94e   :  { %v719_v35 = vpop.f32.mrf.mxu3 }
 0x94f   :  { %v720_v36 = vadd.f32 %v2398_v19, %v719_v35 }
 0x951   :  { %v725_v37 = vmax.f32 %v720_v36, 0.0 }
 0x953   :  { %743 = vmatmul.f32.vlgmr.msra.gmra.mxu1 %v725_v37 }
 0x957   :  { %v722_v26 = vpop.f32.mrf.mxu3 }
 0x958   :  { %v723_v40 = vadd.f32 %v2398_v19, %v722_v26 }
 0x95a   :  { %v726_v41 = vmax.f32 %v723_v40, 0.0 }
 0x95c   :  { %746 = vmatmul.f32.gmra.mxu1 %v726_v41 }
 0x9d0   :  { %v744_v43 = vpop.f32.mrf.mxu1 }
 0x9d1   :  { %v750_v30 = vadd.f32 %v744_v43, %v2787_v17 }
 0x9d3   :  { %v2872_v44 = vadd.f32 %v2399_v42, %v750_v30 }
 0x9d5   :  { %v792_v46 = vsel %vm127_vm2, %v2872_v44, 0.0 }
 0x9d6   :  { %793 = vadd.xlane.f32.xlu2 %v792_v46 }
 0x9d9   :  { %v747_v47 = vpop.f32.mrf.mxu1 }
 0x9da   :  { %v751_v48 = vadd.f32 %v747_v47, %v2792_v18 }
 0x9dc   :  { %v2877_v49 = vadd.f32 %v2399_v42, %v751_v48 }
 0x9de   :  { %v795_v50 = vsel %vm127_vm2, %v2877_v49, 0.0 }
 0x9df   :  { %796 = vadd.xlane.f32.xlu0 %v795_v50 }
 0xa49   :  { %v794_v51 = vpop.xlane.xlu2 %793 }
 0xa4a   :  { %v798_v52 = vmul.f32 %v794_v51, %v2633_v38 }
 0xa4c   :  { %v800_v17 = vsub.f32 %v2872_v44, %v798_v52 }
 0xa4e   :  { %v802_v53 = vmul.f32 %v800_v17, %v800_v17 }
 0xa50   :  { %v804_v54 = vsel %vm127_vm2, %v802_v53, 0.0 }
 0xa51   :  { %805 = vadd.xlane.f32.xlu1 %v804_v54 }
 0xa52   :  { %v797_v55 = vpop.xlane.xlu0 %796 }
 0xa53   :  { %v799_v56 = vmul.f32 %v797_v55, %v2633_v38 }
 0xa55   :  { %v801_v18 = vsub.f32 %v2877_v49, %v799_v56 }
 0xa57   :  { %v803_v57 = vmul.f32 %v801_v18, %v801_v18 }
 0xa59   :  { %v807_v58 = vsel %vm127_vm2, %v803_v57, 0.0 }
 0xa5a   :  { %808 = vadd.xlane.f32.xlu2 %v807_v58 }
 0xac4   :  { %v806_v63 = vpop.xlane.xlu1 %805 }
 0xac5   :  { %v810_v0 = vmul.f32 %v806_v63, %v2633_v38 }
 0xac7   :  { %v812_v1 = vadd.f32 1e-05, %v810_v0 }
 0xac9   :  { %2459 = vrsqrt.f32 %v812_v1  ;;  %vm820_vm5 = vweird.f32 %v812_v1 }
 0xacd   :  { %v809_v2 = vpop.xlane.xlu2 %808 }
 0xace   :  { %v811_v3 = vmul.f32 %v809_v2, %v2633_v38 }
 0xacf   :  { %v2460_v4 = vpop.eup %2459 }
 0xad0   :  { %v815_v5 = vmul.f32 %v2460_v4, %v812_v1  ;;  %v813_v6 = vadd.f32 1e-05, %v811_v3  ;;  %vm821_vm4 = vweird.f32 %v2460_v4 }
 0xad1   :  { %vm822_vm6 = vmor %vm820_vm5, %vm821_vm4 }
 0xad2   :  { %v816_v9 = vmul.f32 %v2460_v4, %v815_v5  ;;  %2461 = vrsqrt.f32 %v813_v6  ;;  %vm830_vm8 = vweird.f32 %v813_v6 }
 0xad4   :  { %v817_v10 = vmul.f32 0.5, %v816_v9 }
 0xad6   :  { %v818_v11 = vsub.f32 1.5, %v817_v10 }
 0xad8   :  { %v2462_v12 = vpop.eup %2461  ;;  %v819_v13 = vmul.f32 %v2460_v4, %v818_v11 }
 0xad9   :  { %v825_v15 = vmul.f32 %v2462_v12, %v813_v6  ;;  %vm831_vm7 = vweird.f32 %v2462_v12 }
 0xada   :  { %v823_v16 = vsel %vm822_vm6, %v2460_v4, %v819_v13  ;;  %vm832_vm9 = vmor %vm830_vm8, %vm831_vm7 }
 0xadb   :  { %v834_v20 = vmul.f32 %v823_v16, %v800_v17  ;;  %v826_v21 = vmul.f32 %v2462_v12, %v825_v15 }
 0xadd   :  { %v837_v23 = vmul.f32 %v2400_v14, %v834_v20  ;;  %v827_v24 = vmul.f32 0.5, %v826_v21 }
 0xadf   :  { %v828_v25 = vsub.f32 1.5, %v827_v24  ;;  %v840_v27 = vadd.f32 %v2401_v22, %v837_v23 }
 0xae1   :  { %v829_v28 = vmul.f32 %v2462_v12, %v828_v25  ;;  %2219 = vmatmul.msk.f32.vlgmr.msra.gmra.mxu2 %vm127_vm2, %v840_v27 }
 0xae3   :  { %v833_v29 = vsel %vm832_vm9, %v2462_v12, %v829_v28 }
 0xae4   :  { %v835_v7 = vmul.f32 %v833_v29, %v801_v18 }
 0xae6   :  { %v838_v31 = vmul.f32 %v2400_v14, %v835_v7 }
 0xae8   :  { %v841_v32 = vadd.f32 %v2401_v22, %v838_v31 }
 0xaea   :  { %2220 = vmatmul.msk.f32.gmra.mxu2 %vm127_vm2, %v841_v32 }
 0xb64   :  { %v2903_v33 = vpop.f32.mrf.mxu2 }
 0xb65   :  { %873 = vrot.lane.b32.xlu0 %v2903_v33, %s2577_s6 }
 0xb6d   :  { %965 = vrot.lane.b32.xlu0 %v2903_v33, %s2580_s9  ;;  %v2909_v34 = vpop.f32.mrf.mxu2 }
 0xb6e   :  { %967 = vrot.lane.b32.xlu2 %v2909_v34, %s2580_s9  ;;  %875 = vrot.lane.b32.xlu1 %v2909_v34, %s2577_s6  ;;  %v2925_v8 = vpack.i.bf16 %v2903_v33, %v2909_v34 }
 0xb6f   :  { %2221 = vmatpush.xpose.msk.msrb.mxu0 %vm220_vm10, %v2909_v34 }
 0xb73   :  { %2222 = vmatpush.xpose.msk.msrb.mxu0 %vm220_vm10, %v2903_v33 }
 0xb75   :  { %961 = vrot.lane.b32.xlu0 %v2903_v33, %s2579_s8 }
 0xb76   :  { %1149 = vrot.lane.b32.xlu2 %v2903_v33, %s2584_s13 }
 0xb7d   :  { %2354 = vrot.lane.b32.xlu0 %v2925_v8, %s2578_s7 }
 0xb7e   :  { %963 = vrot.lane.b32.xlu2 %v2909_v34, %s2579_s8 }
 0xb85   :  { %1057 = vrot.lane.b32.xlu0 %v2903_v33, %s2582_s11 }
 0xb86   :  { %1151 = vrot.lane.b32.xlu2 %v2909_v34, %s2584_s13 }
 0xb8d   :  { %1059 = vrot.lane.b32.xlu0 %v2909_v34, %s2582_s11 }
 0xb95   :  { %1053 = vrot.lane.b32.xlu0 %v2903_v33, %s2583_s12 }
 0xb9d   :  { %1147 = vrot.lane.b32.xlu0 %v2909_v34, %s2586_s15 }
 0xba5   :  { %2359 = vrot.lane.b32.xlu0 %v2925_v8, %s2581_s10 }
 0xbc8   :  { %v968_v19 = vpop.permute.xlu2 %967 }
 0xbc9   :  { %2227 = vmatpush.xpose.msk.msrb.mxu2 %vm220_vm10, %v968_v19 }
 0xbd0   :  { %v1150_v35 = vpop.permute.xlu2 %1149 }
 0xbd7   :  { %v874_v36 = vpop.permute.xlu0 %873 }
 0xbd8   :  { %v964_v37 = vpop.permute.xlu2 %963  ;;  %2223 = vmatmul.msk.f32.vlgmr.msrb.gmra.mxu0 %vm220_vm10, %v874_v36 }
 0xbdf   :  { %v966_v26 = vpop.permute.xlu0 %965 }
 0xbe0   :  { %2228 = vmatpush.xpose.msk.msrb.mxu2 %vm220_vm10, %v966_v26  ;;  %v1152_v40 = vpop.permute.xlu2 %1151  ;;  %v876_v41 = vpop.permute.xlu1 %875 }
 0xbe1   :  { %2224 = vmatmul.msk.f32.gmra.mxu0 %vm220_vm10, %v876_v41 }
 0xbe4   :  { %2239 = vmatpush.xpose.msk.msra.mxu2 %vm220_vm10, %v1152_v40 }
 0xbe7   :  { %v962_v42 = vpop.permute.xlu0 %961 }
 0xbe8   :  { %2240 = vmatpush.xpose.msk.msra.mxu2 %vm220_vm10, %v1150_v35 }
 0xbe9   :  { %2229 = vmatmul.msk.f32.vlgmr.msrb.gmra.mxu2 %vm220_vm10, %v962_v42 }
 0xbef   :  { %v2355_v43 = vpop.permute.xlu0 %2354 }
 0xbf0   :  { %v2356_v30 = vunpack.i.l.bf16 %v2355_v43  ;;  %v2357_v46 = vunpack.i.h.bf16 %v2355_v43 }
 0xbf1   :  { %2230 = vmatmul.msk.f32.gmra.mxu2 %vm220_vm10, %v964_v37 }
 0xbf2   :  { %952 = vmatpush.msra.mxu3 %v2356_v30 }
 0xbf4   :  { %953 = vmatpush.msra.mxu3 %v2357_v46 }
 0xbf7   :  { %v1058_v47 = vpop.permute.xlu0 %1057 }
 0xbff   :  { %v1060_v48 = vpop.permute.xlu0 %1059 }
 0xc00   :  { %2233 = vmatpush.xpose.msk.msrb.mxu3 %vm220_vm10, %v1060_v48 }
 0xc04   :  { %2234 = vmatpush.xpose.msk.msrb.mxu3 %vm220_vm10, %v1058_v47 }
 0xc07   :  { %v1054_v50 = vpop.permute.xlu0 %1053 }
 0xc0f   :  { %v1148_v51 = vpop.permute.xlu0 %1147 }
 0xc17   :  { %v2360_v52 = vpop.permute.xlu0 %2359 }
 0xc18   :  { %v2361_v17 = vunpack.i.l.bf16 %v2360_v52  ;;  %v2362_v53 = vunpack.i.h.bf16 %v2360_v52 }
 0xc1a   :  { %1044 = vmatpush.msra.mxu0 %v2361_v17 }
 0xc1c   :  { %1045 = vmatpush.msra.mxu0 %v2362_v53 }
 0xc55   :  { %v902_v54 = vpop.f32.mrf.mxu0 }
 0xc56   :  { %v908_v55 = vmul.f32 0.17677669, %v902_v54 }
 0xc58   :  { %v910_v56 = vadd.f32 %v908_v55, %v2706_v39 }
 0xc5a   :  { %v912_v18 = vmul.f32 1.442695, %v910_v56 }
 0xc5c   :  { %2463 = vpow2.f32 %v912_v18 }
 0xc5e   :  { %v905_v57 = vpop.f32.mrf.mxu0 }
 0xc5f   :  { %v909_v58 = vmul.f32 0.17677669, %v905_v57 }
 0xc61   :  { %v911_v59 = vadd.f32 %v909_v58, %v2709_v45 }
 0xc62   :  { %v2464_v60 = vpop.eup %2463 }
 0xc63   :  { %v914_v61 = vmul.f32 1.442695, %v911_v59  ;;  %v916_v62 = vsel %vm260_vm11, %v2464_v60, 0.0 }
 0xc64   :  { %917 = vadd.xlane.f32.xlu2 %v916_v62 }
 0xc65   :  { %2465 = vpow2.f32 %v914_v61 }
 0xc6b   :  { %v2466_v63 = vpop.eup %2465 }
 0xc6c   :  { %v994_v0 = vpop.f32.mrf.mxu2  ;;  %v919_v1 = vsel %vm260_vm11, %v2466_v63, 0.0 }
 0xc6d   :  { %920 = vadd.xlane.f32.xlu1 %v919_v1  ;;  %v1000_v10 = vmul.f32 0.17677669, %v994_v0 }
 0xc6f   :  { %v1002_v11 = vadd.f32 %v1000_v10, %v2706_v39 }
 0xc71   :  { %v1004_v12 = vmul.f32 1.442695, %v1002_v11 }
 0xc74   :  { %v997_v2 = vpop.f32.mrf.mxu2 }
 0xc75   :  { %v1001_v3 = vmul.f32 0.17677669, %v997_v2 }
 0xc77   :  { %v1003_v4 = vadd.f32 %v1001_v3, %v2709_v45 }
 0xc79   :  { %v1006_v5 = vmul.f32 1.442695, %v1003_v4 }
 0xc7b   :  { %2467 = vpow2.f32 %v1006_v5 }
 0xc7c   :  { %1145 = vrot.lane.b32.xlu2 %v2903_v33, %s2586_s15  ;;  %2469 = vpow2.f32 %v1004_v12 }
 0xc81   :  { %v2468_v6 = vpop.eup %2467 }
 0xc82   :  { %v1011_v9 = vsel %vm260_vm11, %v2468_v6, 0.0  ;;  %v2470_v13 = vpop.eup %2469 }
 0xc83   :  { %1012 = vadd.xlane.f32.xlu0 %v1011_v9  ;;  %v1008_v14 = vsel %vm260_vm11, %v2470_v13, 0.0 }
 0xc86   :  { %1055 = vrot.lane.b32.xlu1 %v2909_v34, %s2583_s12 }
 0xca5   :  { %1009 = vadd.xlane.f32.xlu2 %v1008_v14 }
 0xcd7   :  { %v918_v15 = vpop.xlane.xlu2 %917 }
 0xcd8   :  { %2471 = vrcp.f32 %v918_v15 }
 0xcde   :  { %v2472_v16 = vpop.eup %2471 }
 0xcdf   :  { %v924_v20 = vmul.f32 %v2472_v16, %v2464_v60  ;;  %v1146_v21 = vpop.permute.xlu2 %1145 }
 0xce0   :  { %2241 = vmatmul.msk.f32.vlgmr.msra.gmra.mxu2 %vm220_vm10, %v1146_v21  ;;  %v921_v22 = vpop.xlane.xlu1 %920  ;;  %v2202_v21 = vld [vmem:[%s3364_s1 + $0xb8] sm:$0xff] }
 0xce1   :  { %2473 = vrcp.f32 %v921_v22  ;;  %2225 = vmatmul.msk.f32.vlgmr.msra.gmra.mxu3 %vm260_vm11, %v924_v20  ;;  %v2201_v22 = vld [vmem:[%s3364_s1 + $0xa0] sm:$0xff] }
 0xce2   :  { %1286 = vmatpush.msra.mxu3 %v2202_v21  ;;  %v2212_v21 = vld [vmem:[%s3365_s2 + $0xc8] sm:$0xff] }
 0xce4   :  { %1287 = vmatpush.msra.mxu3 %v2201_v22  ;;  %v2211_v22 = vld [vmem:[%s3365_s2 + $0xc0] sm:$0xff] }
 0xce7   :  { %v2474_v23 = vpop.eup %2473 }
 0xce8   :  { %2242 = vmatmul.msk.f32.gmra.mxu2 %vm220_vm10, %v1148_v51  ;;  %v925_v24 = vmul.f32 %v2474_v23, %v2466_v63  ;;  %v2200_v23 = vld [vmem:[%s3364_s1 + $0x88] sm:$0xff] }
 0xce9   :  { %1288 = vmatpush.msra.mxu3 %v2200_v23 }
 0xcea   :  { %2226 = vmatmul.msk.f32.gmra.mxu3 %vm260_vm11, %v925_v24  ;;  %v2199_v24 = vld [vmem:[%s3364_s1 + $0x70] sm:$0xff] }
 0xceb   :  { %1289 = vmatpush.msra.mxu3 %v2199_v24  ;;  %v2210_v24 = vld [vmem:[%s3365_s2 + $0xb8] sm:$0xff] }
 0xcf2   :  { %2235 = vmatmul.msk.f32.vlgmr.msrb.gmra.mxu3 %vm220_vm10, %v1054_v50 }
 0xcf6   :  { %v1013_v28 = vpop.xlane.xlu0 %1012 }
 0xcf8   :  { %v1056_v25 = vpop.permute.xlu1 %1055 }
 0xcfa   :  { %2236 = vmatmul.msk.f32.gmra.mxu3 %vm220_vm10, %v1056_v25 }
 0xd18   :  { %v1010_v27 = vpop.xlane.xlu2 %1009 }
 0xd19   :  { %2475 = vrcp.f32 %v1010_v27 }
 0xd1a   :  { %2477 = vrcp.f32 %v1013_v28 }
 0xd1f   :  { %v2476_v29 = vpop.eup %2475 }
 0xd20   :  { %v1016_v7 = vmul.f32 %v2476_v29, %v2470_v13  ;;  %v2478_v31 = vpop.eup %2477 }
 0xd21   :  { %v1017_v32 = vmul.f32 %v2478_v31, %v2468_v6 }
 0xd22   :  { %2231 = vmatmul.msk.f32.vlgmr.msra.gmra.mxu0 %vm260_vm11, %v1016_v7 }
 0xd2a   :  { %2232 = vmatmul.msk.f32.gmra.mxu0 %vm260_vm11, %v1017_v32 }
 0xd63   :  { %v1178_v33 = vpop.f32.mrf.mxu2 }
 0xd64   :  { %v1184_v34 = vmul.f32 0.17677669, %v1178_v33  ;;  %v2973_v19 = vpop.f32.mrf.mxu3 }
 0xd66   :  { %v1186_v35 = vadd.f32 %v1184_v34, %v2706_v39 }
 0xd68   :  { %v1188_v36 = vmul.f32 1.442695, %v1186_v35 }
 0xd6a   :  { %2479 = vpow2.f32 %v1188_v36 }
 0xd6b   :  { %v1181_v41 = vpop.f32.mrf.mxu2 }
 0xd6c   :  { %v1185_v43 = vmul.f32 0.17677669, %v1181_v41 }
 0xd6d   :  { %v2976_v37 = vpop.f32.mrf.mxu3 }
 0xd6e   :  { %v1187_v47 = vadd.f32 %v1185_v43, %v2709_v45 }
 0xd70   :  { %v2480_v26 = vpop.eup %2479  ;;  %v1190_v51 = vmul.f32 1.442695, %v1187_v47 }
 0xd71   :  { %v1192_v40 = vsel %vm260_vm11, %v2480_v26, 0.0 }
 0xd72   :  { %1193 = vadd.xlane.f32.xlu2 %v1192_v40 }
 0xd75   :  { %v1086_v42 = vpop.f32.mrf.mxu3 }
 0xd76   :  { %v1092_v30 = vmul.f32 0.17677669, %v1086_v42 }
 0xd78   :  { %v1094_v46 = vadd.f32 %v1092_v30, %v2706_v39 }
 0xd7a   :  { %v1096_v48 = vmul.f32 1.442695, %v1094_v46 }
 0xd7c   :  { %2481 = vpow2.f32 %v1096_v48 }
 0xd7d   :  { %v1089_v50 = vpop.f32.mrf.mxu3  ;;  %2483 = vpow2.f32 %v1190_v51 }
 0xd7e   :  { %v1093_v52 = vmul.f32 0.17677669, %v1089_v50 }
 0xd80   :  { %v1095_v17 = vadd.f32 %v1093_v52, %v2709_v45 }
 0xd82   :  { %v2482_v53 = vpop.eup %2481  ;;  %v1098_v54 = vmul.f32 1.442695, %v1095_v17 }
 0xd83   :  { %v1100_v55 = vsel %vm260_vm11, %v2482_v53, 0.0  ;;  %v2484_v56 = vpop.eup %2483 }
 0xd84   :  { %2485 = vpow2.f32 %v1098_v54  ;;  %1101 = vadd.xlane.f32.xlu1 %v1100_v55  ;;  %v1195_v39 = vsel %vm260_vm11, %v2484_v56, 0.0 }
 0xd8a   :  { %v2486_v18 = vpop.eup %2485  ;;  %2364 = vrot.lane.b32.xlu2 %v2925_v8, %s2587_s16 }
 0xd8b   :  { %v1103_v57 = vsel %vm260_vm11, %v2486_v18, 0.0 }
 0xd8c   :  { %1196 = vadd.xlane.f32.xlu1 %v1195_v39  ;;  %1104 = vadd.xlane.f32.xlu0 %v1103_v57  ;;  %v2196_v39 = vld [vmem:[%s3364_s1 + $0x80] sm:$0xff]  ;;  %v2195_v57 = vld [vmem:[%s3364_s1 + $0x68] sm:$0xff] }
 0xd9f   :  { %v1047_v58 = vpop.f32.mrf.mxu0 }
 0xda0   :  { %2369 = vrot.lane.b32.xlu0 %v2925_v8, %s2585_s14 }
 0xda5   :  { %1239 = vrot.lane.b32.xlu1 %v1047_v58, %s2573_s21 }
 0xda7   :  { %v1050_v45 = vpop.f32.mrf.mxu0 }
 0xda8   :  { %1241 = vrot.lane.b32.xlu0 %v1050_v45, %s2573_s21 }
 0xde5   :  { %v1194_v59 = vpop.xlane.xlu2 %1193 }
 0xded   :  { %v2365_v60 = vpop.permute.xlu2 %2364 }
 0xdee   :  { %v2366_v61 = vunpack.i.l.bf16 %v2365_v60  ;;  %v2367_v62 = vunpack.i.h.bf16 %v2365_v60 }
 0xdf0   :  { %1136 = vmatpush.msrb.mxu1 %v2366_v61 }
 0xdf2   :  { %1137 = vmatpush.msrb.mxu1 %v2367_v62 }
 0xdf7   :  { %v1102_v63 = vpop.xlane.xlu1 %1101 }
 0xdf8   :  { %2487 = vrcp.f32 %v1102_v63 }
 0xdfe   :  { %v2488_v0 = vpop.eup %2487 }
 0xdff   :  { %v1108_v1 = vmul.f32 %v2488_v0, %v2482_v53  ;;  %v1105_v2 = vpop.xlane.xlu0 %1104  ;;  %v1197_v4 = vpop.xlane.xlu1 %1196 }
 0xe00   :  { %2489 = vrcp.f32 %v1105_v2  ;;  %v2218_v2 = vld [vmem:[%s3365_s2 + $0xf8] sm:$0xff] }
 0xe01   :  { %2237 = vmatmul.msk.f32.vlgmr.msrb.gmra.mxu1 %vm260_vm11, %v1108_v1  ;;  %2491 = vrcp.f32 %v1194_v59  ;;  %1381 = vmatpush.msrb.mxu2 %v2218_v2  ;;  %v2250_v2 = vld [vmem:[%s3364_s1 + $0xd8] sm:$0xff] }
 0xe02   :  { %2493 = vrcp.f32 %v1197_v4 }
 0xe06   :  { %v2490_v8 = vpop.eup %2489 }
 0xe07   :  { %v1109_v3 = vmul.f32 %v2490_v8, %v2486_v18  ;;  %v2492_v6 = vpop.eup %2491  ;;  %v2197_v18 = vld [vmem:[%s3364_s1 + $0x98] sm:$0xff]  ;;  %v2217_v8 = vld [vmem:[%s3365_s2 + $0xf0] sm:$0xff] }
 0xe08   :  { %v1200_v11 = vmul.f32 %v2492_v6, %v2480_v26  ;;  %v2494_v12 = vpop.eup %2493  ;;  %1382 = vmatpush.msrb.mxu2 %v2217_v8  ;;  %v2249_v8 = vld [vmem:[%s3364_s1 + $0xc0] sm:$0xff] }
 0xe09   :  { %2238 = vmatmul.msk.f32.gmra.mxu1 %vm260_vm11, %v1109_v3  ;;  %v1201_v13 = vmul.f32 %v2494_v12, %v2484_v56  ;;  %v2198_v56 = vld [vmem:[%s3364_s1 + $0xb0] sm:$0xff]  ;;  %v2403_v3 = vld [vmem:[#allocation2 + $0xa] ss:$0 sm:$0xff]  ;;  %v2215_v12 = vld [vmem:[%s3365_s2 + $0xe0] sm:$0xff] }
 0xe0a   :  { %1368 = vmatpush.msra.mxu1 %v2198_v56 }
 0xe0c   :  { %1369 = vmatpush.msra.mxu1 %v2197_v18 }
 0xe0e   :  { %1370 = vmatpush.msra.mxu1 %v2196_v39 }
 0xe10   :  { %1371 = vmatpush.msra.mxu1 %v2195_v57 }
 0xe12   :  { %v2370_v5 = vpop.permute.xlu0 %2369 }
 0xe13   :  { %v2371_v9 = vunpack.i.l.bf16 %v2370_v5  ;;  %v2372_v10 = vunpack.i.h.bf16 %v2370_v5  ;;  %v2216_v5 = vld [vmem:[%s3365_s2 + $0xe8] sm:$0xff] }
 0xe14   :  { %1383 = vmatpush.msrb.mxu2 %v2216_v5 }
 0xe15   :  { %1228 = vmatpush.msrb.mxu0 %v2371_v9 }
 0xe16   :  { %1384 = vmatpush.msrb.mxu2 %v2215_v12 }
 0xe17   :  { %1229 = vmatpush.msrb.mxu0 %v2372_v10  ;;  %v1240_v27 = vpop.permute.xlu1 %1239  ;;  %v2404_v10 = vld [vmem:[#allocation2 + $0xb] ss:$0 sm:$0xff] }
 0xe18   :  { %2243 = vmatmul.msk.f32.vlgmr.msrb.gmra.mxu0 %vm260_vm11, %v1200_v11  ;;  %v1261_v28 = vsel %vm220_vm10, %v2973_v19, %v1240_v27  ;;  %v2402_v19 = vld [vmem:[#allocation2 + $0xc] ss:$0 sm:$0xff]  ;;  %v2209_v27 = vld [vmem:[%s3365_s2 + $0xb0] sm:$0xff] }
 0xe1a   :  { %v1242_v32 = vpop.permute.xlu0 %1241 }
 0xe1b   :  { %v1262_v34 = vsel %vm220_vm10, %v2976_v37, %v1242_v32 }
 0xe20   :  { %2244 = vmatmul.msk.f32.gmra.mxu0 %vm260_vm11, %v1201_v13 }
 0xe7e   :  { %v1139_v15 = vpop.f32.mrf.mxu1 }
 0xe86   :  { %v1142_v20 = vpop.f32.mrf.mxu1 }
 0xe95   :  { %v1231_v14 = vpop.f32.mrf.mxu0 }
 0xe96   :  { %1255 = vrot.lane.b32.xlu2 %v1231_v14, %s2589_s24 }
 0xe9d   :  { %v1234_v16 = vpop.f32.mrf.mxu0 }
 0xe9e   :  { %1247 = vrot.lane.b32.xlu2 %v1139_v15, %s2588_s17  ;;  %1257 = vrot.lane.b32.xlu0 %v1234_v16, %s2589_s24  ;;  %v2214_v15 = vld [vmem:[%s3365_s2 + $0xd8] sm:$0xff] }
 0xe9f   :  { %1385 = vmatpush.msrb.mxu2 %v2214_v15 }
 0xea6   :  { %1249 = vrot.lane.b32.xlu2 %v1142_v20, %s2588_s17  ;;  %v2213_v20 = vld [vmem:[%s3365_s2 + $0xd0] sm:$0xff] }
 0xea7   :  { %1386 = vmatpush.msrb.mxu2 %v2213_v20 }
 0xea9   :  { %1387 = vmatpush.msrb.mxu2 %v2212_v21  ;;  %v2408_v21 = vld [vmem:[#allocation2 + $0x11] ss:$0 sm:$0xff] }
 0xeab   :  { %1388 = vmatpush.msrb.mxu2 %v2211_v22 }
 0xead   :  { %1389 = vmatpush.msrb.mxu2 %v2210_v24 }
 0xeaf   :  { %1390 = vmatpush.msrb.mxu2 %v2209_v27 }
 0xef0   :  { %v1256_v25 = vpop.permute.xlu2 %1255 }
 0xef8   :  { %v1248_v29 = vpop.permute.xlu2 %1247 }
 0xef9   :  { %v1263_v7 = vsel %vm260_vm11, %v1261_v28, %v1248_v29  ;;  %v2208_v29 = vld [vmem:[%s3365_s2 + $0xa8] sm:$0xff] }
 0xefa   :  { %v1265_v31 = vsel %vm610_vm12, %v1263_v7, %v1256_v25  ;;  %1391 = vmatpush.msrb.mxu2 %v2208_v29 }
 0xefb   :  { %2245 = vmatmul.msk.f32.vlgmr.msra.gmra.mxu3 %vm127_vm2, %v1265_v31  ;;  %v2207_v31 = vld [vmem:[%s3365_s2 + $0xa0] sm:$0xff] }
 0xefc   :  { %1392 = vmatpush.msrb.mxu2 %v2207_v31 }
 0xf00   :  { %v1250_v33 = vpop.permute.xlu2 %1249 }
 0xf01   :  { %v1264_v35 = vsel %vm260_vm11, %v1262_v34, %v1250_v33  ;;  %v2206_v33 = vld [vmem:[%s3365_s2 + $0x98] sm:$0xff] }
 0xf02   :  { %1393 = vmatpush.msrb.mxu2 %v2206_v33 }
 0xf10   :  { %v1258_v36 = vpop.permute.xlu0 %1257 }
 0xf11   :  { %v1266_v26 = vsel %vm610_vm12, %v1264_v35, %v1258_v36 }
 0xf12   :  { %2246 = vmatmul.msk.f32.gmra.mxu3 %vm127_vm2, %v1266_v26 }
 0xf7e   :  { %v1291_v40 = vpop.f32.mrf.mxu3 }
 0xf7f   :  { %v1292_v41 = vadd.f32 %v2402_v19, %v1291_v40  ;;  %v2205_v40 = vld [vmem:[%s3365_s2 + $0x90] sm:$0xff] }
 0xf80   :  { %1394 = vmatpush.msrb.mxu2 %v2205_v40 }
 0xf81   :  { %v3022_v42 = vadd.f32 %v1292_v41, %v2872_v44  ;;  %v2204_v41 = vld [vmem:[%s3365_s2 + $0x88] sm:$0xff] }
 0xf82   :  { %1395 = vmatpush.msrb.mxu2 %v2204_v41 }
 0xf83   :  { %v1299_v43 = vsel %vm127_vm2, %v3022_v42, 0.0 }
 0xf84   :  { %1300 = vadd.xlane.f32.xlu2 %v1299_v43  ;;  %v2203_v43 = vld [vmem:[%s3365_s2 + $0x80] sm:$0xff] }
 0xf85   :  { %1396 = vmatpush.msrb.mxu2 %v2203_v43 }
 0xf95   :  { %v1294_v30 = vpop.f32.mrf.mxu3 }
 0xf96   :  { %v1295_v46 = vadd.f32 %v2402_v19, %v1294_v30  ;;  %v2405_v30 = vld [vmem:[#allocation2 + $0xe] ss:$0 sm:$0xff] }
 0xf98   :  { %v3027_v37 = vadd.f32 %v1295_v46, %v2877_v49 }
 0xf9a   :  { %v1302_v47 = vsel %vm127_vm2, %v3027_v37, 0.0 }
 0xf9b   :  { %1303 = vadd.xlane.f32.xlu1 %v1302_v47 }
 0xff7   :  { %v1301_v48 = vpop.xlane.xlu2 %1300 }
 0xff8   :  { %v1305_v50 = vmul.f32 %v1301_v48, %v2633_v38 }
 0xffa   :  { %v1307_v51 = vsub.f32 %v3022_v42, %v1305_v50 }
 0xffc   :  { %v1309_v44 = vmul.f32 %v1307_v51, %v1307_v51 }
 0xffe   :  { %v1311_v52 = vsel %vm127_vm2, %v1309_v44, 0.0 }
 0xfff   :  { %1312 = vadd.xlane.f32.xlu0 %v1311_v52  ;;  %v2406_v52 = vld [vmem:[#allocation2 + $0xd] ss:$0 sm:$0xff] }
0x100e   :  { %v1304_v17 = vpop.xlane.xlu1 %1303 }
0x100f   :  { %v1306_v53 = vmul.f32 %v1304_v17, %v2633_v38 }
0x1011   :  { %v3036_v54 = vsub.f32 %v3027_v37, %v1306_v53 }
0x1013   :  { %v1310_v49 = vmul.f32 %v3036_v54, %v3036_v54 }
0x1015   :  { %v1314_v55 = vsel %vm127_vm2, %v1310_v49, 0.0 }
0x1016   :  { %1315 = vadd.xlane.f32.xlu2 %v1314_v55 }
0x1072   :  { %v1313_v58 = vpop.xlane.xlu0 %1312 }
0x1073   :  { %v1317_v45 = vmul.f32 %v1313_v58, %v2633_v38 }
0x1075   :  { %v1319_v59 = vadd.f32 1e-05, %v1317_v45 }
0x1077   :  { %2495 = vrsqrt.f32 %v1319_v59  ;;  %vm1327_vm14 = vweird.f32 %v1319_v59 }
0x107d   :  { %v2496_v60 = vpop.eup %2495 }
0x107e   :  { %v1322_v61 = vmul.f32 %v2496_v60, %v1319_v59  ;;  %vm1328_vm13 = vweird.f32 %v2496_v60 }
0x107f   :  { %vm1329_vm15 = vmor %vm1327_vm14, %vm1328_vm13 }
0x1080   :  { %v1323_v62 = vmul.f32 %v2496_v60, %v1322_v61 }
0x1082   :  { %v1324_v63 = vmul.f32 0.5, %v1323_v62 }
0x1084   :  { %v1325_v0 = vsub.f32 1.5, %v1324_v63 }
0x1086   :  { %v1326_v1 = vmul.f32 %v2496_v60, %v1325_v0  ;;  %v2252_v0 = vld [vmem:[%s3364_s1 + $0x108] sm:$0xff] }
0x1087   :  { %1514 = vmatpush.msra.mxu0 %v2252_v0 }
0x1088   :  { %v1330_v4 = vsel %vm1329_vm15, %v2496_v60, %v1326_v1  ;;  %v2251_v1 = vld [vmem:[%s3364_s1 + $0xf0] sm:$0xff] }
0x1089   :  { %v1341_v6 = vmul.f32 %v1330_v4, %v1307_v51  ;;  %v1316_v9 = vpop.xlane.xlu2 %1315  ;;  %1515 = vmatpush.msra.mxu0 %v2251_v1 }
0x108a   :  { %v1318_v11 = vmul.f32 %v1316_v9, %v2633_v38 }
0x108b   :  { %v1344_v13 = vmul.f32 %v2403_v3, %v1341_v6  ;;  %1516 = vmatpush.msra.mxu0 %v2250_v2 }
0x108c   :  { %v1320_v14 = vadd.f32 1e-05, %v1318_v11 }
0x108d   :  { %v1347_v16 = vadd.f32 %v2404_v10, %v1344_v13  ;;  %1517 = vmatpush.msra.mxu0 %v2249_v8 }
0x108e   :  { %2497 = vrsqrt.f32 %v1320_v14  ;;  %vm1337_vm1 = vweird.f32 %v1320_v14 }
0x108f   :  { %2247 = vmatmul.msk.f32.vlgmr.msra.gmra.mxu1 %vm127_vm2, %v1347_v16 }
0x1094   :  { %v2498_v23 = vpop.eup %2497 }
0x1095   :  { %v1332_v25 = vmul.f32 %v2498_v23, %v1320_v14  ;;  %vm1338_vm0 = vweird.f32 %v2498_v23  ;;  %v2407_v14 = vld [vmem:[#allocation2 + $0x10] ss:$0 sm:$0xff] }
0x1096   :  { %vm1339_vm3 = vmor %vm1337_vm1, %vm1338_vm0 }
0x1097   :  { %v1333_v28 = vmul.f32 %v2498_v23, %v1332_v25 }
0x1099   :  { %v1334_v7 = vmul.f32 0.5, %v1333_v28 }
0x109b   :  { %v1335_v32 = vsub.f32 1.5, %v1334_v7 }
0x109d   :  { %v1336_v34 = vmul.f32 %v2498_v23, %v1335_v32 }
0x109f   :  { %v1340_v35 = vsel %vm1339_vm3, %v2498_v23, %v1336_v34 }
0x10a0   :  { %v1342_v36 = vmul.f32 %v1340_v35, %v3036_v54 }
0x10a2   :  { %v1345_v26 = vmul.f32 %v2403_v3, %v1342_v36 }
0x10a4   :  { %v1348_v19 = vadd.f32 %v2404_v10, %v1345_v26 }
0x10a6   :  { %2248 = vmatmul.msk.f32.gmra.mxu1 %vm127_vm2, %v1348_v19 }
0x110c   :  { %v1373_v46 = vpop.f32.mrf.mxu1 }
0x110d   :  { %v1374_v47 = vadd.f32 %v2405_v30, %v1373_v46 }
0x110f   :  { %v1379_v48 = vmax.f32 %v1374_v47, 0.0 }
0x1111   :  { %1397 = vmatmul.f32.vlgmr.msrb.gmra.mxu2 %v1379_v48 }
0x1123   :  { %v1376_v50 = vpop.f32.mrf.mxu1 }
0x1124   :  { %v1377_v51 = vadd.f32 %v2405_v30, %v1376_v50 }
0x1126   :  { %v1380_v44 = vmax.f32 %v1377_v51, 0.0 }
0x1128   :  { %1400 = vmatmul.f32.gmra.mxu2 %v1380_v44 }
0x1194   :  { %v1398_v17 = vpop.f32.mrf.mxu2 }
0x1195   :  { %v1404_v53 = vadd.f32 %v1398_v17, %v3022_v42 }
0x1197   :  { %v3107_v54 = vadd.f32 %v2406_v52, %v1404_v53 }
0x1199   :  { %v1446_v49 = vsel %vm127_vm2, %v3107_v54, 0.0 }
0x119a   :  { %1447 = vadd.xlane.f32.xlu1 %v1446_v49 }
0x11ab   :  { %v1401_v55 = vpop.f32.mrf.mxu2 }
0x11ac   :  { %v1405_v56 = vadd.f32 %v1401_v55, %v3027_v37 }
0x11ae   :  { %v3112_v18 = vadd.f32 %v2406_v52, %v1405_v56 }
0x11b0   :  { %v1449_v39 = vsel %vm127_vm2, %v3112_v18, 0.0 }
0x11b1   :  { %1450 = vadd.xlane.f32.xlu0 %v1449_v39 }
0x120d   :  { %v1448_v57 = vpop.xlane.xlu1 %1447 }
0x120e   :  { %v1452_v58 = vmul.f32 %v1448_v57, %v2633_v38 }
0x1210   :  { %v1454_v42 = vsub.f32 %v3107_v54, %v1452_v58 }
0x1212   :  { %v1456_v45 = vmul.f32 %v1454_v42, %v1454_v42 }
0x1214   :  { %v1458_v59 = vsel %vm127_vm2, %v1456_v45, 0.0 }
0x1215   :  { %1459 = vadd.xlane.f32.xlu2 %v1458_v59  ;;  %v3188_v59 = vld [vmem:[#allocation2 + $0xd0] sm:$0xff] }
0x1224   :  { %v1451_v60 = vpop.xlane.xlu0 %1450 }
0x1225   :  { %v1453_v61 = vmul.f32 %v1451_v60, %v2633_v38 }
0x1227   :  { %v1455_v37 = vsub.f32 %v3112_v18, %v1453_v61 }
0x1229   :  { %v1457_v62 = vmul.f32 %v1455_v37, %v1455_v37 }
0x122b   :  { %v1461_v63 = vsel %vm127_vm2, %v1457_v62, 0.0 }
0x122c   :  { %1462 = vadd.xlane.f32.xlu1 %v1461_v63  ;;  %v3191_v63 = vld [vmem:[#allocation2 + $0xd8] sm:$0xff] }
0x1288   :  { %v1460_v3 = vpop.xlane.xlu2 %1459 }
0x1289   :  { %v1464_v4 = vmul.f32 %v1460_v3, %v2633_v38 }
0x128b   :  { %v1466_v5 = vadd.f32 1e-05, %v1464_v4 }
0x128d   :  { %2499 = vrsqrt.f32 %v1466_v5  ;;  %vm1474_vm5 = vweird.f32 %v1466_v5 }
0x1293   :  { %v2500_v6 = vpop.eup %2499 }
0x1294   :  { %v1469_v9 = vmul.f32 %v2500_v6, %v1466_v5  ;;  %vm1475_vm4 = vweird.f32 %v2500_v6 }
0x1295   :  { %vm1476_vm6 = vmor %vm1474_vm5, %vm1475_vm4 }
0x1296   :  { %v1470_v10 = vmul.f32 %v2500_v6, %v1469_v9 }
0x1298   :  { %v1471_v11 = vmul.f32 0.5, %v1470_v10 }
0x129a   :  { %v1472_v12 = vsub.f32 1.5, %v1471_v11 }
0x129c   :  { %v1473_v13 = vmul.f32 %v2500_v6, %v1472_v12 }
0x129e   :  { %v1477_v15 = vsel %vm1476_vm6, %v2500_v6, %v1473_v13 }
0x129f   :  { %v1488_v16 = vmul.f32 %v1477_v15, %v1454_v42  ;;  %v1463_v20 = vpop.xlane.xlu1 %1462 }
0x12a0   :  { %v1465_v22 = vmul.f32 %v1463_v20, %v2633_v38 }
0x12a1   :  { %v1491_v23 = vmul.f32 %v2407_v14, %v1488_v16 }
0x12a2   :  { %v1467_v24 = vadd.f32 1e-05, %v1465_v22 }
0x12a3   :  { %v1494_v25 = vadd.f32 %v2408_v21, %v1491_v23 }
0x12a4   :  { %2501 = vrsqrt.f32 %v1467_v24  ;;  %vm1484_vm8 = vweird.f32 %v1467_v24 }
0x12a5   :  { %2277 = vmatmul.msk.f32.vlgmr.msra.gmra.mxu0 %vm127_vm2, %v1494_v25 }
0x12aa   :  { %v2502_v27 = vpop.eup %2501 }
0x12ab   :  { %v1479_v28 = vmul.f32 %v2502_v27, %v1467_v24  ;;  %vm1485_vm7 = vweird.f32 %v2502_v27 }
0x12ac   :  { %vm1486_vm9 = vmor %vm1484_vm8, %vm1485_vm7 }
0x12ad   :  { %v1480_v29 = vmul.f32 %v2502_v27, %v1479_v28 }
0x12af   :  { %v1481_v7 = vmul.f32 0.5, %v1480_v29 }
0x12b1   :  { %v1482_v31 = vsub.f32 1.5, %v1481_v7 }
0x12b3   :  { %v1483_v32 = vmul.f32 %v2502_v27, %v1482_v31 }
0x12b5   :  { %v1487_v33 = vsel %vm1486_vm9, %v2502_v27, %v1483_v32 }
0x12b6   :  { %v1489_v34 = vmul.f32 %v1487_v33, %v1455_v37 }
0x12b8   :  { %v1492_v35 = vmul.f32 %v2407_v14, %v1489_v34 }
0x12ba   :  { %v1495_v36 = vadd.f32 %v2408_v21, %v1492_v35 }
0x12bc   :  { %2278 = vmatmul.msk.f32.gmra.mxu0 %vm127_vm2, %v1495_v36 }
0x1322   :  { %v3138_v26 = vpop.f32.mrf.mxu0 }
0x1323   :  { %1527 = vrot.lane.b32.xlu0 %v3138_v26, %s2577_s6 }
0x132b   :  { %1619 = vrot.lane.b32.xlu0 %v3138_v26, %s2580_s9 }
0x1333   :  { %1615 = vrot.lane.b32.xlu0 %v3138_v26, %s2579_s8 }
0x1339   :  { %v3146_v19 = vpop.f32.mrf.mxu0 }
0x133a   :  { %1621 = vrot.lane.b32.xlu1 %v3146_v19, %s2580_s9  ;;  %1529 = vrot.lane.b32.xlu2 %v3146_v19, %s2577_s6  ;;  %v3154_v40 = vpack.i.bf16 %v3138_v26, %v3146_v19 }
0x133b   :  { %2279 = vmatpush.xpose.msk.msrb.mxu3 %vm220_vm10, %v3146_v19 }
0x133c   :  { %2374 = vrot.lane.b32.xlu0 %v3154_v40, %s2578_s7 }
0x133f   :  { %2280 = vmatpush.xpose.msk.msrb.mxu3 %vm220_vm10, %v3138_v26 }
0x1342   :  { %1803 = vrot.lane.b32.xlu1 %v3138_v26, %s2584_s13 }
0x1344   :  { %1711 = vrot.lane.b32.xlu0 %v3138_v26, %s2582_s11 }
0x134a   :  { %1617 = vrot.lane.b32.xlu1 %v3146_v19, %s2579_s8 }
0x134c   :  { %1713 = vrot.lane.b32.xlu0 %v3146_v19, %s2582_s11 }
0x1352   :  { %1805 = vrot.lane.b32.xlu1 %v3146_v19, %s2584_s13 }
0x1354   :  { %1707 = vrot.lane.b32.xlu0 %v3138_v26, %s2583_s12 }
0x135c   :  { %1709 = vrot.lane.b32.xlu0 %v3146_v19, %s2583_s12 }
0x1364   :  { %2379 = vrot.lane.b32.xlu0 %v3154_v40, %s2581_s10 }
0x1394   :  { %v1530_v43 = vpop.permute.xlu2 %1529 }
0x1395   :  { %v1528_v41 = vpop.permute.xlu0 %1527 }
0x1396   :  { %2281 = vmatmul.msk.f32.vlgmr.msrb.gmra.mxu3 %vm220_vm10, %v1528_v41 }
0x139d   :  { %v1620_v30 = vpop.permute.xlu0 %1619 }
0x139e   :  { %2282 = vmatmul.msk.f32.gmra.mxu3 %vm220_vm10, %v1530_v43 }
0x13a5   :  { %v1616_v46 = vpop.permute.xlu0 %1615 }
0x13ac   :  { %v1622_v47 = vpop.permute.xlu1 %1621 }
0x13ad   :  { %2285 = vmatpush.xpose.msk.msrb.mxu0 %vm220_vm10, %v1622_v47 }
0x13ae   :  { %v2375_v48 = vpop.permute.xlu0 %2374 }
0x13af   :  { %v2376_v50 = vunpack.i.l.bf16 %v2375_v48  ;;  %v2377_v51 = vunpack.i.h.bf16 %v2375_v48 }
0x13b1   :  { %1606 = vmatpush.msrb.mxu1 %v2376_v50  ;;  %2286 = vmatpush.xpose.msk.msrb.mxu0 %vm220_vm10, %v1620_v30 }
0x13b3   :  { %1607 = vmatpush.msrb.mxu1 %v2377_v51 }
0x13b4   :  { %2287 = vmatmul.msk.f32.vlgmr.msrb.gmra.mxu0 %vm220_vm10, %v1616_v46  ;;  %v1804_v44 = vpop.permute.xlu1 %1803 }
0x13b6   :  { %v1712_v52 = vpop.permute.xlu0 %1711 }
0x13bc   :  { %v1618_v17 = vpop.permute.xlu1 %1617 }
0x13bd   :  { %2288 = vmatmul.msk.f32.gmra.mxu0 %vm220_vm10, %v1618_v17 }
0x13be   :  { %v1714_v53 = vpop.permute.xlu0 %1713 }
0x13bf   :  { %2291 = vmatpush.xpose.msk.msra.mxu1 %vm220_vm10, %v1714_v53 }
0x13c3   :  { %2292 = vmatpush.xpose.msk.msra.mxu1 %vm220_vm10, %v1712_v52 }
0x13c4   :  { %v1806_v49 = vpop.permute.xlu1 %1805 }
0x13c5   :  { %2297 = vmatpush.xpose.msk.msra.mxu0 %vm220_vm10, %v1806_v49 }
0x13c6   :  { %v1708_v55 = vpop.permute.xlu0 %1707 }
0x13c9   :  { %2298 = vmatpush.xpose.msk.msra.mxu0 %vm220_vm10, %v1804_v44 }
0x13ce   :  { %v1710_v56 = vpop.permute.xlu0 %1709 }
0x13d6   :  { %v2380_v39 = vpop.permute.xlu0 %2379 }
0x13d7   :  { %v2381_v57 = vunpack.i.l.bf16 %v2380_v39  ;;  %v2382_v58 = vunpack.i.h.bf16 %v2380_v39 }
0x13d9   :  { %1698 = vmatpush.msra.mxu3 %v2381_v57 }
0x13db   :  { %1699 = vmatpush.msra.mxu3 %v2382_v58 }
0x1419   :  { %v1556_v42 = vpop.f32.mrf.mxu3 }
0x141a   :  { %v1562_v45 = vmul.f32 0.17677669, %v1556_v42 }
0x141c   :  { %v1564_v60 = vadd.f32 %v3188_v59, %v1562_v45 }
0x141e   :  { %v1566_v61 = vmul.f32 1.442695, %v1564_v60 }
0x1420   :  { %2503 = vpow2.f32 %v1566_v61 }
0x1421   :  { %v1559_v37 = vpop.f32.mrf.mxu3 }
0x1422   :  { %v1563_v62 = vmul.f32 0.17677669, %v1559_v37 }
0x1424   :  { %v1565_v0 = vadd.f32 %v3191_v63, %v1563_v62 }
0x1426   :  { %v2504_v1 = vpop.eup %2503  ;;  %v1568_v2 = vmul.f32 1.442695, %v1565_v0 }
0x1427   :  { %v1570_v8 = vsel %vm260_vm11, %v2504_v1, 0.0 }
0x1428   :  { %2505 = vpow2.f32 %v1568_v2  ;;  %1571 = vadd.xlane.f32.xlu1 %v1570_v8 }
0x142e   :  { %v2506_v3 = vpop.eup %2505 }
0x142f   :  { %v1573_v4 = vsel %vm260_vm11, %v2506_v3, 0.0 }
0x1430   :  { %1574 = vadd.xlane.f32.xlu2 %v1573_v4 }
0x1431   :  { %v1648_v5 = vpop.f32.mrf.mxu0 }
0x1432   :  { %v1654_v14 = vmul.f32 0.17677669, %v1648_v5 }
0x1434   :  { %v1656_v15 = vadd.f32 %v3188_v59, %v1654_v14 }
0x1436   :  { %v1658_v16 = vmul.f32 1.442695, %v1656_v15 }
0x143a   :  { %v1651_v6 = vpop.f32.mrf.mxu0 }
0x143b   :  { %v1655_v9 = vmul.f32 0.17677669, %v1651_v6 }
0x143d   :  { %v1657_v10 = vadd.f32 %v3191_v63, %v1655_v9 }
0x143f   :  { %v1660_v11 = vmul.f32 1.442695, %v1657_v10 }
0x1441   :  { %2507 = vpow2.f32 %v1660_v11  ;;  %1799 = vrot.lane.b32.xlu1 %v3138_v26, %s2586_s15 }
0x1442   :  { %2509 = vpow2.f32 %v1658_v16 }
0x1447   :  { %v2508_v12 = vpop.eup %2507 }
0x1448   :  { %1801 = vrot.lane.b32.xlu2 %v3146_v19, %s2586_s15  ;;  %v1665_v13 = vsel %vm260_vm11, %v2508_v12, 0.0  ;;  %v2510_v20 = vpop.eup %2509 }
0x1449   :  { %1666 = vadd.xlane.f32.xlu0 %v1665_v13  ;;  %v1662_v21 = vsel %vm260_vm11, %v2510_v20, 0.0 }
0x146b   :  { %1663 = vadd.xlane.f32.xlu1 %v1662_v21 }
0x149b   :  { %v1572_v22 = vpop.xlane.xlu1 %1571 }
0x149c   :  { %2511 = vrcp.f32 %v1572_v22 }
0x14a2   :  { %v2512_v23 = vpop.eup %2511 }
0x14a3   :  { %v1578_v24 = vmul.f32 %v2512_v23, %v2504_v1  ;;  %v1575_v25 = vpop.xlane.xlu2 %1574 }
0x14a4   :  { %2513 = vrcp.f32 %v1575_v25  ;;  %v2260_v25 = vld [vmem:[%s3364_s1 + $0x118] sm:$0xff] }
0x14a5   :  { %2283 = vmatmul.msk.f32.vlgmr.msrb.gmra.mxu1 %vm260_vm11, %v1578_v24 }
0x14a6   :  { %1940 = vmatpush.msrb.mxu1 %v2260_v25  ;;  %v2267_v25 = vld [vmem:[%s3365_s2 + $0x130] sm:$0xff] }
0x14aa   :  { %v2514_v27 = vpop.eup %2513 }
0x14ab   :  { %v1579_v28 = vmul.f32 %v2514_v27, %v2506_v3  ;;  %v1802_v7 = vpop.permute.xlu2 %1801  ;;  %v2259_v27 = vld [vmem:[%s3364_s1 + $0x100] sm:$0xff] }
0x14ac   :  { %1941 = vmatpush.msrb.mxu1 %v2259_v27 }
0x14ad   :  { %2284 = vmatmul.msk.f32.gmra.mxu1 %vm260_vm11, %v1579_v28  ;;  %v2258_v28 = vld [vmem:[%s3364_s1 + $0xe8] sm:$0xff] }
0x14ae   :  { %1942 = vmatpush.msrb.mxu1 %v2258_v28 }
0x14b3   :  { %v1800_v29 = vpop.permute.xlu1 %1799 }
0x14b4   :  { %2299 = vmatmul.msk.f32.vlgmr.msra.gmra.mxu0 %vm220_vm10, %v1800_v29  ;;  %v2257_v29 = vld [vmem:[%s3364_s1 + $0xd0] sm:$0xff] }
0x14b5   :  { %2293 = vmatmul.msk.f32.vlgmr.msra.gmra.mxu1 %vm220_vm10, %v1708_v55 }
0x14b6   :  { %1943 = vmatpush.msrb.mxu1 %v2257_v29 }
0x14bc   :  { %2300 = vmatmul.msk.f32.gmra.mxu0 %vm220_vm10, %v1802_v7  ;;  %v1667_v32 = vpop.xlane.xlu0 %1666 }
0x14bd   :  { %2294 = vmatmul.msk.f32.gmra.mxu1 %vm220_vm10, %v1710_v56 }
0x14de   :  { %v1664_v31 = vpop.xlane.xlu1 %1663 }
0x14df   :  { %2515 = vrcp.f32 %v1664_v31 }
0x14e0   :  { %2517 = vrcp.f32 %v1667_v32 }
0x14e5   :  { %v2516_v33 = vpop.eup %2515 }
0x14e6   :  { %v1670_v34 = vmul.f32 %v2516_v33, %v2510_v20  ;;  %v2518_v35 = vpop.eup %2517 }
0x14e7   :  { %v1671_v36 = vmul.f32 %v2518_v35, %v2508_v12 }
0x14e8   :  { %2289 = vmatmul.msk.f32.vlgmr.msra.gmra.mxu3 %vm260_vm11, %v1670_v34 }
0x14f0   :  { %2290 = vmatmul.msk.f32.gmra.mxu3 %vm260_vm11, %v1671_v36 }
0x1522   :  { %v3212_v26 = vpop.f32.mrf.mxu1 }
0x152a   :  { %v3214_v19 = vpop.f32.mrf.mxu1 }
0x1531   :  { %v1832_v41 = vpop.f32.mrf.mxu0 }
0x1532   :  { %v1838_v43 = vmul.f32 0.17677669, %v1832_v41  ;;  %v1740_v30 = vpop.f32.mrf.mxu1 }
0x1533   :  { %v1746_v46 = vmul.f32 0.17677669, %v1740_v30 }
0x1534   :  { %v1840_v47 = vadd.f32 %v3188_v59, %v1838_v43 }
0x1535   :  { %v1748_v48 = vadd.f32 %v3188_v59, %v1746_v46 }
0x1536   :  { %v1842_v50 = vmul.f32 1.442695, %v1840_v47 }
0x1537   :  { %v1750_v51 = vmul.f32 1.442695, %v1748_v48 }
0x1538   :  { %2519 = vpow2.f32 %v1842_v50 }
0x1539   :  { %2521 = vpow2.f32 %v1750_v51  ;;  %v1835_v44 = vpop.f32.mrf.mxu0 }
0x153a   :  { %v1743_v52 = vpop.f32.mrf.mxu1  ;;  %v1839_v17 = vmul.f32 0.17677669, %v1835_v44 }
0x153b   :  { %v1747_v53 = vmul.f32 0.17677669, %v1743_v52 }
0x153c   :  { %v1841_v39 = vadd.f32 %v3191_v63, %v1839_v17 }
0x153d   :  { %v1749_v49 = vadd.f32 %v3191_v63, %v1747_v53 }
0x153e   :  { %v2520_v55 = vpop.eup %2519  ;;  %v1844_v45 = vmul.f32 1.442695, %v1841_v39 }
0x153f   :  { %v2522_v56 = vpop.eup %2521  ;;  %v1752_v57 = vmul.f32 1.442695, %v1749_v49  ;;  %v1846_v58 = vsel %vm260_vm11, %v2520_v55, 0.0 }
0x1540   :  { %1847 = vadd.xlane.f32.xlu1 %v1846_v58  ;;  %v1754_v42 = vsel %vm260_vm11, %v2522_v56, 0.0 }
0x1541   :  { %2523 = vpow2.f32 %v1752_v57  ;;  %1755 = vadd.xlane.f32.xlu2 %v1754_v42 }
0x1542   :  { %2525 = vpow2.f32 %v1844_v45 }
0x1547   :  { %v2524_v59 = vpop.eup %2523 }
0x1548   :  { %v1757_v60 = vsel %vm260_vm11, %v2524_v59, 0.0  ;;  %v2526_v61 = vpop.eup %2525 }
0x1549   :  { %1758 = vadd.xlane.f32.xlu0 %v1757_v60  ;;  %v1849_v37 = vsel %vm260_vm11, %v2526_v61, 0.0  ;;  %v2255_v60 = vld [vmem:[%s3364_s1 + $0xf8] sm:$0xff] }
0x1551   :  { %1850 = vadd.xlane.f32.xlu0 %v1849_v37  ;;  %v2253_v37 = vld [vmem:[%s3364_s1 + $0xc8] sm:$0xff] }
0x1559   :  { %2384 = vrot.lane.b32.xlu1 %v3154_v40, %s2587_s16  ;;  %2389 = vrot.lane.b32.xlu2 %v3154_v40, %s2585_s14 }
0x156b   :  { %v1701_v62 = vpop.f32.mrf.mxu3 }
0x156c   :  { %1893 = vrot.lane.b32.xlu0 %v1701_v62, %s2573_s21 }
0x1573   :  { %v1704_v63 = vpop.f32.mrf.mxu3 }
0x1574   :  { %1895 = vrot.lane.b32.xlu2 %v1704_v63, %s2573_s21 }
0x15b3   :  { %v1848_v0 = vpop.xlane.xlu1 %1847 }
0x15b4   :  { %v1756_v1 = vpop.xlane.xlu2 %1755  ;;  %2527 = vrcp.f32 %v1848_v0 }
0x15ba   :  { %v2528_v3 = vpop.eup %2527 }
0x15bb   :  { %v1854_v6 = vmul.f32 %v2528_v3, %v2520_v55 }
0x15bc   :  { %v1759_v2 = vpop.xlane.xlu0 %1758  ;;  %v2390_v8 = vpop.permute.xlu2 %2389 }
0x15bd   :  { %v2391_v4 = vunpack.i.l.bf16 %v2390_v8  ;;  %v2392_v5 = vunpack.i.h.bf16 %v2390_v8  ;;  %v2274_v8 = vld [vmem:[%s3365_s2 + $0x168] sm:$0xff] }
0x15bf   :  { %1882 = vmatpush.msrb.mxu3 %v2391_v4 }
0x15c1   :  { %1883 = vmatpush.msrb.mxu3 %v2392_v5  ;;  %v2273_v5 = vld [vmem:[%s3365_s2 + $0x160] sm:$0xff] }
0x15c2   :  { %2301 = vmatmul.msk.f32.vlgmr.msrb.gmra.mxu3 %vm260_vm11, %v1854_v6 }
0x15c4   :  { %v1851_v40 = vpop.xlane.xlu0 %1850 }
0x15c5   :  { %2529 = vrcp.f32 %v1851_v40 }
0x15c6   :  { %2531 = vrcp.f32 %v1756_v1  ;;  %v2276_v1 = vld [vmem:[%s3365_s2 + $0x178] sm:$0xff] }
0x15c7   :  { %2533 = vrcp.f32 %v1759_v2  ;;  %v2275_v2 = vld [vmem:[%s3365_s2 + $0x170] sm:$0xff]  ;;  %2035 = vmatpush.msrb.mxu0 %v2276_v1 }
0x15c9   :  { %2036 = vmatpush.msrb.mxu0 %v2275_v2 }
0x15cb   :  { %v2530_v9 = vpop.eup %2529  ;;  %v2385_v10 = vpop.permute.xlu1 %2384  ;;  %2037 = vmatpush.msrb.mxu0 %v2274_v8 }
0x15cc   :  { %v2532_v11 = vpop.eup %2531  ;;  %v2386_v12 = vunpack.i.l.bf16 %v2385_v10  ;;  %v1855_v13 = vmul.f32 %v2530_v9, %v2526_v61  ;;  %v2387_v14 = vunpack.i.h.bf16 %v2385_v10  ;;  %v2254_v61 = vld [vmem:[%s3364_s1 + $0xe0] sm:$0xff]  ;;  %v2272_v9 = vld [vmem:[%s3365_s2 + $0x158] sm:$0xff] }
0x15cd   :  { %v1762_v15 = vmul.f32 %v2532_v11, %v2522_v56  ;;  %v2534_v16 = vpop.eup %2533  ;;  %2038 = vmatpush.msrb.mxu0 %v2273_v5  ;;  %v2271_v11 = vld [vmem:[%s3365_s2 + $0x150] sm:$0xff] }
0x15ce   :  { %1790 = vmatpush.msra.mxu2 %v2386_v12  ;;  %2302 = vmatmul.msk.f32.gmra.mxu3 %vm260_vm11, %v1855_v13  ;;  %v1763_v20 = vmul.f32 %v2534_v16, %v2524_v59  ;;  %v1896_v36 = vpop.permute.xlu2 %1895  ;;  %v2256_v59 = vld [vmem:[%s3364_s1 + $0x110] sm:$0xff]  ;;  %v2270_v13 = vld [vmem:[%s3365_s2 + $0x148] sm:$0xff] }
0x15cf   :  { %v1916_v41 = vsel %vm220_vm10, %v3214_v19, %v1896_v36  ;;  %2039 = vmatpush.msrb.mxu0 %v2272_v9  ;;  %v2117_v5 = vld [vmem:[#allocation2 + $0xb0] sm:$0xff] }
0x15d0   :  { %1791 = vmatpush.msra.mxu2 %v2387_v14 }
0x15d1   :  { %2295 = vmatmul.msk.f32.vlgmr.msra.gmra.mxu2 %vm260_vm11, %v1762_v15  ;;  %2040 = vmatpush.msrb.mxu0 %v2271_v11  ;;  %v2269_v15 = vld [vmem:[%s3365_s2 + $0x140] sm:$0xff] }
0x15d2   :  { %2022 = vmatpush.msrb.mxu2 %v2256_v59 }
0x15d3   :  { %2041 = vmatpush.msrb.mxu0 %v2270_v13 }
0x15d4   :  { %2023 = vmatpush.msrb.mxu2 %v2255_v60 }
0x15d5   :  { %2042 = vmatpush.msrb.mxu0 %v2269_v15 }
0x15d6   :  { %2024 = vmatpush.msrb.mxu2 %v2254_v61 }
0x15d8   :  { %2025 = vmatpush.msrb.mxu2 %v2253_v37 }
0x15d9   :  { %2296 = vmatmul.msk.f32.gmra.mxu2 %vm260_vm11, %v1763_v20 }
0x15de   :  { %v1894_v31 = vpop.permute.xlu0 %1893 }
0x15df   :  { %v1915_v32 = vsel %vm220_vm10, %v3212_v26, %v1894_v31  ;;  %v2409_v26 = vld [vmem:[#allocation2 + $0x14] ss:$0 sm:$0xff]  ;;  %v2266_v31 = vld [vmem:[%s3365_s2 + $0x128] sm:$0xff] }
0x1645   :  { %v1885_v21 = vpop.f32.mrf.mxu3 }
0x1646   :  { %1909 = vrot.lane.b32.xlu1 %v1885_v21, %s2589_s24  ;;  %v2268_v21 = vld [vmem:[%s3365_s2 + $0x138] sm:$0xff] }
0x1647   :  { %2043 = vmatpush.msrb.mxu0 %v2268_v21 }
0x1649   :  { %2044 = vmatpush.msrb.mxu0 %v2267_v25 }
0x164b   :  { %2045 = vmatpush.msrb.mxu0 %v2266_v31  ;;  %v2415_v31 = vld [vmem:[#allocation2 + $0x19] ss:$0 sm:$0xff] }
0x1651   :  { %v1888_v22 = vpop.f32.mrf.mxu3 }
0x1652   :  { %1911 = vrot.lane.b32.xlu0 %v1888_v22, %s2589_s24 }
0x1654   :  { %v1793_v23 = vpop.f32.mrf.mxu2 }
0x1655   :  { %1901 = vrot.lane.b32.xlu1 %v1793_v23, %s2588_s17 }
0x165c   :  { %v1796_v24 = vpop.f32.mrf.mxu2 }
0x165d   :  { %1903 = vrot.lane.b32.xlu1 %v1796_v24, %s2588_s17  ;;  %v2410_v24 = vld [vmem:[#allocation2 + $0x12] ss:$0 sm:$0xff] }
0x16b8   :  { %v1910_v7 = vpop.permute.xlu1 %1909 }
0x16c4   :  { %v1912_v30 = vpop.permute.xlu0 %1911 }
0x16c7   :  { %v1902_v33 = vpop.permute.xlu1 %1901 }
0x16c8   :  { %v1917_v34 = vsel %vm260_vm11, %v1915_v32, %v1902_v33 }
0x16c9   :  { %v1919_v35 = vsel %vm610_vm12, %v1917_v34, %v1910_v7  ;;  %v2411_v7 = vld [vmem:[#allocation2 + $0x13] ss:$0 sm:$0xff]  ;;  %v2265_v34 = vld [vmem:[%s3365_s2 + $0x120] sm:$0xff] }
0x16ca   :  { %2303 = vmatmul.msk.f32.vlgmr.msrb.gmra.mxu1 %vm127_vm2, %v1919_v35  ;;  %2046 = vmatpush.msrb.mxu0 %v2265_v34 }
0x16cf   :  { %v1904_v43 = vpop.permute.xlu1 %1903 }
0x16d0   :  { %v1918_v46 = vsel %vm260_vm11, %v1916_v41, %v1904_v43  ;;  %v2264_v41 = vld [vmem:[%s3365_s2 + $0x118] sm:$0xff] }
0x16d1   :  { %v1920_v47 = vsel %vm610_vm12, %v1918_v46, %v1912_v30  ;;  %2047 = vmatpush.msrb.mxu0 %v2264_v41 }
0x16d2   :  { %2304 = vmatmul.msk.f32.gmra.mxu1 %vm127_vm2, %v1920_v47 }
0x1747   :  { %v1945_v48 = vpop.f32.mrf.mxu1 }
0x1748   :  { %v1946_v50 = vadd.f32 %v2409_v26, %v1945_v48  ;;  %v2263_v48 = vld [vmem:[%s3365_s2 + $0x110] sm:$0xff] }
0x1749   :  { %2048 = vmatpush.msrb.mxu0 %v2263_v48 }
0x174a   :  { %v3261_v51 = vadd.f32 %v1946_v50, %v3107_v54  ;;  %v2262_v50 = vld [vmem:[%s3365_s2 + $0x108] sm:$0xff] }
0x174b   :  { %2049 = vmatpush.msrb.mxu0 %v2262_v50 }
0x174c   :  { %v1953_v44 = vsel %vm127_vm2, %v3261_v51, 0.0 }
0x174d   :  { %1954 = vadd.xlane.f32.xlu2 %v1953_v44  ;;  %v2261_v44 = vld [vmem:[%s3365_s2 + $0x100] sm:$0xff] }
0x174e   :  { %2050 = vmatpush.msrb.mxu0 %v2261_v44 }
0x174f   :  { %v1948_v52 = vpop.f32.mrf.mxu1 }
0x1750   :  { %v1949_v19 = vadd.f32 %v2409_v26, %v1948_v52  ;;  %v2412_v52 = vld [vmem:[#allocation2 + $0x16] ss:$0 sm:$0xff] }
0x1752   :  { %v3266_v17 = vadd.f32 %v1949_v19, %v3112_v18 }
0x1754   :  { %v1956_v53 = vsel %vm127_vm2, %v3266_v17, 0.0 }
0x1755   :  { %1957 = vadd.xlane.f32.xlu1 %v1956_v53 }
0x17c0   :  { %v1955_v49 = vpop.xlane.xlu2 %1954 }
0x17c1   :  { %v1959_v55 = vmul.f32 %v1955_v49, %v2633_v38 }
0x17c3   :  { %v1961_v56 = vsub.f32 %v3261_v51, %v1959_v55 }
0x17c5   :  { %v1963_v54 = vmul.f32 %v1961_v56, %v1961_v56 }
0x17c7   :  { %v1965_v39 = vsel %vm127_vm2, %v1963_v54, 0.0 }
0x17c8   :  { %1966 = vadd.xlane.f32.xlu0 %v1965_v39  ;;  %v1958_v57 = vpop.xlane.xlu1 %1957  ;;  %v2413_v39 = vld [vmem:[#allocation2 + $0x15] ss:$0 sm:$0xff] }
0x17c9   :  { %v1960_v58 = vmul.f32 %v1958_v57, %v2633_v38 }
0x17cb   :  { %v3275_v42 = vsub.f32 %v3266_v17, %v1960_v58 }
0x17cd   :  { %v1964_v18 = vmul.f32 %v3275_v42, %v3275_v42 }
0x17cf   :  { %v1968_v45 = vsel %vm127_vm2, %v1964_v18, 0.0 }
0x17d0   :  { %1969 = vadd.xlane.f32.xlu2 %v1968_v45 }
0x183b   :  { %v1967_v62 = vpop.xlane.xlu0 %1966 }
0x183c   :  { %v1971_v63 = vmul.f32 %v1967_v62, %v2633_v38 }
0x183e   :  { %v1973_v0 = vadd.f32 1e-05, %v1971_v63 }
0x1840   :  { %2535 = vrsqrt.f32 %v1973_v0  ;;  %vm1981_vm11 = vweird.f32 %v1973_v0 }
0x1843   :  { %v1970_v3 = vpop.xlane.xlu2 %1969 }
0x1844   :  { %v1972_v4 = vmul.f32 %v1970_v3, %v2633_v38 }
0x1846   :  { %v2536_v6 = vpop.eup %2535  ;;  %v1974_v40 = vadd.f32 1e-05, %v1972_v4 }
0x1847   :  { %v1976_v10 = vmul.f32 %v2536_v6, %v1973_v0  ;;  %vm1982_vm10 = vweird.f32 %v2536_v6 }
0x1848   :  { %2537 = vrsqrt.f32 %v1974_v40  ;;  %vm1983_vm12 = vmor %vm1981_vm11, %vm1982_vm10  ;;  %vm1991_vm14 = vweird.f32 %v1974_v40 }
0x1849   :  { %v1977_v12 = vmul.f32 %v2536_v6, %v1976_v10 }
0x184b   :  { %v1978_v14 = vmul.f32 0.5, %v1977_v12 }
0x184d   :  { %v1979_v16 = vsub.f32 1.5, %v1978_v14 }
0x184e   :  { %v2538_v20 = vpop.eup %2537 }
0x184f   :  { %v1980_v22 = vmul.f32 %v2536_v6, %v1979_v16  ;;  %v1986_v23 = vmul.f32 %v2538_v20, %v1974_v40  ;;  %vm1992_vm13 = vweird.f32 %v2538_v20  ;;  %v2115_v40 = vld [vmem:[#allocation2 + $0xa0] sm:$0xff] }
0x1850   :  { %vm1993_vm15 = vmor %vm1991_vm14, %vm1992_vm13 }
0x1851   :  { %v1984_v27 = vsel %vm1983_vm12, %v2536_v6, %v1980_v22  ;;  %v1987_v28 = vmul.f32 %v2538_v20, %v1986_v23  ;;  %v2116_v6 = vld [vmem:[#allocation2 + $0xa8] sm:$0xff] }
0x1852   :  { %v1995_v29 = vmul.f32 %v1984_v27, %v1961_v56  ;;  %v2414_v27 = vld [vmem:[#allocation2 + $0x18] ss:$0 sm:$0xff] }
0x1853   :  { %v1988_v32 = vmul.f32 0.5, %v1987_v28 }
0x1854   :  { %v1998_v33 = vmul.f32 %v2410_v24, %v1995_v29 }
0x1855   :  { %v1989_v35 = vsub.f32 1.5, %v1988_v32 }
0x1856   :  { %v2001_v36 = vadd.f32 %v2411_v7, %v1998_v33 }
0x1857   :  { %v1990_v43 = vmul.f32 %v2538_v20, %v1989_v35 }
0x1858   :  { %2305 = vmatmul.msk.f32.vlgmr.msrb.gmra.mxu2 %vm127_vm2, %v2001_v36 }
0x1859   :  { %v1994_v30 = vsel %vm1993_vm15, %v2538_v20, %v1990_v43 }
0x185a   :  { %v1996_v46 = vmul.f32 %v1994_v30, %v3275_v42 }
0x185c   :  { %v1999_v47 = vmul.f32 %v2410_v24, %v1996_v46  ;;  %v2416_v46 = vld [vmem:[#allocation2 + $0x1a] ss:$0 sm:$0xff] }
0x185e   :  { %v2002_v26 = vadd.f32 %v2411_v7, %v1999_v47 }
0x1860   :  { %2306 = vmatmul.msk.f32.gmra.mxu2 %vm127_vm2, %v2002_v26 }
0x18db   :  { %v2027_v19 = vpop.f32.mrf.mxu2 }
0x18dc   :  { %v2028_v53 = vadd.f32 %v2412_v52, %v2027_v19 }
0x18de   :  { %v2033_v49 = vmax.f32 %v2028_v53, 0.0 }
0x18e0   :  { %2051 = vmatmul.f32.vlgmr.msrb.gmra.mxu0 %v2033_v49 }
0x18e3   :  { %v2030_v55 = vpop.f32.mrf.mxu2 }
0x18e4   :  { %v2031_v56 = vadd.f32 %v2412_v52, %v2030_v55 }
0x18e6   :  { %v2034_v54 = vmax.f32 %v2031_v56, 0.0 }
0x18e8   :  { %2054 = vmatmul.f32.gmra.mxu0 %v2034_v54 }
0x195d   :  { %v2052_v57 = vpop.f32.mrf.mxu0 }
0x195e   :  { %v2058_v58 = vadd.f32 %v2052_v57, %v3261_v51 }
0x1960   :  { %v2061_v42 = vadd.f32 %v2413_v39, %v2058_v58 }
0x1962   :  { %v2065_v18 = vsel %vm127_vm2, %v2061_v42, 0.0 }
0x1963   :  { %2066 = vadd.xlane.f32.xlu1 %v2065_v18 }
0x1965   :  { %v2055_v45 = vpop.f32.mrf.mxu0 }
0x1966   :  { %v2059_v59 = vadd.f32 %v2055_v45, %v3266_v17  ;;  %v2118_v17 = vld [vmem:[#allocation2 + $0xb8] sm:$0xff] }
0x1967   :  { %2139 = vmatpush.msra.mxu3 %v2118_v17 }
0x1968   :  { %v2062_v60 = vadd.f32 %v2413_v39, %v2059_v59 }
0x1969   :  { %2140 = vmatpush.msra.mxu3 %v2117_v5 }
0x196a   :  { %v2068_v61 = vsel %vm127_vm2, %v2062_v60, 0.0 }
0x196b   :  { %2069 = vadd.xlane.f32.xlu0 %v2068_v61  ;;  %2141 = vmatpush.msra.mxu3 %v2116_v6 }
0x196d   :  { %2142 = vmatpush.msra.mxu3 %v2115_v40 }
0x19d6   :  { %v2067_v37 = vpop.xlane.xlu1 %2066 }
0x19d7   :  { %v2071_v62 = vmul.f32 %v2067_v37, %v2633_v38 }
0x19d9   :  { %v2073_v63 = vsub.f32 %v2061_v42, %v2071_v62 }
0x19db   :  { %v2075_v0 = vmul.f32 %v2073_v63, %v2073_v63 }
0x19dd   :  { %v2077_v1 = vsel %vm127_vm2, %v2075_v0, 0.0 }
0x19de   :  { %2078 = vadd.xlane.f32.xlu2 %v2077_v1  ;;  %v2070_v51 = vpop.xlane.xlu0 %2069 }
0x19df   :  { %v2072_v2 = vmul.f32 %v2070_v51, %v2633_v38 }
0x19e1   :  { %v2074_v8 = vsub.f32 %v2062_v60, %v2072_v2 }
0x19e3   :  { %v2076_v3 = vmul.f32 %v2074_v8, %v2074_v8 }
0x19e5   :  { %v2080_v4 = vsel %vm127_vm2, %v2076_v3, 0.0 }
0x19e6   :  { %2081 = vadd.xlane.f32.xlu1 %v2080_v4 }
0x1a51   :  { %v2079_v9 = vpop.xlane.xlu2 %2078 }
0x1a52   :  { %v2083_v10 = vmul.f32 %v2079_v9, %v2633_v38 }
0x1a54   :  { %v2085_v11 = vadd.f32 1e-05, %v2083_v10 }
0x1a56   :  { %2539 = vrsqrt.f32 %v2085_v11  ;;  %vm2093_vm1 = vweird.f32 %v2085_v11 }
0x1a59   :  { %v2082_v12 = vpop.xlane.xlu1 %2081 }
0x1a5a   :  { %v2084_v13 = vmul.f32 %v2082_v12, %v2633_v38 }
0x1a5c   :  { %v2540_v14 = vpop.eup %2539  ;;  %v2086_v15 = vadd.f32 1e-05, %v2084_v13 }
0x1a5d   :  { %v2088_v16 = vmul.f32 %v2540_v14, %v2085_v11  ;;  %vm2094_vm0 = vweird.f32 %v2540_v14 }
0x1a5e   :  { %2541 = vrsqrt.f32 %v2086_v15  ;;  %vm2095_vm3 = vmor %vm2093_vm1, %vm2094_vm0  ;;  %vm2103_vm5 = vweird.f32 %v2086_v15 }
0x1a5f   :  { %v2089_v20 = vmul.f32 %v2540_v14, %v2088_v16 }
0x1a61   :  { %v2090_v21 = vmul.f32 0.5, %v2089_v20 }
0x1a63   :  { %v2091_v22 = vsub.f32 1.5, %v2090_v21 }
0x1a64   :  { %v2542_v23 = vpop.eup %2541 }
0x1a65   :  { %v2092_v24 = vmul.f32 %v2540_v14, %v2091_v22  ;;  %v2098_v25 = vmul.f32 %v2542_v23, %v2086_v15  ;;  %vm2104_vm4 = vweird.f32 %v2542_v23 }
0x1a66   :  { %vm2105_vm6 = vmor %vm2103_vm5, %vm2104_vm4 }
0x1a67   :  { %v2096_v28 = vsel %vm2095_vm3, %v2540_v14, %v2092_v24  ;;  %v2099_v29 = vmul.f32 %v2542_v23, %v2098_v25 }
0x1a68   :  { %v2107_v7 = vmul.f32 %v2096_v28, %v2073_v63 }
0x1a69   :  { %v2100_v32 = vmul.f32 0.5, %v2099_v29 }
0x1a6a   :  { %v2110_v38 = vmul.f32 %v2414_v27, %v2107_v7 }
0x1a6b   :  { %v2101_v33 = vsub.f32 1.5, %v2100_v32 }
0x1a6c   :  { %v2113_v34 = vadd.f32 %v2415_v31, %v2110_v38 }
0x1a6d   :  { %v2102_v35 = vmul.f32 %v2542_v23, %v2101_v33 }
0x1a6e   :  { %2307 = vmatmul.msk.f32.vlgmr.msra.gmra.mxu3 %vm127_vm2, %v2113_v34 }
0x1a6f   :  { %v2106_v36 = vsel %vm2105_vm6, %v2542_v23, %v2102_v35 }
0x1a70   :  { %v2108_v41 = vmul.f32 %v2106_v36, %v2074_v8 }
0x1a72   :  { %v2111_v43 = vmul.f32 %v2414_v27, %v2108_v41 }
0x1a74   :  { %v2114_v30 = vadd.f32 %v2415_v31, %v2111_v43 }
0x1a76   :  { %2308 = vmatmul.msk.f32.gmra.mxu3 %vm127_vm2, %v2114_v30 }
0x1af1   :  { %v2144_v47 = vpop.f32.mrf.mxu3 }
0x1af2   :  { %v2145_v26 = vadd.f32 %v2416_v46, %v2144_v47 }
0x1af4   :  { %2150 = vst [vmem:[%s3367_s4] sm:$0xff] %v2145_v26 }
0x1af9   :  { %v2147_v48 = vpop.f32.mrf.mxu3 }
0x1afa   :  { %v2148_v50 = vadd.f32 %v2416_v46, %v2147_v48 }
0x1afc   :  { %2151 = vst [vmem:[%s3367_s4 + $0x8] sm:$0xff] %v2148_v50 }
0x1afd   :  { %2156 = vsyncpa [#allocation3], 1 }

</bundles_post_ra>
